<compile_context>
chip_gen: v7x
topology: tpu7x:2x2x1
jax: 0.10.0
libtpu: 0.0.40
codegen_flags: <defaults>
</compile_context>

<pallas_src>
import functools

import jax
import jax.numpy as jnp
from jax.experimental import pallas as pl
from jax.experimental.pallas import tpu as pltpu


# ----------------------------------------------------------------------------
# Pallas kernel: K-accumulated (patches @ weight) with fused BN/bias/activation
# ----------------------------------------------------------------------------
def _fused_matmul_kernel(p_ref, w_ref, scale_ref, shift_ref, o_ref, acc_ref, *, act):
    k = pl.program_id(3)

    @pl.when(k == 0)
    def _init():
        acc_ref[...] = jnp.zeros_like(acc_ref)

    acc_ref[...] += jnp.dot(p_ref[...], w_ref[...],
                            preferred_element_type=jnp.float32)

    @pl.when(k == pl.num_programs(3) - 1)
    def _finalize():
        y = acc_ref[...] * scale_ref[...] + shift_ref[...]   # (tm, tn) * (1, tn)
        if act == "leaky_relu":
            y = jnp.where(y > 0, y, 0.2 * y)                 # slope 0.2 per spec
        elif act == "relu":
            y = jnp.maximum(y, 0.0)
        elif act == "tanh":
            y = jnp.tanh(y)
        o_ref[...] = y.astype(o_ref.dtype)


def _round_up(x, m):
    return (x + m - 1) // m * m


def _fused_matmul(patches, weight, scale, shift, act, out_dtype):
    """patches: (G, M, K), weight: (G, K, C), scale/shift: (G, 1, C) float32.

    Returns (G, M, C) in out_dtype.  Matmul inputs are cast to bf16 (MXU peak
    dtype on all generations); accumulation and epilogue are f32.
    """
    G, M, K = patches.shape
    _, _, C = weight.shape

    # Tile sizes: sublane-multiple M tiles, 128/256-multiple K and C tiles.
    tm = min(256, _round_up(M, 8))
    tk = min(512, _round_up(K, 128))
    tn = min(256, _round_up(C, 128))
    Mp, Kp, Cp = _round_up(M, tm), _round_up(K, tk), _round_up(C, tn)

    # Zero-padding K / C_out is numerically free (zero contributions / sliced off).
    patches = jnp.pad(patches, ((0, 0), (0, Mp - M), (0, Kp - K))).astype(jnp.bfloat16)
    weight = jnp.pad(weight, ((0, 0), (0, Kp - K), (0, Cp - C))).astype(jnp.bfloat16)
    scale = jnp.pad(scale, ((0, 0), (0, 0), (0, Cp - C))).astype(jnp.float32)
    shift = jnp.pad(shift, ((0, 0), (0, 0), (0, Cp - C))).astype(jnp.float32)

    grid = (G, Mp // tm, Cp // tn, Kp // tk)

    out = pl.pallas_call(
        functools.partial(_fused_matmul_kernel, act=act),
        out_shape=jax.ShapeDtypeStruct((G, Mp, Cp), out_dtype),
        grid_spec=pltpu.PrefetchScalarGridSpec(
            num_scalar_prefetch=0,
            grid=grid,
            in_specs=[
                pl.BlockSpec((None, tm, tk), lambda g, i, j, k: (g, i, k)),
                pl.BlockSpec((None, tk, tn), lambda g, i, j, k: (g, k, j)),
                pl.BlockSpec((None, 1, tn), lambda g, i, j, k: (g, 0, j)),
                pl.BlockSpec((None, 1, tn), lambda g, i, j, k: (g, 0, j)),
            ],
            out_specs=pl.BlockSpec((None, tm, tn), lambda g, i, j, k: (g, i, j)),
            scratch_shapes=[pltpu.VMEM((tm, tn), jnp.float32)],
        ),
        compiler_params=pltpu.CompilerParams(
            dimension_semantics=("parallel", "parallel", "parallel", "arbitrary"),
            vmem_limit_bytes=48 * 1024 * 1024,   # valid on v7x (64 MiB physical)
        ),
    )(patches, weight, scale, shift)
    return out[:, :M, :C]


# ----------------------------------------------------------------------------
# JAX glue: BN folding, NHWC conv / sub-pixel deconv layer wrappers
# ----------------------------------------------------------------------------
def _fold_bn(bias, bn, c_out, eps=1e-5):
    """Fold conv bias + (inference-mode) BatchNorm into per-channel scale/shift."""
    if bn is None:
        scale = jnp.ones((1, c_out), jnp.float32)
        shift = bias.reshape(1, c_out)
    else:
        gamma, beta, mean, var = bn
        inv = gamma / jnp.sqrt(var + eps)
        scale = inv.reshape(1, c_out)
        shift = ((bias - mean) * inv + beta).reshape(1, c_out)
    return scale, shift


def _conv_layer(x, w, b, bn, act, out_dtype=jnp.bfloat16):
    """Conv2d(k=4, s=2, p=1) on NHWC input.  w: PyTorch layout (C_out, C_in, 4, 4)."""
    N, H, W, C_in = x.shape
    C_out = w.shape[0]
    Ho, Wo = H // 2, W // 2
    # TODO(synk): patch extraction still materialized host-side (in bf16); a
    # fully in-kernel im2col via shifted BlockSpecs would remove the remaining
    # HBM amplification.
    xp = jnp.pad(x, ((0, 0), (1, 1), (1, 1), (0, 0)))
    cols = []
    for ky in range(4):
        for kx in range(4):
            cols.append(xp[:, ky:ky + 2 * Ho:2, kx:kx + 2 * Wo:2, :])
    patches = jnp.concatenate(cols, axis=-1).reshape(1, N * Ho * Wo, 16 * C_in)
    # K order = (ky, kx, C_in)  ->  weight rows in the same order.
    w2 = jnp.transpose(w, (2, 3, 1, 0)).reshape(1, 16 * C_in, C_out)
    scale, shift = _fold_bn(b, bn, C_out)
    out = _fused_matmul(patches, w2, scale[None], shift[None], act, out_dtype)
    return out.reshape(N, Ho, Wo, C_out)


def _deconv_layer(x, w, b, bn, act, out_dtype=jnp.bfloat16):
    """ConvTranspose2d(k=4, s=2, p=1) on NHWC input via sub-pixel decomposition.

    w: PyTorch layout (C_in, C_out, 4, 4).  Output pixel (2m+py, 2n+px) only
    depends on input rows m+dy (dy in {-1,0} if py==0 else {0,1}) with kernel
    row ky = py + 1 - 2*dy (same for columns), so each parity is a dense
    matmul with K = 4*C_in instead of 16*C_in over a zero-dilated input.
    """
    N, H, W, C_in = x.shape
    C_out = w.shape[1]
    xp = jnp.pad(x, ((0, 0), (1, 1), (1, 1), (0, 0)))

    patch_groups, weight_groups = [], []
    for py in (0, 1):
        dys = (-1, 0) if py == 0 else (0, 1)
        for px in (0, 1):
            dxs = (-1, 0) if px == 0 else (0, 1)
            cols, ws = [], []
            for dy in dys:
                for dx in dxs:
                    cols.append(xp[:, 1 + dy:1 + dy + H, 1 + dx:1 + dx + W, :])
                    ky, kx = py + 1 - 2 * dy, px + 1 - 2 * dx
                    ws.append(w[:, :, ky, kx])                 # (C_in, C_out)
            patch_groups.append(
                jnp.concatenate(cols, axis=-1).reshape(N * H * W, 4 * C_in))
            weight_groups.append(jnp.concatenate(ws, axis=0))  # (4*C_in, C_out)

    patches = jnp.stack(patch_groups, axis=0)                  # (4, M, 4*C_in)
    weights = jnp.stack(weight_groups, axis=0)                 # (4, 4*C_in, C_out)
    scale, shift = _fold_bn(b, bn, C_out)
    scale = jnp.broadcast_to(scale[None], (4, 1, C_out))
    shift = jnp.broadcast_to(shift[None], (4, 1, C_out))

    out = _fused_matmul(patches, weights, scale, shift, act, out_dtype)  # (4, M, C)
    out = out.reshape(2, 2, N, H, W, C_out)                    # (py, px, n, h, w, c)
    out = jnp.transpose(out, (2, 3, 0, 4, 1, 5)).reshape(N, 2 * H, 2 * W, C_out)
    return out


# ----------------------------------------------------------------------------
# Deterministic parameter construction (shapes from SimpleGenerator.__init__)
# ----------------------------------------------------------------------------
def init_params(key):
    keys = iter(jax.random.split(key, 64))

    def conv(co, ci):
        return {"w": 0.02 * jax.random.normal(next(keys), (co, ci, 4, 4), jnp.float32),
                "b": 0.01 * jax.random.normal(next(keys), (co,), jnp.float32)}

    def deconv(ci, co):
        return {"w": 0.02 * jax.random.normal(next(keys), (ci, co, 4, 4), jnp.float32),
                "b": 0.01 * jax.random.normal(next(keys), (co,), jnp.float32)}

    def bn(c):
        # NOTE: BatchNorm is implemented in inference (running-stats) mode.
        # TODO(synk): training-mode per-batch statistics not implemented.
        gamma = 1.0 + 0.1 * jax.random.normal(next(keys), (c,), jnp.float32)
        beta = 0.1 * jax.random.normal(next(keys), (c,), jnp.float32)
        mean = 0.05 * jax.random.normal(next(keys), (c,), jnp.float32)
        var = jnp.ones((c,), jnp.float32)
        return (gamma, beta, mean, var)

    enc = [
        {**conv(64, 3), "bn": None},
        {**conv(128, 64), "bn": bn(128)},
        {**conv(256, 128), "bn": bn(256)},
        {**conv(512, 256), "bn": bn(512)},
    ]
    dec = [
        {**deconv(512, 256), "bn": bn(256)},
        {**deconv(256, 128), "bn": bn(128)},
        {**deconv(128, 64), "bn": bn(64)},
        {**deconv(64, 3), "bn": None},
    ]
    return {"enc": enc, "dec": dec}


def forward(params, x_nchw):
    x = jnp.transpose(x_nchw, (0, 2, 3, 1))          # NCHW -> NHWC (once)
    enc, dec = params["enc"], params["dec"]
    # encoder: Conv+LReLU, then 3x (Conv+BN+LReLU)
    h = _conv_layer(x, enc[0]["w"], enc[0]["b"], enc[0]["bn"], "leaky_relu")
    h = _conv_layer(h, enc[1]["w"], enc[1]["b"], enc[1]["bn"], "leaky_relu")
    h = _conv_layer(h, enc[2]["w"], enc[2]["b"], enc[2]["bn"], "leaky_relu")
    h = _conv_layer(h, enc[3]["w"], enc[3]["b"], enc[3]["bn"], "leaky_relu")
    # decoder: 3x (ConvT+BN+ReLU), then ConvT+Tanh (final output kept in f32)
    h = _deconv_layer(h, dec[0]["w"], dec[0]["b"], dec[0]["bn"], "relu")
    h = _deconv_layer(h, dec[1]["w"], dec[1]["b"], dec[1]["bn"], "relu")
    h = _deconv_layer(h, dec[2]["w"], dec[2]["b"], dec[2]["bn"], "relu")
    h = _deconv_layer(h, dec[3]["w"], dec[3]["b"], dec[3]["bn"], "tanh",
                      out_dtype=jnp.float32)
    return jnp.transpose(h, (0, 3, 1, 2))            # NHWC -> NCHW (once)


if __name__ == "__main__":
    key = jax.random.PRNGKey(0)
    pkey, xkey = jax.random.split(key)
    params = init_params(pkey)

    # NCHW input, 3 channels, 16x16 spatial (survives 4 stride-2 downsamples).
    x = jax.random.normal(xkey, (2, 3, 16, 16), jnp.float32)

    y = jax.jit(lambda xx: forward(params, xx))(x)
    y = jax.block_until_ready(y)

    assert y.shape == (2, 3, 16, 16), y.shape
    assert bool(jnp.all(jnp.isfinite(y)))
    assert bool(jnp.all(jnp.abs(y) <= 1.0 + 1e-6))  # tanh output range
    print("KERNEL_OK")
</pallas_src>

<mosaic_0001>
module attributes {stable_mosaic.version = 11 : i64} {
  func.func @_fused_matmul_kernel(%arg0: i32, %arg1: i32, %arg2: i32, %arg3: i32, %arg4: memref<1x128x128xbf16, #tpu.memory_space<vmem>>, %arg5: memref<1x128x128xbf16, #tpu.memory_space<vmem>>, %arg6: memref<1x1x128xf32, #tpu.memory_space<vmem>>, %arg7: memref<1x1x128xf32, #tpu.memory_space<vmem>>, %arg8: memref<1x128x128xbf16, #tpu.memory_space<vmem>>, %arg9: memref<128x128xf32, #tpu.memory_space<vmem>>) attributes {dimension_semantics = [#tpu.dimension_semantics<parallel>, #tpu.dimension_semantics<parallel>, #tpu.dimension_semantics<parallel>, #tpu.dimension_semantics<arbitrary>], iteration_bounds = array<i64: 1, 1, 1, 1>, scalar_prefetch = 0 : i64, scratch_operands = 1 : i64, tpu.core_type = #tpu.core_type<tc>, window_params = [{transform_indices = @transform_0, window_bounds = array<i64: 1, 128, 128>}, {transform_indices = @transform_1, window_bounds = array<i64: 1, 128, 128>}, {transform_indices = @transform_2, window_bounds = array<i64: 1, 1, 128>}, {transform_indices = @transform_3, window_bounds = array<i64: 1, 1, 128>}, {transform_indices = @transform_4, window_bounds = array<i64: 1, 128, 128>}]} {
    %c0_i32 = arith.constant 0 : i32
    %0 = arith.cmpi eq, %arg3, %c0_i32 : i32
    %1 = arith.extui %0 : i1 to i32
    %c0_i32_0 = arith.constant 0 : i32
    %2 = arith.cmpi ne, %1, %c0_i32_0 : i32
    scf.if %2 {
      %cst_12 = arith.constant 0.000000e+00 : f32
      %14 = vector.broadcast %cst_12 : f32 to vector<128x128xf32>
      %c0_13 = arith.constant 0 : index
      %c0_14 = arith.constant 0 : index
      %15 = vector.load %arg9[%c0_13, %c0_14] : memref<128x128xf32, #tpu.memory_space<vmem>>, vector<128x128xf32>
      tpu.vector_store %arg9[%c0_13, %c0_14], %14 {strides = array<i32>} : memref<128x128xf32, #tpu.memory_space<vmem>>, vector<128x128xf32>,
    } else {
    }
    %c0 = arith.constant 0 : index
    %c0_1 = arith.constant 0 : index
    %3 = vector.load %arg9[%c0, %c0_1] : memref<128x128xf32, #tpu.memory_space<vmem>>, vector<128x128xf32>
    %c0_2 = arith.constant 0 : index
    %c0_3 = arith.constant 0 : index
    %c0_4 = arith.constant 0 : index
    %4 = vector.load %arg4[%c0_2, %c0_3, %c0_4] : memref<1x128x128xbf16, #tpu.memory_space<vmem>>, vector<1x128x128xbf16>
    %5 = vector.shape_cast %4 : vector<1x128x128xbf16> to vector<128x128xbf16>
    %c0_5 = arith.constant 0 : index
    %c0_6 = arith.constant 0 : index
    %c0_7 = arith.constant 0 : index
    %6 = vector.load %arg5[%c0_5, %c0_6, %c0_7] : memref<1x128x128xbf16, #tpu.memory_space<vmem>>, vector<1x128x128xbf16>
    %7 = vector.shape_cast %6 : vector<1x128x128xbf16> to vector<128x128xbf16>
    %cst = arith.constant dense<0.000000e+00> : vector<128x128xf32>
    %8 = tpu.matmul %5, %7, %cst {dimension_numbers = #tpu.dot_dimension_numbers<[1], [0], [0], [1], [0, 0, 1, 1], [], []>} : vector<128x128xbf16>, vector<128x128xbf16>, vector<128x128xf32> -> vector<128x128xf32>
    %9 = arith.addf %3, %8 : vector<128x128xf32>
    %c0_8 = arith.constant 0 : index
    %c0_9 = arith.constant 0 : index
    %10 = vector.load %arg9[%c0_8, %c0_9] : memref<128x128xf32, #tpu.memory_space<vmem>>, vector<128x128xf32>
    tpu.vector_store %arg9[%c0_8, %c0_9], %9 {strides = array<i32>} : memref<128x128xf32, #tpu.memory_space<vmem>>, vector<128x128xf32>,
    %c0_i32_10 = arith.constant 0 : i32
    %11 = arith.cmpi eq, %arg3, %c0_i32_10 : i32
    %12 = arith.extui %11 : i1 to i32
    %c0_i32_11 = arith.constant 0 : i32
    %13 = arith.cmpi ne, %12, %c0_i32_11 : i32
    scf.if %13 {
      %c0_12 = arith.constant 0 : index
      %c0_13 = arith.constant 0 : index
      %14 = vector.load %arg9[%c0_12, %c0_13] : memref<128x128xf32, #tpu.memory_space<vmem>>, vector<128x128xf32>
      %c0_14 = arith.constant 0 : index
      %c0_15 = arith.constant 0 : index
      %c0_16 = arith.constant 0 : index
      %15 = vector.load %arg6[%c0_14, %c0_15, %c0_16] : memref<1x1x128xf32, #tpu.memory_space<vmem>>, vector<1x1x128xf32>
      %16 = vector.shape_cast %15 : vector<1x1x128xf32> to vector<1x128xf32>
      %17 = vector.broadcast %16 : vector<1x128xf32> to vector<128x128xf32>
      %18 = arith.mulf %14, %17 : vector<128x128xf32>
      %c0_17 = arith.constant 0 : index
      %c0_18 = arith.constant 0 : index
      %c0_19 = arith.constant 0 : index
      %19 = vector.load %arg7[%c0_17, %c0_18, %c0_19] : memref<1x1x128xf32, #tpu.memory_space<vmem>>, vector<1x1x128xf32>
      %20 = vector.shape_cast %19 : vector<1x1x128xf32> to vector<1x128xf32>
      %21 = vector.broadcast %20 : vector<1x128xf32> to vector<128x128xf32>
      %22 = arith.addf %18, %21 : vector<128x128xf32>
      %cst_20 = arith.constant 0.000000e+00 : f32
      %23 = vector.broadcast %cst_20 : f32 to vector<128x128xf32>
      %24 = arith.cmpf ogt, %22, %23 : vector<128x128xf32>
      %cst_21 = arith.constant 2.000000e-01 : f32
      %25 = vector.broadcast %cst_21 : f32 to vector<128x128xf32>
      %26 = arith.mulf %25, %22 : vector<128x128xf32>
      %27 = arith.select %24, %22, %26 : vector<128x128xi1>, vector<128x128xf32>
      %28 = arith.truncf %27 : vector<128x128xf32> to vector<128x128xbf16>
      %c0_22 = arith.constant 0 : index
      %c0_23 = arith.constant 0 : index
      %c0_24 = arith.constant 0 : index
      %29 = vector.load %arg8[%c0_22, %c0_23, %c0_24] : memref<1x128x128xbf16, #tpu.memory_space<vmem>>, vector<1x128x128xbf16>
      %30 = vector.shape_cast %29 : vector<1x128x128xbf16> to vector<128x128xbf16>
      %31 = vector.shape_cast %28 : vector<128x128xbf16> to vector<1x128x128xbf16>
      tpu.vector_store %arg8[%c0_22, %c0_23, %c0_24], %31 {strides = array<i32>} : memref<1x128x128xbf16, #tpu.memory_space<vmem>>, vector<1x128x128xbf16>,
    } else {
    }
    return
  }
  func.func @transform_0(%arg0: i32, %arg1: i32, %arg2: i32, %arg3: i32) -> (i32, i32, i32) {
    %c0_i32 = arith.constant 0 : i32
    return %arg0, %arg1, %arg3 : i32, i32, i32
  }
  func.func @transform_1(%arg0: i32, %arg1: i32, %arg2: i32, %arg3: i32) -> (i32, i32, i32) {
    %c0_i32 = arith.constant 0 : i32
    return %arg0, %arg3, %arg2 : i32, i32, i32
  }
  func.func @transform_2(%arg0: i32, %arg1: i32, %arg2: i32, %arg3: i32) -> (i32, i32, i32) {
    %c0_i32 = arith.constant 0 : i32
    %c0_i32_0 = arith.constant 0 : i32
    return %arg0, %c0_i32, %arg2 : i32, i32, i32
  }
  func.func @transform_3(%arg0: i32, %arg1: i32, %arg2: i32, %arg3: i32) -> (i32, i32, i32) {
    %c0_i32 = arith.constant 0 : i32
    %c0_i32_0 = arith.constant 0 : i32
    return %arg0, %c0_i32, %arg2 : i32, i32, i32
  }
  func.func @transform_4(%arg0: i32, %arg1: i32, %arg2: i32, %arg3: i32) -> (i32, i32, i32) {
    %c0_i32 = arith.constant 0 : i32
    return %arg0, %arg1, %arg2 : i32, i32, i32
  }
}

module attributes {stable_mosaic.version = 11 : i64} {
  func.func @_fused_matmul_kernel(%arg0: i32, %arg1: i32, %arg2: i32, %arg3: i32, %arg4: memref<1x32x512xbf16, #tpu.memory_space<vmem>>, %arg5: memref<1x512x128xbf16, #tpu.memory_space<vmem>>, %arg6: memref<1x1x128xf32, #tpu.memory_space<vmem>>, %arg7: memref<1x1x128xf32, #tpu.memory_space<vmem>>, %arg8: memref<1x32x128xbf16, #tpu.memory_space<vmem>>, %arg9: memref<32x128xf32, #tpu.memory_space<vmem>>) attributes {dimension_semantics = [#tpu.dimension_semantics<parallel>, #tpu.dimension_semantics<parallel>, #tpu.dimension_semantics<parallel>, #tpu.dimension_semantics<arbitrary>], iteration_bounds = array<i64: 1, 1, 1, 2>, scalar_prefetch = 0 : i64, scratch_operands = 1 : i64, tpu.core_type = #tpu.core_type<tc>, window_params = [{transform_indices = @transform_0, window_bounds = array<i64: 1, 32, 512>}, {transform_indices = @transform_1, window_bounds = array<i64: 1, 512, 128>}, {transform_indices = @transform_2, window_bounds = array<i64: 1, 1, 128>}, {transform_indices = @transform_3, window_bounds = array<i64: 1, 1, 128>}, {transform_indices = @transform_4, window_bounds = array<i64: 1, 32, 128>}]} {
    %c0_i32 = arith.constant 0 : i32
    %0 = arith.cmpi eq, %arg3, %c0_i32 : i32
    %1 = arith.extui %0 : i1 to i32
    %c0_i32_0 = arith.constant 0 : i32
    %2 = arith.cmpi ne, %1, %c0_i32_0 : i32
    scf.if %2 {
      %cst_11 = arith.constant 0.000000e+00 : f32
      %14 = vector.broadcast %cst_11 : f32 to vector<32x128xf32>
      %c0_12 = arith.constant 0 : index
      %c0_13 = arith.constant 0 : index
      %15 = vector.load %arg9[%c0_12, %c0_13] : memref<32x128xf32, #tpu.memory_space<vmem>>, vector<32x128xf32>
      tpu.vector_store %arg9[%c0_12, %c0_13], %14 {strides = array<i32>} : memref<32x128xf32, #tpu.memory_space<vmem>>, vector<32x128xf32>,
    } else {
    }
    %c0 = arith.constant 0 : index
    %c0_1 = arith.constant 0 : index
    %3 = vector.load %arg9[%c0, %c0_1] : memref<32x128xf32, #tpu.memory_space<vmem>>, vector<32x128xf32>
    %c0_2 = arith.constant 0 : index
    %c0_3 = arith.constant 0 : index
    %c0_4 = arith.constant 0 : index
    %4 = vector.load %arg4[%c0_2, %c0_3, %c0_4] : memref<1x32x512xbf16, #tpu.memory_space<vmem>>, vector<1x32x512xbf16>
    %5 = vector.shape_cast %4 : vector<1x32x512xbf16> to vector<32x512xbf16>
    %c0_5 = arith.constant 0 : index
    %c0_6 = arith.constant 0 : index
    %c0_7 = arith.constant 0 : index
    %6 = vector.load %arg5[%c0_5, %c0_6, %c0_7] : memref<1x512x128xbf16, #tpu.memory_space<vmem>>, vector<1x512x128xbf16>
    %7 = vector.shape_cast %6 : vector<1x512x128xbf16> to vector<512x128xbf16>
    %cst = arith.constant dense<0.000000e+00> : vector<32x128xf32>
    %8 = tpu.matmul %5, %7, %cst {dimension_numbers = #tpu.dot_dimension_numbers<[1], [0], [0], [1], [0, 0, 1, 1], [], []>} : vector<32x512xbf16>, vector<512x128xbf16>, vector<32x128xf32> -> vector<32x128xf32>
    %9 = arith.addf %3, %8 : vector<32x128xf32>
    %c0_8 = arith.constant 0 : index
    %c0_9 = arith.constant 0 : index
    %10 = vector.load %arg9[%c0_8, %c0_9] : memref<32x128xf32, #tpu.memory_space<vmem>>, vector<32x128xf32>
    tpu.vector_store %arg9[%c0_8, %c0_9], %9 {strides = array<i32>} : memref<32x128xf32, #tpu.memory_space<vmem>>, vector<32x128xf32>,
    %c1_i32 = arith.constant 1 : i32
    %11 = arith.cmpi eq, %arg3, %c1_i32 : i32
    %12 = arith.extui %11 : i1 to i32
    %c0_i32_10 = arith.constant 0 : i32
    %13 = arith.cmpi ne, %12, %c0_i32_10 : i32
    scf.if %13 {
      %c0_11 = arith.constant 0 : index
      %c0_12 = arith.constant 0 : index
      %14 = vector.load %arg9[%c0_11, %c0_12] : memref<32x128xf32, #tpu.memory_space<vmem>>, vector<32x128xf32>
      %c0_13 = arith.constant 0 : index
      %c0_14 = arith.constant 0 : index
      %c0_15 = arith.constant 0 : index
      %15 = vector.load %arg6[%c0_13, %c0_14, %c0_15] : memref<1x1x128xf32, #tpu.memory_space<vmem>>, vector<1x1x128xf32>
      %16 = vector.shape_cast %15 : vector<1x1x128xf32> to vector<1x128xf32>
      %17 = vector.broadcast %16 : vector<1x128xf32> to vector<32x128xf32>
      %18 = arith.mulf %14, %17 : vector<32x128xf32>
      %c0_16 = arith.constant 0 : index
      %c0_17 = arith.constant 0 : index
      %c0_18 = arith.constant 0 : index
      %19 = vector.load %arg7[%c0_16, %c0_17, %c0_18] : memref<1x1x128xf32, #tpu.memory_space<vmem>>, vector<1x1x128xf32>
      %20 = vector.shape_cast %19 : vector<1x1x128xf32> to vector<1x128xf32>
      %21 = vector.broadcast %20 : vector<1x128xf32> to vector<32x128xf32>
      %22 = arith.addf %18, %21 : vector<32x128xf32>
      %cst_19 = arith.constant 0.000000e+00 : f32
      %23 = vector.broadcast %cst_19 : f32 to vector<32x128xf32>
      %24 = arith.cmpf ogt, %22, %23 : vector<32x128xf32>
      %cst_20 = arith.constant 2.000000e-01 : f32
      %25 = vector.broadcast %cst_20 : f32 to vector<32x128xf32>
      %26 = arith.mulf %25, %22 : vector<32x128xf32>
      %27 = arith.select %24, %22, %26 : vector<32x128xi1>, vector<32x128xf32>
      %28 = arith.truncf %27 : vector<32x128xf32> to vector<32x128xbf16>
      %c0_21 = arith.constant 0 : index
      %c0_22 = arith.constant 0 : index
      %c0_23 = arith.constant 0 : index
      %29 = vector.load %arg8[%c0_21, %c0_22, %c0_23] : memref<1x32x128xbf16, #tpu.memory_space<vmem>>, vector<1x32x128xbf16>
      %30 = vector.shape_cast %29 : vector<1x32x128xbf16> to vector<32x128xbf16>
      %31 = vector.shape_cast %28 : vector<32x128xbf16> to vector<1x32x128xbf16>
      tpu.vector_store %arg8[%c0_21, %c0_22, %c0_23], %31 {strides = array<i32>} : memref<1x32x128xbf16, #tpu.memory_space<vmem>>, vector<1x32x128xbf16>,
    } else {
    }
    return
  }
  func.func @transform_0(%arg0: i32, %arg1: i32, %arg2: i32, %arg3: i32) -> (i32, i32, i32) {
    %c0_i32 = arith.constant 0 : i32
    return %arg0, %arg1, %arg3 : i32, i32, i32
  }
  func.func @transform_1(%arg0: i32, %arg1: i32, %arg2: i32, %arg3: i32) -> (i32, i32, i32) {
    %c0_i32 = arith.constant 0 : i32
    return %arg0, %arg3, %arg2 : i32, i32, i32
  }
  func.func @transform_2(%arg0: i32, %arg1: i32, %arg2: i32, %arg3: i32) -> (i32, i32, i32) {
    %c0_i32 = arith.constant 0 : i32
    %c0_i32_0 = arith.constant 0 : i32
    return %arg0, %c0_i32, %arg2 : i32, i32, i32
  }
  func.func @transform_3(%arg0: i32, %arg1: i32, %arg2: i32, %arg3: i32) -> (i32, i32, i32) {
    %c0_i32 = arith.constant 0 : i32
    %c0_i32_0 = arith.constant 0 : i32
    return %arg0, %c0_i32, %arg2 : i32, i32, i32
  }
  func.func @transform_4(%arg0: i32, %arg1: i32, %arg2: i32, %arg3: i32) -> (i32, i32, i32) {
    %c0_i32 = arith.constant 0 : i32
    return %arg0, %arg1, %arg2 : i32, i32, i32
  }
}

module attributes {stable_mosaic.version = 11 : i64} {
  func.func @_fused_matmul_kernel(%arg0: i32, %arg1: i32, %arg2: i32, %arg3: i32, %arg4: memref<1x8x512xbf16, #tpu.memory_space<vmem>>, %arg5: memref<1x512x256xbf16, #tpu.memory_space<vmem>>, %arg6: memref<1x1x256xf32, #tpu.memory_space<vmem>>, %arg7: memref<1x1x256xf32, #tpu.memory_space<vmem>>, %arg8: memref<1x8x256xbf16, #tpu.memory_space<vmem>>, %arg9: memref<8x256xf32, #tpu.memory_space<vmem>>) attributes {dimension_semantics = [#tpu.dimension_semantics<parallel>, #tpu.dimension_semantics<parallel>, #tpu.dimension_semantics<parallel>, #tpu.dimension_semantics<arbitrary>], iteration_bounds = array<i64: 1, 1, 1, 4>, scalar_prefetch = 0 : i64, scratch_operands = 1 : i64, tpu.core_type = #tpu.core_type<tc>, window_params = [{transform_indices = @transform_0, window_bounds = array<i64: 1, 8, 512>}, {transform_indices = @transform_1, window_bounds = array<i64: 1, 512, 256>}, {transform_indices = @transform_2, window_bounds = array<i64: 1, 1, 256>}, {transform_indices = @transform_3, window_bounds = array<i64: 1, 1, 256>}, {transform_indices = @transform_4, window_bounds = array<i64: 1, 8, 256>}]} {
    %c0_i32 = arith.constant 0 : i32
    %0 = arith.cmpi eq, %arg3, %c0_i32 : i32
    %1 = arith.extui %0 : i1 to i32
    %c0_i32_0 = arith.constant 0 : i32
    %2 = arith.cmpi ne, %1, %c0_i32_0 : i32
    scf.if %2 {
      %cst_11 = arith.constant 0.000000e+00 : f32
      %14 = vector.broadcast %cst_11 : f32 to vector<8x256xf32>
      %c0_12 = arith.constant 0 : index
      %c0_13 = arith.constant 0 : index
      %15 = vector.load %arg9[%c0_12, %c0_13] : memref<8x256xf32, #tpu.memory_space<vmem>>, vector<8x256xf32>
      tpu.vector_store %arg9[%c0_12, %c0_13], %14 {strides = array<i32>} : memref<8x256xf32, #tpu.memory_space<vmem>>, vector<8x256xf32>,
    } else {
    }
    %c0 = arith.constant 0 : index
    %c0_1 = arith.constant 0 : index
    %3 = vector.load %arg9[%c0, %c0_1] : memref<8x256xf32, #tpu.memory_space<vmem>>, vector<8x256xf32>
    %c0_2 = arith.constant 0 : index
    %c0_3 = arith.constant 0 : index
    %c0_4 = arith.constant 0 : index
    %4 = vector.load %arg4[%c0_2, %c0_3, %c0_4] : memref<1x8x512xbf16, #tpu.memory_space<vmem>>, vector<1x8x512xbf16>
    %5 = vector.shape_cast %4 : vector<1x8x512xbf16> to vector<8x512xbf16>
    %c0_5 = arith.constant 0 : index
    %c0_6 = arith.constant 0 : index
    %c0_7 = arith.constant 0 : index
    %6 = vector.load %arg5[%c0_5, %c0_6, %c0_7] : memref<1x512x256xbf16, #tpu.memory_space<vmem>>, vector<1x512x256xbf16>
    %7 = vector.shape_cast %6 : vector<1x512x256xbf16> to vector<512x256xbf16>
    %cst = arith.constant dense<0.000000e+00> : vector<8x256xf32>
    %8 = tpu.matmul %5, %7, %cst {dimension_numbers = #tpu.dot_dimension_numbers<[1], [0], [0], [1], [0, 0, 1, 1], [], []>} : vector<8x512xbf16>, vector<512x256xbf16>, vector<8x256xf32> -> vector<8x256xf32>
    %9 = arith.addf %3, %8 : vector<8x256xf32>
    %c0_8 = arith.constant 0 : index
    %c0_9 = arith.constant 0 : index
    %10 = vector.load %arg9[%c0_8, %c0_9] : memref<8x256xf32, #tpu.memory_space<vmem>>, vector<8x256xf32>
    tpu.vector_store %arg9[%c0_8, %c0_9], %9 {strides = array<i32>} : memref<8x256xf32, #tpu.memory_space<vmem>>, vector<8x256xf32>,
    %c3_i32 = arith.constant 3 : i32
    %11 = arith.cmpi eq, %arg3, %c3_i32 : i32
    %12 = arith.extui %11 : i1 to i32
    %c0_i32_10 = arith.constant 0 : i32
    %13 = arith.cmpi ne, %12, %c0_i32_10 : i32
    scf.if %13 {
      %c0_11 = arith.constant 0 : index
      %c0_12 = arith.constant 0 : index
      %14 = vector.load %arg9[%c0_11, %c0_12] : memref<8x256xf32, #tpu.memory_space<vmem>>, vector<8x256xf32>
      %c0_13 = arith.constant 0 : index
      %c0_14 = arith.constant 0 : index
      %c0_15 = arith.constant 0 : index
      %15 = vector.load %arg6[%c0_13, %c0_14, %c0_15] : memref<1x1x256xf32, #tpu.memory_space<vmem>>, vector<1x1x256xf32>
      %16 = vector.shape_cast %15 : vector<1x1x256xf32> to vector<1x256xf32>
      %17 = vector.broadcast %16 : vector<1x256xf32> to vector<8x256xf32>
      %18 = arith.mulf %14, %17 : vector<8x256xf32>
      %c0_16 = arith.constant 0 : index
      %c0_17 = arith.constant 0 : index
      %c0_18 = arith.constant 0 : index
      %19 = vector.load %arg7[%c0_16, %c0_17, %c0_18] : memref<1x1x256xf32, #tpu.memory_space<vmem>>, vector<1x1x256xf32>
      %20 = vector.shape_cast %19 : vector<1x1x256xf32> to vector<1x256xf32>
      %21 = vector.broadcast %20 : vector<1x256xf32> to vector<8x256xf32>
      %22 = arith.addf %18, %21 : vector<8x256xf32>
      %cst_19 = arith.constant 0.000000e+00 : f32
      %23 = vector.broadcast %cst_19 : f32 to vector<8x256xf32>
      %24 = arith.cmpf ogt, %22, %23 : vector<8x256xf32>
      %cst_20 = arith.constant 2.000000e-01 : f32
      %25 = vector.broadcast %cst_20 : f32 to vector<8x256xf32>
      %26 = arith.mulf %25, %22 : vector<8x256xf32>
      %27 = arith.select %24, %22, %26 : vector<8x256xi1>, vector<8x256xf32>
      %28 = arith.truncf %27 : vector<8x256xf32> to vector<8x256xbf16>
      %c0_21 = arith.constant 0 : index
      %c0_22 = arith.constant 0 : index
      %c0_23 = arith.constant 0 : index
      %29 = vector.load %arg8[%c0_21, %c0_22, %c0_23] : memref<1x8x256xbf16, #tpu.memory_space<vmem>>, vector<1x8x256xbf16>
      %30 = vector.shape_cast %29 : vector<1x8x256xbf16> to vector<8x256xbf16>
      %31 = vector.shape_cast %28 : vector<8x256xbf16> to vector<1x8x256xbf16>
      tpu.vector_store %arg8[%c0_21, %c0_22, %c0_23], %31 {strides = array<i32>} : memref<1x8x256xbf16, #tpu.memory_space<vmem>>, vector<1x8x256xbf16>,
    } else {
    }
    return
  }
  func.func @transform_0(%arg0: i32, %arg1: i32, %arg2: i32, %arg3: i32) -> (i32, i32, i32) {
    %c0_i32 = arith.constant 0 : i32
    return %arg0, %arg1, %arg3 : i32, i32, i32
  }
  func.func @transform_1(%arg0: i32, %arg1: i32, %arg2: i32, %arg3: i32) -> (i32, i32, i32) {
    %c0_i32 = arith.constant 0 : i32
    return %arg0, %arg3, %arg2 : i32, i32, i32
  }
  func.func @transform_2(%arg0: i32, %arg1: i32, %arg2: i32, %arg3: i32) -> (i32, i32, i32) {
    %c0_i32 = arith.constant 0 : i32
    %c0_i32_0 = arith.constant 0 : i32
    return %arg0, %c0_i32, %arg2 : i32, i32, i32
  }
  func.func @transform_3(%arg0: i32, %arg1: i32, %arg2: i32, %arg3: i32) -> (i32, i32, i32) {
    %c0_i32 = arith.constant 0 : i32
    %c0_i32_0 = arith.constant 0 : i32
    return %arg0, %c0_i32, %arg2 : i32, i32, i32
  }
  func.func @transform_4(%arg0: i32, %arg1: i32, %arg2: i32, %arg3: i32) -> (i32, i32, i32) {
    %c0_i32 = arith.constant 0 : i32
    return %arg0, %arg1, %arg2 : i32, i32, i32
  }
}

module attributes {stable_mosaic.version = 11 : i64} {
  func.func @_fused_matmul_kernel(%arg0: i32, %arg1: i32, %arg2: i32, %arg3: i32, %arg4: memref<1x8x512xbf16, #tpu.memory_space<vmem>>, %arg5: memref<1x512x256xbf16, #tpu.memory_space<vmem>>, %arg6: memref<1x1x256xf32, #tpu.memory_space<vmem>>, %arg7: memref<1x1x256xf32, #tpu.memory_space<vmem>>, %arg8: memref<1x8x256xbf16, #tpu.memory_space<vmem>>, %arg9: memref<8x256xf32, #tpu.memory_space<vmem>>) attributes {dimension_semantics = [#tpu.dimension_semantics<parallel>, #tpu.dimension_semantics<parallel>, #tpu.dimension_semantics<parallel>, #tpu.dimension_semantics<arbitrary>], iteration_bounds = array<i64: 1, 1, 2, 8>, scalar_prefetch = 0 : i64, scratch_operands = 1 : i64, tpu.core_type = #tpu.core_type<tc>, window_params = [{transform_indices = @transform_0, window_bounds = array<i64: 1, 8, 512>}, {transform_indices = @transform_1, window_bounds = array<i64: 1, 512, 256>}, {transform_indices = @transform_2, window_bounds = array<i64: 1, 1, 256>}, {transform_indices = @transform_3, window_bounds = array<i64: 1, 1, 256>}, {transform_indices = @transform_4, window_bounds = array<i64: 1, 8, 256>}]} {
    %c0_i32 = arith.constant 0 : i32
    %0 = arith.cmpi eq, %arg3, %c0_i32 : i32
    %1 = arith.extui %0 : i1 to i32
    %c0_i32_0 = arith.constant 0 : i32
    %2 = arith.cmpi ne, %1, %c0_i32_0 : i32
    scf.if %2 {
      %cst_11 = arith.constant 0.000000e+00 : f32
      %14 = vector.broadcast %cst_11 : f32 to vector<8x256xf32>
      %c0_12 = arith.constant 0 : index
      %c0_13 = arith.constant 0 : index
      %15 = vector.load %arg9[%c0_12, %c0_13] : memref<8x256xf32, #tpu.memory_space<vmem>>, vector<8x256xf32>
      tpu.vector_store %arg9[%c0_12, %c0_13], %14 {strides = array<i32>} : memref<8x256xf32, #tpu.memory_space<vmem>>, vector<8x256xf32>,
    } else {
    }
    %c0 = arith.constant 0 : index
    %c0_1 = arith.constant 0 : index
    %3 = vector.load %arg9[%c0, %c0_1] : memref<8x256xf32, #tpu.memory_space<vmem>>, vector<8x256xf32>
    %c0_2 = arith.constant 0 : index
    %c0_3 = arith.constant 0 : index
    %c0_4 = arith.constant 0 : index
    %4 = vector.load %arg4[%c0_2, %c0_3, %c0_4] : memref<1x8x512xbf16, #tpu.memory_space<vmem>>, vector<1x8x512xbf16>
    %5 = vector.shape_cast %4 : vector<1x8x512xbf16> to vector<8x512xbf16>
    %c0_5 = arith.constant 0 : index
    %c0_6 = arith.constant 0 : index
    %c0_7 = arith.constant 0 : index
    %6 = vector.load %arg5[%c0_5, %c0_6, %c0_7] : memref<1x512x256xbf16, #tpu.memory_space<vmem>>, vector<1x512x256xbf16>
    %7 = vector.shape_cast %6 : vector<1x512x256xbf16> to vector<512x256xbf16>
    %cst = arith.constant dense<0.000000e+00> : vector<8x256xf32>
    %8 = tpu.matmul %5, %7, %cst {dimension_numbers = #tpu.dot_dimension_numbers<[1], [0], [0], [1], [0, 0, 1, 1], [], []>} : vector<8x512xbf16>, vector<512x256xbf16>, vector<8x256xf32> -> vector<8x256xf32>
    %9 = arith.addf %3, %8 : vector<8x256xf32>
    %c0_8 = arith.constant 0 : index
    %c0_9 = arith.constant 0 : index
    %10 = vector.load %arg9[%c0_8, %c0_9] : memref<8x256xf32, #tpu.memory_space<vmem>>, vector<8x256xf32>
    tpu.vector_store %arg9[%c0_8, %c0_9], %9 {strides = array<i32>} : memref<8x256xf32, #tpu.memory_space<vmem>>, vector<8x256xf32>,
    %c7_i32 = arith.constant 7 : i32
    %11 = arith.cmpi eq, %arg3, %c7_i32 : i32
    %12 = arith.extui %11 : i1 to i32
    %c0_i32_10 = arith.constant 0 : i32
    %13 = arith.cmpi ne, %12, %c0_i32_10 : i32
    scf.if %13 {
      %c0_11 = arith.constant 0 : index
      %c0_12 = arith.constant 0 : index
      %14 = vector.load %arg9[%c0_11, %c0_12] : memref<8x256xf32, #tpu.memory_space<vmem>>, vector<8x256xf32>
      %c0_13 = arith.constant 0 : index
      %c0_14 = arith.constant 0 : index
      %c0_15 = arith.constant 0 : index
      %15 = vector.load %arg6[%c0_13, %c0_14, %c0_15] : memref<1x1x256xf32, #tpu.memory_space<vmem>>, vector<1x1x256xf32>
      %16 = vector.shape_cast %15 : vector<1x1x256xf32> to vector<1x256xf32>
      %17 = vector.broadcast %16 : vector<1x256xf32> to vector<8x256xf32>
      %18 = arith.mulf %14, %17 : vector<8x256xf32>
      %c0_16 = arith.constant 0 : index
      %c0_17 = arith.constant 0 : index
      %c0_18 = arith.constant 0 : index
      %19 = vector.load %arg7[%c0_16, %c0_17, %c0_18] : memref<1x1x256xf32, #tpu.memory_space<vmem>>, vector<1x1x256xf32>
      %20 = vector.shape_cast %19 : vector<1x1x256xf32> to vector<1x256xf32>
      %21 = vector.broadcast %20 : vector<1x256xf32> to vector<8x256xf32>
      %22 = arith.addf %18, %21 : vector<8x256xf32>
      %cst_19 = arith.constant 0.000000e+00 : f32
      %23 = vector.broadcast %cst_19 : f32 to vector<8x256xf32>
      %24 = arith.cmpf ogt, %22, %23 : vector<8x256xf32>
      %cst_20 = arith.constant 2.000000e-01 : f32
      %25 = vector.broadcast %cst_20 : f32 to vector<8x256xf32>
      %26 = arith.mulf %25, %22 : vector<8x256xf32>
      %27 = arith.select %24, %22, %26 : vector<8x256xi1>, vector<8x256xf32>
      %28 = arith.truncf %27 : vector<8x256xf32> to vector<8x256xbf16>
      %c0_21 = arith.constant 0 : index
      %c0_22 = arith.constant 0 : index
      %c0_23 = arith.constant 0 : index
      %29 = vector.load %arg8[%c0_21, %c0_22, %c0_23] : memref<1x8x256xbf16, #tpu.memory_space<vmem>>, vector<1x8x256xbf16>
      %30 = vector.shape_cast %29 : vector<1x8x256xbf16> to vector<8x256xbf16>
      %31 = vector.shape_cast %28 : vector<8x256xbf16> to vector<1x8x256xbf16>
      tpu.vector_store %arg8[%c0_21, %c0_22, %c0_23], %31 {strides = array<i32>} : memref<1x8x256xbf16, #tpu.memory_space<vmem>>, vector<1x8x256xbf16>,
    } else {
    }
    return
  }
  func.func @transform_0(%arg0: i32, %arg1: i32, %arg2: i32, %arg3: i32) -> (i32, i32, i32) {
    %c0_i32 = arith.constant 0 : i32
    return %arg0, %arg1, %arg3 : i32, i32, i32
  }
  func.func @transform_1(%arg0: i32, %arg1: i32, %arg2: i32, %arg3: i32) -> (i32, i32, i32) {
    %c0_i32 = arith.constant 0 : i32
    return %arg0, %arg3, %arg2 : i32, i32, i32
  }
  func.func @transform_2(%arg0: i32, %arg1: i32, %arg2: i32, %arg3: i32) -> (i32, i32, i32) {
    %c0_i32 = arith.constant 0 : i32
    %c0_i32_0 = arith.constant 0 : i32
    return %arg0, %c0_i32, %arg2 : i32, i32, i32
  }
  func.func @transform_3(%arg0: i32, %arg1: i32, %arg2: i32, %arg3: i32) -> (i32, i32, i32) {
    %c0_i32 = arith.constant 0 : i32
    %c0_i32_0 = arith.constant 0 : i32
    return %arg0, %c0_i32, %arg2 : i32, i32, i32
  }
  func.func @transform_4(%arg0: i32, %arg1: i32, %arg2: i32, %arg3: i32) -> (i32, i32, i32) {
    %c0_i32 = arith.constant 0 : i32
    return %arg0, %arg1, %arg2 : i32, i32, i32
  }
}

module attributes {stable_mosaic.version = 11 : i64} {
  func.func @_fused_matmul_kernel(%arg0: i32, %arg1: i32, %arg2: i32, %arg3: i32, %arg4: memref<1x8x512xbf16, #tpu.memory_space<vmem>>, %arg5: memref<1x512x256xbf16, #tpu.memory_space<vmem>>, %arg6: memref<1x1x256xf32, #tpu.memory_space<vmem>>, %arg7: memref<1x1x256xf32, #tpu.memory_space<vmem>>, %arg8: memref<1x8x256xbf16, #tpu.memory_space<vmem>>, %arg9: memref<8x256xf32, #tpu.memory_space<vmem>>) attributes {dimension_semantics = [#tpu.dimension_semantics<parallel>, #tpu.dimension_semantics<parallel>, #tpu.dimension_semantics<parallel>, #tpu.dimension_semantics<arbitrary>], iteration_bounds = array<i64: 4, 1, 1, 4>, scalar_prefetch = 0 : i64, scratch_operands = 1 : i64, tpu.core_type = #tpu.core_type<tc>, window_params = [{transform_indices = @transform_0, window_bounds = array<i64: 1, 8, 512>}, {transform_indices = @transform_1, window_bounds = array<i64: 1, 512, 256>}, {transform_indices = @transform_2, window_bounds = array<i64: 1, 1, 256>}, {transform_indices = @transform_3, window_bounds = array<i64: 1, 1, 256>}, {transform_indices = @transform_4, window_bounds = array<i64: 1, 8, 256>}]} {
    %c0_i32 = arith.constant 0 : i32
    %0 = arith.cmpi eq, %arg3, %c0_i32 : i32
    %1 = arith.extui %0 : i1 to i32
    %c0_i32_0 = arith.constant 0 : i32
    %2 = arith.cmpi ne, %1, %c0_i32_0 : i32
    scf.if %2 {
      %cst_11 = arith.constant 0.000000e+00 : f32
      %14 = vector.broadcast %cst_11 : f32 to vector<8x256xf32>
      %c0_12 = arith.constant 0 : index
      %c0_13 = arith.constant 0 : index
      %15 = vector.load %arg9[%c0_12, %c0_13] : memref<8x256xf32, #tpu.memory_space<vmem>>, vector<8x256xf32>
      tpu.vector_store %arg9[%c0_12, %c0_13], %14 {strides = array<i32>} : memref<8x256xf32, #tpu.memory_space<vmem>>, vector<8x256xf32>,
    } else {
    }
    %c0 = arith.constant 0 : index
    %c0_1 = arith.constant 0 : index
    %3 = vector.load %arg9[%c0, %c0_1] : memref<8x256xf32, #tpu.memory_space<vmem>>, vector<8x256xf32>
    %c0_2 = arith.constant 0 : index
    %c0_3 = arith.constant 0 : index
    %c0_4 = arith.constant 0 : index
    %4 = vector.load %arg4[%c0_2, %c0_3, %c0_4] : memref<1x8x512xbf16, #tpu.memory_space<vmem>>, vector<1x8x512xbf16>
    %5 = vector.shape_cast %4 : vector<1x8x512xbf16> to vector<8x512xbf16>
    %c0_5 = arith.constant 0 : index
    %c0_6 = arith.constant 0 : index
    %c0_7 = arith.constant 0 : index
    %6 = vector.load %arg5[%c0_5, %c0_6, %c0_7] : memref<1x512x256xbf16, #tpu.memory_space<vmem>>, vector<1x512x256xbf16>
    %7 = vector.shape_cast %6 : vector<1x512x256xbf16> to vector<512x256xbf16>
    %cst = arith.constant dense<0.000000e+00> : vector<8x256xf32>
    %8 = tpu.matmul %5, %7, %cst {dimension_numbers = #tpu.dot_dimension_numbers<[1], [0], [0], [1], [0, 0, 1, 1], [], []>} : vector<8x512xbf16>, vector<512x256xbf16>, vector<8x256xf32> -> vector<8x256xf32>
    %9 = arith.addf %3, %8 : vector<8x256xf32>
    %c0_8 = arith.constant 0 : index
    %c0_9 = arith.constant 0 : index
    %10 = vector.load %arg9[%c0_8, %c0_9] : memref<8x256xf32, #tpu.memory_space<vmem>>, vector<8x256xf32>
    tpu.vector_store %arg9[%c0_8, %c0_9], %9 {strides = array<i32>} : memref<8x256xf32, #tpu.memory_space<vmem>>, vector<8x256xf32>,
    %c3_i32 = arith.constant 3 : i32
    %11 = arith.cmpi eq, %arg3, %c3_i32 : i32
    %12 = arith.extui %11 : i1 to i32
    %c0_i32_10 = arith.constant 0 : i32
    %13 = arith.cmpi ne, %12, %c0_i32_10 : i32
    scf.if %13 {
      %c0_11 = arith.constant 0 : index
      %c0_12 = arith.constant 0 : index
      %14 = vector.load %arg9[%c0_11, %c0_12] : memref<8x256xf32, #tpu.memory_space<vmem>>, vector<8x256xf32>
      %c0_13 = arith.constant 0 : index
      %c0_14 = arith.constant 0 : index
      %c0_15 = arith.constant 0 : index
      %15 = vector.load %arg6[%c0_13, %c0_14, %c0_15] : memref<1x1x256xf32, #tpu.memory_space<vmem>>, vector<1x1x256xf32>
      %16 = vector.shape_cast %15 : vector<1x1x256xf32> to vector<1x256xf32>
      %17 = vector.broadcast %16 : vector<1x256xf32> to vector<8x256xf32>
      %18 = arith.mulf %14, %17 : vector<8x256xf32>
      %c0_16 = arith.constant 0 : index
      %c0_17 = arith.constant 0 : index
      %c0_18 = arith.constant 0 : index
      %19 = vector.load %arg7[%c0_16, %c0_17, %c0_18] : memref<1x1x256xf32, #tpu.memory_space<vmem>>, vector<1x1x256xf32>
      %20 = vector.shape_cast %19 : vector<1x1x256xf32> to vector<1x256xf32>
      %21 = vector.broadcast %20 : vector<1x256xf32> to vector<8x256xf32>
      %22 = arith.addf %18, %21 : vector<8x256xf32>
      %cst_19 = arith.constant 0.000000e+00 : f32
      %23 = vector.broadcast %cst_19 : f32 to vector<8x256xf32>
      %24 = arith.maximumf %22, %23 : vector<8x256xf32>
      %25 = arith.truncf %24 : vector<8x256xf32> to vector<8x256xbf16>
      %c0_20 = arith.constant 0 : index
      %c0_21 = arith.constant 0 : index
      %c0_22 = arith.constant 0 : index
      %26 = vector.load %arg8[%c0_20, %c0_21, %c0_22] : memref<1x8x256xbf16, #tpu.memory_space<vmem>>, vector<1x8x256xbf16>
      %27 = vector.shape_cast %26 : vector<1x8x256xbf16> to vector<8x256xbf16>
      %28 = vector.shape_cast %25 : vector<8x256xbf16> to vector<1x8x256xbf16>
      tpu.vector_store %arg8[%c0_20, %c0_21, %c0_22], %28 {strides = array<i32>} : memref<1x8x256xbf16, #tpu.memory_space<vmem>>, vector<1x8x256xbf16>,
    } else {
    }
    return
  }
  func.func @transform_0(%arg0: i32, %arg1: i32, %arg2: i32, %arg3: i32) -> (i32, i32, i32) {
    %c0_i32 = arith.constant 0 : i32
    return %arg0, %arg1, %arg3 : i32, i32, i32
  }
  func.func @transform_1(%arg0: i32, %arg1: i32, %arg2: i32, %arg3: i32) -> (i32, i32, i32) {
    %c0_i32 = arith.constant 0 : i32
    return %arg0, %arg3, %arg2 : i32, i32, i32
  }
  func.func @transform_2(%arg0: i32, %arg1: i32, %arg2: i32, %arg3: i32) -> (i32, i32, i32) {
    %c0_i32 = arith.constant 0 : i32
    %c0_i32_0 = arith.constant 0 : i32
    return %arg0, %c0_i32, %arg2 : i32, i32, i32
  }
  func.func @transform_3(%arg0: i32, %arg1: i32, %arg2: i32, %arg3: i32) -> (i32, i32, i32) {
    %c0_i32 = arith.constant 0 : i32
    %c0_i32_0 = arith.constant 0 : i32
    return %arg0, %c0_i32, %arg2 : i32, i32, i32
  }
  func.func @transform_4(%arg0: i32, %arg1: i32, %arg2: i32, %arg3: i32) -> (i32, i32, i32) {
    %c0_i32 = arith.constant 0 : i32
    return %arg0, %arg1, %arg2 : i32, i32, i32
  }
}

module attributes {stable_mosaic.version = 11 : i64} {
  func.func @_fused_matmul_kernel(%arg0: i32, %arg1: i32, %arg2: i32, %arg3: i32, %arg4: memref<1x8x512xbf16, #tpu.memory_space<vmem>>, %arg5: memref<1x512x128xbf16, #tpu.memory_space<vmem>>, %arg6: memref<1x1x128xf32, #tpu.memory_space<vmem>>, %arg7: memref<1x1x128xf32, #tpu.memory_space<vmem>>, %arg8: memref<1x8x128xbf16, #tpu.memory_space<vmem>>, %arg9: memref<8x128xf32, #tpu.memory_space<vmem>>) attributes {dimension_semantics = [#tpu.dimension_semantics<parallel>, #tpu.dimension_semantics<parallel>, #tpu.dimension_semantics<parallel>, #tpu.dimension_semantics<arbitrary>], iteration_bounds = array<i64: 4, 1, 1, 2>, scalar_prefetch = 0 : i64, scratch_operands = 1 : i64, tpu.core_type = #tpu.core_type<tc>, window_params = [{transform_indices = @transform_0, window_bounds = array<i64: 1, 8, 512>}, {transform_indices = @transform_1, window_bounds = array<i64: 1, 512, 128>}, {transform_indices = @transform_2, window_bounds = array<i64: 1, 1, 128>}, {transform_indices = @transform_3, window_bounds = array<i64: 1, 1, 128>}, {transform_indices = @transform_4, window_bounds = array<i64: 1, 8, 128>}]} {
    %c0_i32 = arith.constant 0 : i32
    %0 = arith.cmpi eq, %arg3, %c0_i32 : i32
    %1 = arith.extui %0 : i1 to i32
    %c0_i32_0 = arith.constant 0 : i32
    %2 = arith.cmpi ne, %1, %c0_i32_0 : i32
    scf.if %2 {
      %cst_11 = arith.constant 0.000000e+00 : f32
      %14 = vector.broadcast %cst_11 : f32 to vector<8x128xf32>
      %c0_12 = arith.constant 0 : index
      %c0_13 = arith.constant 0 : index
      %15 = vector.load %arg9[%c0_12, %c0_13] : memref<8x128xf32, #tpu.memory_space<vmem>>, vector<8x128xf32>
      tpu.vector_store %arg9[%c0_12, %c0_13], %14 {strides = array<i32>} : memref<8x128xf32, #tpu.memory_space<vmem>>, vector<8x128xf32>,
    } else {
    }
    %c0 = arith.constant 0 : index
    %c0_1 = arith.constant 0 : index
    %3 = vector.load %arg9[%c0, %c0_1] : memref<8x128xf32, #tpu.memory_space<vmem>>, vector<8x128xf32>
    %c0_2 = arith.constant 0 : index
    %c0_3 = arith.constant 0 : index
    %c0_4 = arith.constant 0 : index
    %4 = vector.load %arg4[%c0_2, %c0_3, %c0_4] : memref<1x8x512xbf16, #tpu.memory_space<vmem>>, vector<1x8x512xbf16>
    %5 = vector.shape_cast %4 : vector<1x8x512xbf16> to vector<8x512xbf16>
    %c0_5 = arith.constant 0 : index
    %c0_6 = arith.constant 0 : index
    %c0_7 = arith.constant 0 : index
    %6 = vector.load %arg5[%c0_5, %c0_6, %c0_7] : memref<1x512x128xbf16, #tpu.memory_space<vmem>>, vector<1x512x128xbf16>
    %7 = vector.shape_cast %6 : vector<1x512x128xbf16> to vector<512x128xbf16>
    %cst = arith.constant dense<0.000000e+00> : vector<8x128xf32>
    %8 = tpu.matmul %5, %7, %cst {dimension_numbers = #tpu.dot_dimension_numbers<[1], [0], [0], [1], [0, 0, 1, 1], [], []>} : vector<8x512xbf16>, vector<512x128xbf16>, vector<8x128xf32> -> vector<8x128xf32>
    %9 = arith.addf %3, %8 : vector<8x128xf32>
    %c0_8 = arith.constant 0 : index
    %c0_9 = arith.constant 0 : index
    %10 = vector.load %arg9[%c0_8, %c0_9] : memref<8x128xf32, #tpu.memory_space<vmem>>, vector<8x128xf32>
    tpu.vector_store %arg9[%c0_8, %c0_9], %9 {strides = array<i32>} : memref<8x128xf32, #tpu.memory_space<vmem>>, vector<8x128xf32>,
    %c1_i32 = arith.constant 1 : i32
    %11 = arith.cmpi eq, %arg3, %c1_i32 : i32
    %12 = arith.extui %11 : i1 to i32
    %c0_i32_10 = arith.constant 0 : i32
    %13 = arith.cmpi ne, %12, %c0_i32_10 : i32
    scf.if %13 {
      %c0_11 = arith.constant 0 : index
      %c0_12 = arith.constant 0 : index
      %14 = vector.load %arg9[%c0_11, %c0_12] : memref<8x128xf32, #tpu.memory_space<vmem>>, vector<8x128xf32>
      %c0_13 = arith.constant 0 : index
      %c0_14 = arith.constant 0 : index
      %c0_15 = arith.constant 0 : index
      %15 = vector.load %arg6[%c0_13, %c0_14, %c0_15] : memref<1x1x128xf32, #tpu.memory_space<vmem>>, vector<1x1x128xf32>
      %16 = vector.shape_cast %15 : vector<1x1x128xf32> to vector<1x128xf32>
      %17 = vector.broadcast %16 : vector<1x128xf32> to vector<8x128xf32>
      %18 = arith.mulf %14, %17 : vector<8x128xf32>
      %c0_16 = arith.constant 0 : index
      %c0_17 = arith.constant 0 : index
      %c0_18 = arith.constant 0 : index
      %19 = vector.load %arg7[%c0_16, %c0_17, %c0_18] : memref<1x1x128xf32, #tpu.memory_space<vmem>>, vector<1x1x128xf32>
      %20 = vector.shape_cast %19 : vector<1x1x128xf32> to vector<1x128xf32>
      %21 = vector.broadcast %20 : vector<1x128xf32> to vector<8x128xf32>
      %22 = arith.addf %18, %21 : vector<8x128xf32>
      %cst_19 = arith.constant 0.000000e+00 : f32
      %23 = vector.broadcast %cst_19 : f32 to vector<8x128xf32>
      %24 = arith.maximumf %22, %23 : vector<8x128xf32>
      %25 = arith.truncf %24 : vector<8x128xf32> to vector<8x128xbf16>
      %c0_20 = arith.constant 0 : index
      %c0_21 = arith.constant 0 : index
      %c0_22 = arith.constant 0 : index
      %26 = vector.load %arg8[%c0_20, %c0_21, %c0_22] : memref<1x8x128xbf16, #tpu.memory_space<vmem>>, vector<1x8x128xbf16>
      %27 = vector.shape_cast %26 : vector<1x8x128xbf16> to vector<8x128xbf16>
      %28 = vector.shape_cast %25 : vector<8x128xbf16> to vector<1x8x128xbf16>
      tpu.vector_store %arg8[%c0_20, %c0_21, %c0_22], %28 {strides = array<i32>} : memref<1x8x128xbf16, #tpu.memory_space<vmem>>, vector<1x8x128xbf16>,
    } else {
    }
    return
  }
  func.func @transform_0(%arg0: i32, %arg1: i32, %arg2: i32, %arg3: i32) -> (i32, i32, i32) {
    %c0_i32 = arith.constant 0 : i32
    return %arg0, %arg1, %arg3 : i32, i32, i32
  }
  func.func @transform_1(%arg0: i32, %arg1: i32, %arg2: i32, %arg3: i32) -> (i32, i32, i32) {
    %c0_i32 = arith.constant 0 : i32
    return %arg0, %arg3, %arg2 : i32, i32, i32
  }
  func.func @transform_2(%arg0: i32, %arg1: i32, %arg2: i32, %arg3: i32) -> (i32, i32, i32) {
    %c0_i32 = arith.constant 0 : i32
    %c0_i32_0 = arith.constant 0 : i32
    return %arg0, %c0_i32, %arg2 : i32, i32, i32
  }
  func.func @transform_3(%arg0: i32, %arg1: i32, %arg2: i32, %arg3: i32) -> (i32, i32, i32) {
    %c0_i32 = arith.constant 0 : i32
    %c0_i32_0 = arith.constant 0 : i32
    return %arg0, %c0_i32, %arg2 : i32, i32, i32
  }
  func.func @transform_4(%arg0: i32, %arg1: i32, %arg2: i32, %arg3: i32) -> (i32, i32, i32) {
    %c0_i32 = arith.constant 0 : i32
    return %arg0, %arg1, %arg2 : i32, i32, i32
  }
}

module attributes {stable_mosaic.version = 11 : i64} {
  func.func @_fused_matmul_kernel(%arg0: i32, %arg1: i32, %arg2: i32, %arg3: i32, %arg4: memref<1x32x512xbf16, #tpu.memory_space<vmem>>, %arg5: memref<1x512x128xbf16, #tpu.memory_space<vmem>>, %arg6: memref<1x1x128xf32, #tpu.memory_space<vmem>>, %arg7: memref<1x1x128xf32, #tpu.memory_space<vmem>>, %arg8: memref<1x32x128xbf16, #tpu.memory_space<vmem>>, %arg9: memref<32x128xf32, #tpu.memory_space<vmem>>) attributes {dimension_semantics = [#tpu.dimension_semantics<parallel>, #tpu.dimension_semantics<parallel>, #tpu.dimension_semantics<parallel>, #tpu.dimension_semantics<arbitrary>], iteration_bounds = array<i64: 4, 1, 1, 1>, scalar_prefetch = 0 : i64, scratch_operands = 1 : i64, tpu.core_type = #tpu.core_type<tc>, window_params = [{transform_indices = @transform_0, window_bounds = array<i64: 1, 32, 512>}, {transform_indices = @transform_1, window_bounds = array<i64: 1, 512, 128>}, {transform_indices = @transform_2, window_bounds = array<i64: 1, 1, 128>}, {transform_indices = @transform_3, window_bounds = array<i64: 1, 1, 128>}, {transform_indices = @transform_4, window_bounds = array<i64: 1, 32, 128>}]} {
    %c0_i32 = arith.constant 0 : i32
    %0 = arith.cmpi eq, %arg3, %c0_i32 : i32
    %1 = arith.extui %0 : i1 to i32
    %c0_i32_0 = arith.constant 0 : i32
    %2 = arith.cmpi ne, %1, %c0_i32_0 : i32
    scf.if %2 {
      %cst_12 = arith.constant 0.000000e+00 : f32
      %14 = vector.broadcast %cst_12 : f32 to vector<32x128xf32>
      %c0_13 = arith.constant 0 : index
      %c0_14 = arith.constant 0 : index
      %15 = vector.load %arg9[%c0_13, %c0_14] : memref<32x128xf32, #tpu.memory_space<vmem>>, vector<32x128xf32>
      tpu.vector_store %arg9[%c0_13, %c0_14], %14 {strides = array<i32>} : memref<32x128xf32, #tpu.memory_space<vmem>>, vector<32x128xf32>,
    } else {
    }
    %c0 = arith.constant 0 : index
    %c0_1 = arith.constant 0 : index
    %3 = vector.load %arg9[%c0, %c0_1] : memref<32x128xf32, #tpu.memory_space<vmem>>, vector<32x128xf32>
    %c0_2 = arith.constant 0 : index
    %c0_3 = arith.constant 0 : index
    %c0_4 = arith.constant 0 : index
    %4 = vector.load %arg4[%c0_2, %c0_3, %c0_4] : memref<1x32x512xbf16, #tpu.memory_space<vmem>>, vector<1x32x512xbf16>
    %5 = vector.shape_cast %4 : vector<1x32x512xbf16> to vector<32x512xbf16>
    %c0_5 = arith.constant 0 : index
    %c0_6 = arith.constant 0 : index
    %c0_7 = arith.constant 0 : index
    %6 = vector.load %arg5[%c0_5, %c0_6, %c0_7] : memref<1x512x128xbf16, #tpu.memory_space<vmem>>, vector<1x512x128xbf16>
    %7 = vector.shape_cast %6 : vector<1x512x128xbf16> to vector<512x128xbf16>
    %cst = arith.constant dense<0.000000e+00> : vector<32x128xf32>
    %8 = tpu.matmul %5, %7, %cst {dimension_numbers = #tpu.dot_dimension_numbers<[1], [0], [0], [1], [0, 0, 1, 1], [], []>} : vector<32x512xbf16>, vector<512x128xbf16>, vector<32x128xf32> -> vector<32x128xf32>
    %9 = arith.addf %3, %8 : vector<32x128xf32>
    %c0_8 = arith.constant 0 : index
    %c0_9 = arith.constant 0 : index
    %10 = vector.load %arg9[%c0_8, %c0_9] : memref<32x128xf32, #tpu.memory_space<vmem>>, vector<32x128xf32>
    tpu.vector_store %arg9[%c0_8, %c0_9], %9 {strides = array<i32>} : memref<32x128xf32, #tpu.memory_space<vmem>>, vector<32x128xf32>,
    %c0_i32_10 = arith.constant 0 : i32
    %11 = arith.cmpi eq, %arg3, %c0_i32_10 : i32
    %12 = arith.extui %11 : i1 to i32
    %c0_i32_11 = arith.constant 0 : i32
    %13 = arith.cmpi ne, %12, %c0_i32_11 : i32
    scf.if %13 {
      %c0_12 = arith.constant 0 : index
      %c0_13 = arith.constant 0 : index
      %14 = vector.load %arg9[%c0_12, %c0_13] : memref<32x128xf32, #tpu.memory_space<vmem>>, vector<32x128xf32>
      %c0_14 = arith.constant 0 : index
      %c0_15 = arith.constant 0 : index
      %c0_16 = arith.constant 0 : index
      %15 = vector.load %arg6[%c0_14, %c0_15, %c0_16] : memref<1x1x128xf32, #tpu.memory_space<vmem>>, vector<1x1x128xf32>
      %16 = vector.shape_cast %15 : vector<1x1x128xf32> to vector<1x128xf32>
      %17 = vector.broadcast %16 : vector<1x128xf32> to vector<32x128xf32>
      %18 = arith.mulf %14, %17 : vector<32x128xf32>
      %c0_17 = arith.constant 0 : index
      %c0_18 = arith.constant 0 : index
      %c0_19 = arith.constant 0 : index
      %19 = vector.load %arg7[%c0_17, %c0_18, %c0_19] : memref<1x1x128xf32, #tpu.memory_space<vmem>>, vector<1x1x128xf32>
      %20 = vector.shape_cast %19 : vector<1x1x128xf32> to vector<1x128xf32>
      %21 = vector.broadcast %20 : vector<1x128xf32> to vector<32x128xf32>
      %22 = arith.addf %18, %21 : vector<32x128xf32>
      %cst_20 = arith.constant 0.000000e+00 : f32
      %23 = vector.broadcast %cst_20 : f32 to vector<32x128xf32>
      %24 = arith.maximumf %22, %23 : vector<32x128xf32>
      %25 = arith.truncf %24 : vector<32x128xf32> to vector<32x128xbf16>
      %c0_21 = arith.constant 0 : index
      %c0_22 = arith.constant 0 : index
      %c0_23 = arith.constant 0 : index
      %26 = vector.load %arg8[%c0_21, %c0_22, %c0_23] : memref<1x32x128xbf16, #tpu.memory_space<vmem>>, vector<1x32x128xbf16>
      %27 = vector.shape_cast %26 : vector<1x32x128xbf16> to vector<32x128xbf16>
      %28 = vector.shape_cast %25 : vector<32x128xbf16> to vector<1x32x128xbf16>
      tpu.vector_store %arg8[%c0_21, %c0_22, %c0_23], %28 {strides = array<i32>} : memref<1x32x128xbf16, #tpu.memory_space<vmem>>, vector<1x32x128xbf16>,
    } else {
    }
    return
  }
  func.func @transform_0(%arg0: i32, %arg1: i32, %arg2: i32, %arg3: i32) -> (i32, i32, i32) {
    %c0_i32 = arith.constant 0 : i32
    return %arg0, %arg1, %arg3 : i32, i32, i32
  }
  func.func @transform_1(%arg0: i32, %arg1: i32, %arg2: i32, %arg3: i32) -> (i32, i32, i32) {
    %c0_i32 = arith.constant 0 : i32
    return %arg0, %arg3, %arg2 : i32, i32, i32
  }
  func.func @transform_2(%arg0: i32, %arg1: i32, %arg2: i32, %arg3: i32) -> (i32, i32, i32) {
    %c0_i32 = arith.constant 0 : i32
    %c0_i32_0 = arith.constant 0 : i32
    return %arg0, %c0_i32, %arg2 : i32, i32, i32
  }
  func.func @transform_3(%arg0: i32, %arg1: i32, %arg2: i32, %arg3: i32) -> (i32, i32, i32) {
    %c0_i32 = arith.constant 0 : i32
    %c0_i32_0 = arith.constant 0 : i32
    return %arg0, %c0_i32, %arg2 : i32, i32, i32
  }
  func.func @transform_4(%arg0: i32, %arg1: i32, %arg2: i32, %arg3: i32) -> (i32, i32, i32) {
    %c0_i32 = arith.constant 0 : i32
    return %arg0, %arg1, %arg2 : i32, i32, i32
  }
}

module attributes {stable_mosaic.version = 11 : i64} {
  func.func @_fused_matmul_kernel(%arg0: i32, %arg1: i32, %arg2: i32, %arg3: i32, %arg4: memref<1x128x256xbf16, #tpu.memory_space<vmem>>, %arg5: memref<1x256x128xbf16, #tpu.memory_space<vmem>>, %arg6: memref<1x1x128xf32, #tpu.memory_space<vmem>>, %arg7: memref<1x1x128xf32, #tpu.memory_space<vmem>>, %arg8: memref<1x128x128xf32, #tpu.memory_space<vmem>>, %arg9: memref<128x128xf32, #tpu.memory_space<vmem>>) attributes {dimension_semantics = [#tpu.dimension_semantics<parallel>, #tpu.dimension_semantics<parallel>, #tpu.dimension_semantics<parallel>, #tpu.dimension_semantics<arbitrary>], iteration_bounds = array<i64: 4, 1, 1, 1>, scalar_prefetch = 0 : i64, scratch_operands = 1 : i64, tpu.core_type = #tpu.core_type<tc>, window_params = [{transform_indices = @transform_0, window_bounds = array<i64: 1, 128, 256>}, {transform_indices = @transform_1, window_bounds = array<i64: 1, 256, 128>}, {transform_indices = @transform_2, window_bounds = array<i64: 1, 1, 128>}, {transform_indices = @transform_3, window_bounds = array<i64: 1, 1, 128>}, {transform_indices = @transform_4, window_bounds = array<i64: 1, 128, 128>}]} {
    %c0_i32 = arith.constant 0 : i32
    %0 = arith.cmpi eq, %arg3, %c0_i32 : i32
    %1 = arith.extui %0 : i1 to i32
    %c0_i32_0 = arith.constant 0 : i32
    %2 = arith.cmpi ne, %1, %c0_i32_0 : i32
    scf.if %2 {
      %cst_12 = arith.constant 0.000000e+00 : f32
      %14 = vector.broadcast %cst_12 : f32 to vector<128x128xf32>
      %c0_13 = arith.constant 0 : index
      %c0_14 = arith.constant 0 : index
      %15 = vector.load %arg9[%c0_13, %c0_14] : memref<128x128xf32, #tpu.memory_space<vmem>>, vector<128x128xf32>
      tpu.vector_store %arg9[%c0_13, %c0_14], %14 {strides = array<i32>} : memref<128x128xf32, #tpu.memory_space<vmem>>, vector<128x128xf32>,
    } else {
    }
    %c0 = arith.constant 0 : index
    %c0_1 = arith.constant 0 : index
    %3 = vector.load %arg9[%c0, %c0_1] : memref<128x128xf32, #tpu.memory_space<vmem>>, vector<128x128xf32>
    %c0_2 = arith.constant 0 : index
    %c0_3 = arith.constant 0 : index
    %c0_4 = arith.constant 0 : index
    %4 = vector.load %arg4[%c0_2, %c0_3, %c0_4] : memref<1x128x256xbf16, #tpu.memory_space<vmem>>, vector<1x128x256xbf16>
    %5 = vector.shape_cast %4 : vector<1x128x256xbf16> to vector<128x256xbf16>
    %c0_5 = arith.constant 0 : index
    %c0_6 = arith.constant 0 : index
    %c0_7 = arith.constant 0 : index
    %6 = vector.load %arg5[%c0_5, %c0_6, %c0_7] : memref<1x256x128xbf16, #tpu.memory_space<vmem>>, vector<1x256x128xbf16>
    %7 = vector.shape_cast %6 : vector<1x256x128xbf16> to vector<256x128xbf16>
    %cst = arith.constant dense<0.000000e+00> : vector<128x128xf32>
    %8 = tpu.matmul %5, %7, %cst {dimension_numbers = #tpu.dot_dimension_numbers<[1], [0], [0], [1], [0, 0, 1, 1], [], []>} : vector<128x256xbf16>, vector<256x128xbf16>, vector<128x128xf32> -> vector<128x128xf32>
    %9 = arith.addf %3, %8 : vector<128x128xf32>
    %c0_8 = arith.constant 0 : index
    %c0_9 = arith.constant 0 : index
    %10 = vector.load %arg9[%c0_8, %c0_9] : memref<128x128xf32, #tpu.memory_space<vmem>>, vector<128x128xf32>
    tpu.vector_store %arg9[%c0_8, %c0_9], %9 {strides = array<i32>} : memref<128x128xf32, #tpu.memory_space<vmem>>, vector<128x128xf32>,
    %c0_i32_10 = arith.constant 0 : i32
    %11 = arith.cmpi eq, %arg3, %c0_i32_10 : i32
    %12 = arith.extui %11 : i1 to i32
    %c0_i32_11 = arith.constant 0 : i32
    %13 = arith.cmpi ne, %12, %c0_i32_11 : i32
    scf.if %13 {
      %c0_12 = arith.constant 0 : index
      %c0_13 = arith.constant 0 : index
      %14 = vector.load %arg9[%c0_12, %c0_13] : memref<128x128xf32, #tpu.memory_space<vmem>>, vector<128x128xf32>
      %c0_14 = arith.constant 0 : index
      %c0_15 = arith.constant 0 : index
      %c0_16 = arith.constant 0 : index
      %15 = vector.load %arg6[%c0_14, %c0_15, %c0_16] : memref<1x1x128xf32, #tpu.memory_space<vmem>>, vector<1x1x128xf32>
      %16 = vector.shape_cast %15 : vector<1x1x128xf32> to vector<1x128xf32>
      %17 = vector.broadcast %16 : vector<1x128xf32> to vector<128x128xf32>
      %18 = arith.mulf %14, %17 : vector<128x128xf32>
      %c0_17 = arith.constant 0 : index
      %c0_18 = arith.constant 0 : index
      %c0_19 = arith.constant 0 : index
      %19 = vector.load %arg7[%c0_17, %c0_18, %c0_19] : memref<1x1x128xf32, #tpu.memory_space<vmem>>, vector<1x1x128xf32>
      %20 = vector.shape_cast %19 : vector<1x1x128xf32> to vector<1x128xf32>
      %21 = vector.broadcast %20 : vector<1x128xf32> to vector<128x128xf32>
      %22 = arith.addf %18, %21 : vector<128x128xf32>
      %23 = math.tanh %22 : vector<128x128xf32>
      %c0_20 = arith.constant 0 : index
      %c0_21 = arith.constant 0 : index
      %c0_22 = arith.constant 0 : index
      %24 = vector.load %arg8[%c0_20, %c0_21, %c0_22] : memref<1x128x128xf32, #tpu.memory_space<vmem>>, vector<1x128x128xf32>
      %25 = vector.shape_cast %24 : vector<1x128x128xf32> to vector<128x128xf32>
      %26 = vector.shape_cast %23 : vector<128x128xf32> to vector<1x128x128xf32>
      tpu.vector_store %arg8[%c0_20, %c0_21, %c0_22], %26 {strides = array<i32>} : memref<1x128x128xf32, #tpu.memory_space<vmem>>, vector<1x128x128xf32>,
    } else {
    }
    return
  }
  func.func @transform_0(%arg0: i32, %arg1: i32, %arg2: i32, %arg3: i32) -> (i32, i32, i32) {
    %c0_i32 = arith.constant 0 : i32
    return %arg0, %arg1, %arg3 : i32, i32, i32
  }
  func.func @transform_1(%arg0: i32, %arg1: i32, %arg2: i32, %arg3: i32) -> (i32, i32, i32) {
    %c0_i32 = arith.constant 0 : i32
    return %arg0, %arg3, %arg2 : i32, i32, i32
  }
  func.func @transform_2(%arg0: i32, %arg1: i32, %arg2: i32, %arg3: i32) -> (i32, i32, i32) {
    %c0_i32 = arith.constant 0 : i32
    %c0_i32_0 = arith.constant 0 : i32
    return %arg0, %c0_i32, %arg2 : i32, i32, i32
  }
  func.func @transform_3(%arg0: i32, %arg1: i32, %arg2: i32, %arg3: i32) -> (i32, i32, i32) {
    %c0_i32 = arith.constant 0 : i32
    %c0_i32_0 = arith.constant 0 : i32
    return %arg0, %c0_i32, %arg2 : i32, i32, i32
  }
  func.func @transform_4(%arg0: i32, %arg1: i32, %arg2: i32, %arg3: i32) -> (i32, i32, i32) {
    %c0_i32 = arith.constant 0 : i32
    return %arg0, %arg1, %arg2 : i32, i32, i32
  }
}

</mosaic_0001>

<bundles_post_ra>
// kernel: _lambda_.8
= control target key start
LH: loop header
LB: loop body
LE: loop exit
PB: predicated region body
PF: predicated region fallthrough
CT: control target
= control target key end

     0   :  { %9 = vsyncpa [#allocation4], 0  ;;  %s905_s0 = inlined_call_operand.vmem [shape: bf16[1,128,128], index: 0, kind: input, shape index: {}]   ;;  %s906_s1 = inlined_call_operand.hbm [shape: bf16[1,128,128], index: 1, kind: input, shape index: {}]   ;;  %s907_s2 = inlined_call_operand.vmem [shape: f32[1,1,128], index: 2, kind: input, shape index: {}]   ;;  %s908_s3 = inlined_call_operand.hbm [shape: f32[1,1,128], index: 3, kind: input, shape index: {}]   ;;  %s909_s4 = inlined_call_operand.vmem [shape: bf16[1,128,128], index: 4, kind: output, shape index: {}]  }
   0x1   :  { %10 = vsyncpa [#allocation6], 0  ;;  %s765_s15 = smov [#allocation3]   ;;  %s717_s19 = scalar_lea.hbm %s906_s1, 1024 }
   0x2   :  { %s18_s16 = sshll.u32 %s765_s15, 4  ;;  %p718_p0 = scmp.ne.s32.totalorder %s906_s1, %s717_s19  ;;  %s19_s16 = int_to_ptr.vmem [resolvable:$true] %s18_s16 }
   0x3   :  { %p721_p1 = scmp.lt.u32.totalorder %s717_s19, %s906_s1 }
   0x5   :  { %p723_p2 = pnand %p721_p1, %p718_p0 }
   0x7   :  { %726 = shalt.err (!%p723_p2)
}
   0x8   :  { %s727_s24 = scalar_lea.vmem %s19_s16, 1024  ;;  %p732_p4 = scmp.lt.s32.totalorder %s19_s16, %s19_s16 }
   0x9   :  { %p728_p3 = scmp.ne.s32.totalorder %s19_s16, %s727_s24  ;;  %p733_p5 = scmp.lt.s32.totalorder %s727_s24, %s727_s24 }
   0xb   :  { %p734_p6 = por %p733_p5, %p732_p4 }
   0xd   :  { %p735_p7 = pnand %p734_p6, %p728_p3 }
   0xf   :  { %738 = shalt.err (!%p735_p7)
}
  0x10   :  { %s766_s25 = smov 64   ;;  %s767_s26 = smov 4  }
  0x11   :  { %24 = dma.hbm_to_vmem [thread:$0]  %s906_s1, 1024, %s19_s16, [#allocation4], %s766_s25, %s766_s25, %s767_s26  }
  0x12   :  { %s768_s29 = smov [#allocation5]   ;;  %s739_s7 = scalar_lea.hbm %s908_s3, 16 }
  0x13   :  { %s33_s30 = sshll.u32 %s768_s29, 4  ;;  %p740_p8 = scmp.ne.s32.totalorder %s908_s3, %s739_s7  ;;  %s34_s30 = int_to_ptr.vmem [resolvable:$true] %s33_s30 }
  0x14   :  { %p743_p9 = scmp.lt.u32.totalorder %s739_s7, %s908_s3 }
  0x16   :  { %p745_p10 = pnand %p743_p9, %p740_p8 }
  0x18   :  { %748 = shalt.err (!%p745_p10)
}
  0x19   :  { %s749_s12 = scalar_lea.vmem %s34_s30, 16  ;;  %s753_s1 = scalar_lea.vmem %s34_s30, 32 }
  0x1a   :  { %p750_p11 = scmp.ne.s32.totalorder %s34_s30, %s749_s12  ;;  %p754_p12 = scmp.lt.s32.totalorder %s34_s30, %s34_s30 }
  0x1b   :  { %p755_p13 = scmp.lt.s32.totalorder %s753_s1, %s749_s12 }
  0x1d   :  { %p756_p0 = por %p755_p13, %p754_p12 }
  0x1f   :  { %p757_p1 = pnand %p756_p0, %p750_p11 }
  0x21   :  { %760 = shalt.err (!%p757_p1)
}
  0x22   :  { %36 = dma.hbm_to_vmem [thread:$0]  %s908_s3, 16, %s34_s30, [#allocation6]  }
  0x23   :  { %761 = dma.done.wait [#allocation4], 1024  }
  0x24   :  { %762 = vsyncadd [#allocation4], 4294966272 }
  0x25   :  { %763 = dma.done.wait [#allocation6], 16  }
  0x26   :  { %764 = vsyncadd [#allocation6], 4294967280  ;;  %v701_v0 = vld [vmem:[#allocation3] sm:$0xff]   ;;  %v702_v1 = vld [vmem:[#allocation3 + $0x8] sm:$0xff]  }
  0x27   :  { %649 = vmatprep.subr.bf16.mxu0 %v701_v0  ;;  %681 = vmatprep.subr.bf16.mxu1 %v701_v0  ;;  %v703_v2 = vld [vmem:[#allocation3 + $0x10] sm:$0xff]   ;;  %v704_v3 = vld [vmem:[#allocation3 + $0x18] sm:$0xff]   ;;  %v709_v4 = vld [vmem:[%s905_s0] sm:$0xff]  }
  0x28   :  { %650 = vmatpush3.bf16.msra.mxu0 %v701_v0  ;;  %689 = vmatpush3.bf16.msra.mxu1 %v701_v0  ;;  %v710_v5 = vld [vmem:[%s905_s0 + $0x20] sm:$0xff]   ;;  %v706_v7 = vld [vmem:[#allocation3 + $0x28] sm:$0xff]   ;;  %v707_v8 = vld [vmem:[#allocation3 + $0x30] sm:$0xff]  }
  0x29   :  { %651 = vmatprep.subr.bf16.mxu0 %v702_v1  ;;  %682 = vmatprep.subr.bf16.mxu1 %v702_v1  ;;  %v705_v6 = vld [vmem:[#allocation3 + $0x20] sm:$0xff]   ;;  %v708_v9 = vld [vmem:[#allocation3 + $0x38] sm:$0xff]   ;;  %v711_v10 = vld [vmem:[%s905_s0 + $0x8] sm:$0xff]  }
  0x2a   :  { %665 = vmatprep.mubr.bf16.mxu0 %v709_v4  ;;  %673 = vmatprep.mubr.bf16.mxu1 %v710_v5  ;;  %v712_v11 = vld [vmem:[%s905_s0 + $0x28] sm:$0xff]   ;;  %v713_v12 = vld [vmem:[%s905_s0 + $0x10] sm:$0xff]   ;;  %v715_v14 = vld [vmem:[%s905_s0 + $0x18] sm:$0xff]  }
  0x2b   :  { %v714_v13 = vld [vmem:[%s905_s0 + $0x30] sm:$0xff]   ;;  %v716_v15 = vld [vmem:[%s905_s0 + $0x38] sm:$0xff]   ;;  %v845_v16 = vld [vmem:[%s907_s2] ss:$0 sm:$0xff] }
  0x2c   :  { %652 = vmatpush3.bf16.msra.mxu0 %v702_v1  ;;  %690 = vmatpush3.bf16.msra.mxu1 %v702_v1  ;;  %v847_v18 = vld [vmem:[#allocation5] ss:$0 sm:$0xff] }
  0x2d   :  { %653 = vmatprep.subr.bf16.mxu0 %v703_v2  ;;  %683 = vmatprep.subr.bf16.mxu1 %v703_v2 }
  0x30   :  { %654 = vmatpush3.bf16.msra.mxu0 %v703_v2  ;;  %691 = vmatpush3.bf16.msra.mxu1 %v703_v2 }
  0x31   :  { %655 = vmatprep.subr.bf16.mxu0 %v704_v3  ;;  %684 = vmatprep.subr.bf16.mxu1 %v704_v3 }
  0x34   :  { %656 = vmatpush3.bf16.msra.mxu0 %v704_v3  ;;  %692 = vmatpush3.bf16.msra.mxu1 %v704_v3 }
  0x35   :  { %657 = vmatprep.subr.bf16.mxu0 %v705_v6  ;;  %685 = vmatprep.subr.bf16.mxu1 %v705_v6 }
  0x38   :  { %658 = vmatpush3.bf16.msra.mxu0 %v705_v6  ;;  %693 = vmatpush3.bf16.msra.mxu1 %v705_v6 }
  0x39   :  { %659 = vmatprep.subr.bf16.mxu0 %v706_v7  ;;  %686 = vmatprep.subr.bf16.mxu1 %v706_v7 }
  0x3c   :  { %660 = vmatpush3.bf16.msra.mxu0 %v706_v7  ;;  %694 = vmatpush3.bf16.msra.mxu1 %v706_v7 }
  0x3d   :  { %661 = vmatprep.subr.bf16.mxu0 %v707_v8  ;;  %687 = vmatprep.subr.bf16.mxu1 %v707_v8 }
  0x40   :  { %662 = vmatpush3.bf16.msra.mxu0 %v707_v8  ;;  %695 = vmatpush3.bf16.msra.mxu1 %v707_v8 }
  0x41   :  { %663 = vmatprep.subr.bf16.mxu0 %v708_v9  ;;  %688 = vmatprep.subr.bf16.mxu1 %v708_v9 }
  0x44   :  { %664 = vmatpush3.bf16.msra.mxu0 %v708_v9  ;;  %696 = vmatpush3.bf16.msra.mxu1 %v708_v9 }
  0x47   :  { %666 = vmatmul.mubr.bf16.vlgmr.msra.gmra.mrb[0].mxu0 %v711_v10  ;;  %674 = vmatmul.mubr.bf16.vlgmr.msra.gmra.mrb[0].mxu1 %v712_v11 }
  0x48   :  { %669 = vmatprep.mubr.bf16.mxu0 %v713_v12  ;;  %677 = vmatprep.mubr.bf16.mxu1 %v714_v13 }
  0x4f   :  { %670 = vmatmul.mubr.bf16.gmra.mrb[4].mxu0 %v715_v14  ;;  %678 = vmatmul.mubr.bf16.gmra.mrb[4].mxu1 %v716_v15 }
 0x11a   :  { %v667_v17 = vpop.f32.mrb[0].mxu0  ;;  %v675_v19 = vpop.f32.mrb[0].mxu1 }
 0x11b   :  { %v365_v20 = vmul.f32 %v667_v17, %v845_v16  ;;  %v373_v21 = vmul.f32 %v675_v19, %v845_v16  ;;  %v242_v22 = vpop.f32.mrb[1].mxu0  ;;  %v274_v23 = vpop.f32.mrb[1].mxu1 }
 0x11c   :  { %v363_v24 = vmul.f32 %v845_v16, %v242_v22  ;;  %v371_v25 = vmul.f32 %v845_v16, %v274_v23  ;;  %v668_v26 = vpop.f32.mrb[2].mxu0  ;;  %v676_v27 = vpop.f32.mrb[2].mxu1 }
 0x11d   :  { %v388_v28 = vadd.f32 %v847_v18, %v365_v20  ;;  %v396_v29 = vadd.f32 %v847_v18, %v373_v21  ;;  %v366_v30 = vmul.f32 %v668_v26, %v845_v16  ;;  %v374_v31 = vmul.f32 %v676_v27, %v845_v16  ;;  %v245_v32 = vpop.f32.mrb[3].mxu0  ;;  %v277_v33 = vpop.f32.mrb[3].mxu1 }
 0x11e   :  { %v386_v34 = vadd.f32 %v847_v18, %v363_v24  ;;  %v394_v35 = vadd.f32 %v847_v18, %v371_v25  ;;  %v364_v36 = vmul.f32 %v845_v16, %v245_v32  ;;  %v372_v37 = vmul.f32 %v845_v16, %v277_v33 }
 0x11f   :  { %vm404_vm0 = vcmp.gt.f32.partialorder %v388_v28, 0.0  ;;  %v420_v38 = vmul.f32 0.2, %v388_v28  ;;  %vm412_vm1 = vcmp.gt.f32.partialorder %v396_v29, 0.0  ;;  %v428_v39 = vmul.f32 0.2, %v396_v29 }
 0x120   :  { %vm402_vm2 = vcmp.gt.f32.partialorder %v386_v34, 0.0  ;;  %v418_v40 = vmul.f32 0.2, %v386_v34  ;;  %vm410_vm3 = vcmp.gt.f32.partialorder %v394_v35, 0.0  ;;  %v426_v41 = vmul.f32 0.2, %v394_v35 }
 0x121   :  { %v436_v42 = vsel %vm404_vm0, %v388_v28, %v420_v38  ;;  %v444_v43 = vsel %vm412_vm1, %v396_v29, %v428_v39  ;;  %v389_v44 = vadd.f32 %v847_v18, %v366_v30  ;;  %v397_v45 = vadd.f32 %v847_v18, %v374_v31 }
 0x122   :  { %v434_v46 = vsel %vm402_vm2, %v386_v34, %v418_v40  ;;  %v442_v47 = vsel %vm410_vm3, %v394_v35, %v426_v41  ;;  %v387_v48 = vadd.f32 %v847_v18, %v364_v36  ;;  %v395_v49 = vadd.f32 %v847_v18, %v372_v37  ;;  %v671_v50 = vpop.f32.mrb[4].mxu0  ;;  %v679_v51 = vpop.f32.mrb[4].mxu1 }
 0x123   :  { %vm405_vm4 = vcmp.gt.f32.partialorder %v389_v44, 0.0  ;;  %v421_v52 = vmul.f32 0.2, %v389_v44  ;;  %vm413_vm5 = vcmp.gt.f32.partialorder %v397_v45, 0.0  ;;  %v429_v53 = vmul.f32 0.2, %v397_v45 }
 0x124   :  { %vm403_vm6 = vcmp.gt.f32.partialorder %v387_v48, 0.0  ;;  %v419_v54 = vmul.f32 0.2, %v387_v48  ;;  %vm411_vm7 = vcmp.gt.f32.partialorder %v395_v49, 0.0  ;;  %v427_v55 = vmul.f32 0.2, %v395_v49 }
 0x125   :  { %v437_v56 = vsel %vm405_vm4, %v389_v44, %v421_v52  ;;  %v445_v57 = vsel %vm413_vm5, %v397_v45, %v429_v53  ;;  %v369_v58 = vmul.f32 %v671_v50, %v845_v16  ;;  %v377_v59 = vmul.f32 %v679_v51, %v845_v16  ;;  %v258_v60 = vpop.f32.mrb[5].mxu0  ;;  %v290_v61 = vpop.f32.mrb[5].mxu1 }
 0x126   :  { %v594_v62 = vpack.c.bf16 %v437_v56, %v436_v42  ;;  %v614_v63 = vpack.c.bf16 %v445_v57, %v444_v43  ;;  %v435_v0 = vsel %vm403_vm6, %v387_v48, %v419_v54  ;;  %v443_v1 = vsel %vm411_vm7, %v395_v49, %v427_v55  ;;  %v672_v2 = vpop.f32.mrb[6].mxu0  ;;  %v680_v3 = vpop.f32.mrb[6].mxu1 }
 0x127   :  { %v589_v4 = vpack.c.bf16 %v435_v0, %v434_v46  ;;  %v609_v5 = vpack.c.bf16 %v443_v1, %v442_v47  ;;  %v392_v6 = vadd.f32 %v847_v18, %v369_v58  ;;  %v400_v7 = vadd.f32 %v847_v18, %v377_v59  ;;  %v261_v8 = vpop.f32.mrb[7].mxu0  ;;  %v293_v9 = vpop.f32.mrb[7].mxu1 }
 0x128   :  { %626 = vst [vmem:[%s909_s4 + $0x8] sm:$0xff] %v594_v62   ;;  %630 = vst [vmem:[%s909_s4 + $0x28] sm:$0xff] %v614_v63   ;;  %v367_v10 = vmul.f32 %v845_v16, %v258_v60  ;;  %v375_v11 = vmul.f32 %v845_v16, %v290_v61  ;;  %v370_v12 = vmul.f32 %v672_v2, %v845_v16 }
 0x129   :  { %v378_v13 = vmul.f32 %v680_v3, %v845_v16  ;;  %590 = vst [vmem:[%s909_s4] sm:$0xff] %v589_v4   ;;  %629 = vst [vmem:[%s909_s4 + $0x20] sm:$0xff] %v609_v5   ;;  %vm408_vm8 = vcmp.gt.f32.partialorder %v392_v6, 0.0  ;;  %v424_v14 = vmul.f32 0.2, %v392_v6  ;;  %vm416_vm9 = vcmp.gt.f32.partialorder %v400_v7, 0.0 }
 0x12a   :  { %v432_v15 = vmul.f32 0.2, %v400_v7  ;;  %v390_v17 = vadd.f32 %v847_v18, %v367_v10  ;;  %v393_v19 = vadd.f32 %v847_v18, %v370_v12  ;;  %v398_v21 = vadd.f32 %v847_v18, %v375_v11 }
 0x12b   :  { %v401_v20 = vadd.f32 %v847_v18, %v378_v13  ;;  %v368_v22 = vmul.f32 %v845_v16, %v261_v8  ;;  %v376_v23 = vmul.f32 %v845_v16, %v293_v9  ;;  %v440_v24 = vsel %vm408_vm8, %v392_v6, %v424_v14 }
 0x12c   :  { %v448_v25 = vsel %vm416_vm9, %v400_v7, %v432_v15  ;;  %vm409_vm10 = vcmp.gt.f32.partialorder %v393_v19, 0.0  ;;  %v425_v26 = vmul.f32 0.2, %v393_v19  ;;  %vm406_vm12 = vcmp.gt.f32.partialorder %v390_v17, 0.0 }
 0x12d   :  { %vm417_vm11 = vcmp.gt.f32.partialorder %v401_v20, 0.0  ;;  %v433_v27 = vmul.f32 0.2, %v401_v20  ;;  %v422_v28 = vmul.f32 0.2, %v390_v17  ;;  %v391_v29 = vadd.f32 %v847_v18, %v368_v22 }
 0x12e   :  { %v399_v30 = vadd.f32 %v847_v18, %v376_v23  ;;  %vm414_vm13 = vcmp.gt.f32.partialorder %v398_v21, 0.0  ;;  %v430_v31 = vmul.f32 0.2, %v398_v21  ;;  %v441_v32 = vsel %vm409_vm10, %v393_v19, %v425_v26 }
 0x12f   :  { %v449_v33 = vsel %vm417_vm11, %v401_v20, %v433_v27  ;;  %v604_v34 = vpack.c.bf16 %v441_v32, %v440_v24  ;;  %vm407_vm14 = vcmp.gt.f32.partialorder %v391_v29, 0.0  ;;  %v423_v16 = vmul.f32 0.2, %v391_v29 }
 0x130   :  { %v624_v35 = vpack.c.bf16 %v449_v33, %v448_v25  ;;  %vm415_vm15 = vcmp.gt.f32.partialorder %v399_v30, 0.0  ;;  %v431_v36 = vmul.f32 0.2, %v399_v30  ;;  %v438_v37 = vsel %vm406_vm12, %v390_v17, %v422_v28 }
 0x131   :  { %628 = vst [vmem:[%s909_s4 + $0x18] sm:$0xff] %v604_v34   ;;  %v439_v18 = vsel %vm407_vm14, %v391_v29, %v423_v16  ;;  %v446_v38 = vsel %vm414_vm13, %v398_v21, %v430_v31 }
 0x132   :  { %632 = vst [vmem:[%s909_s4 + $0x38] sm:$0xff] %v624_v35   ;;  %v599_v39 = vpack.c.bf16 %v439_v18, %v438_v37  ;;  %v447_v40 = vsel %vm415_vm15, %v399_v30, %v431_v36 }
 0x133   :  { %v619_v41 = vpack.c.bf16 %v447_v40, %v446_v38 }
 0x134   :  { %627 = vst [vmem:[%s909_s4 + $0x10] sm:$0xff] %v599_v39  }
 0x135   :  { %631 = vst [vmem:[%s909_s4 + $0x30] sm:$0xff] %v619_v41  }
 0x136   :  { %534 = vsyncpa [#allocation4], 1 }
 0x137   :  { %535 = vsyncpa [#allocation6], 1 }

// kernel: _lambda_.9
= control target key start
LH: loop header
LB: loop body
LE: loop exit
PB: predicated region body
PF: predicated region fallthrough
CT: control target
= control target key end

     0   :  { %9 = vsyncpa [#allocation5], 0  ;;  %s1695_s0 = inlined_call_operand.vmem [shape: bf16[1,32,1024], index: 0, kind: input, shape index: {}]   ;;  %s1696_s1 = inlined_call_operand.hbm [shape: bf16[1,1024,128], index: 1, kind: input, shape index: {}]   ;;  %s1697_s2 = inlined_call_operand.hbm [shape: f32[1,1,128], index: 2, kind: input, shape index: {}]   ;;  %s1698_s3 = inlined_call_operand.hbm [shape: f32[1,1,128], index: 3, kind: input, shape index: {}]   ;;  %s1699_s4 = inlined_call_operand.vmem [shape: bf16[1,32,128], index: 4, kind: output, shape index: {}]  }
   0x1   :  { %11 = vsyncpa [#allocation5 + $0x1], 0 }
   0x2   :  { %12 = vsyncpa [#allocation7], 0  ;;  %s1453_s15 = smov 0   ;;  %s1455_s16 = smov 0  }
   0x3   :  { %s1457_s17 = smov 0   ;;  %s1459_s18 = smov 0  }
   0x4   :  { %s1461_s19 = smov 0   ;;  %s1463_s20 = smov 0  }
   0x5 LB: > { %s1023_s21 = sadd.s32 4294967295, %s1420_s20   ;;  %s33_s22 = sadd.s32 1, %s1416_s19  ;;  %s1420_s20 = sphi %s1463_s20, %s18_s20   ;;  %s1416_s19 = sphi %s1461_s19, %s1719_s19   ;;  %s1412_s18 = sphi %s1459_s18, %s1718_s18   ;;  %s1408_s17 = sphi %s1457_s17, %s1717_s17   ;;  %s1404_s16 = sphi %s1455_s16, %s1716_s16   ;;  %s1400_s15 = sphi %s1453_s15, %s1715_s15  }
   0x6   : > { %p34_p0 = scmp.ge.s32.totalorder %s33_s22, 2  ;;  %s55_s23 = sadd.s32 1, %s1408_s17 }
   0x7   : > { %p62_p1 = scmp.ne.s32.totalorder %s1408_s17, %s1404_s16  ;;  %p63_p2 = scmp.eq.s32.totalorder %s1420_s20, 0 }
   0x8   : > { %s1721_s22 = smov (%p34_p0, %s33_s22), 0  ;;  %p98_p4 = scmp.ne.s32.totalorder %s1404_s16, %s1400_s15 }
   0x9   : > { %p1489_p3 = por %p63_p2, %p62_p1  ;;  %s51_s25 = ssub.s32 %s1416_s19, %s1721_s22 }
   0xa   : > { %p1496_p5 = scmp.eq.s32.totalorder %s1023_s21, 0  ;;  %p53_p6 = scmp.eq.s32.totalorder %s51_s25, 0 }
   0xb   : > { %s1705_s24 = scalar_select %p1489_p3, 1, 0 }
   0xc   : > { %s1706_s26 = scalar_select %p1496_p5, 1, 0 }
   0xd   : > { %p1024_p7 = scmp.ge.s32.totalorder %s1420_s20, 1  ;;  %p1503_p8 = por %p1496_p5, %p98_p4 }
   0xe   : > { %p195_p9 = scmp.lt.s32.totalorder %s1420_s20, 3  ;;  %s1422_s30 = smov [#allocation6]  }
   0xf   : > { %s1707_s27 = scalar_select %p1503_p8, 1, 0 }
  0x10   : > { %s1509_s28 = scalar_select %p53_p6, %s1408_s17, %s55_s23  }
  0x11   : > { %p1511_p10 = pnand %p1024_p7, %p195_p9  ;;  %s211_s5 = sshll.u32 %s1422_s30, 4  ;;  %s212_s5 = int_to_ptr.vmem [resolvable:$true] %s211_s5 }
  0x12   : > { %s1423_s6 = smov [#allocation8]   ;;  %s1282_s11 = scalar_lea.hbm %s1697_s2, 16 }
  0x13   : > { %s1708_s29 = scalar_select %p1511_p10, 1, 0 }
  0x14   : > { %p1174_p11 = pneg %p1511_p10  ;;  %s225_s7 = sshll.u32 %s1423_s6, 4  ;;  %s1523_s7 = int_to_ptr.vmem [resolvable:$true] %s225_s7 }
  0x15   : > { %p1283_p13 = scmp.ne.s32.totalorder %s1697_s2, %s1282_s11  ;;  %p1289_p4 = scmp.lt.u32.totalorder %s1282_s11, %s1697_s2 }
  0x16   : > { %p1519_p12 = pnand %p1174_p11, %p1496_p5 }
  0x18   : > { %p1284_p0 = pneg %p1519_p12 }
  0x1a   : > { %p1285_p1 = pnand %p1284_p0, %p1283_p13 }
  0x1c   : > { %p1286_p2 = pneg %p1285_p1 }
  0x1e   : > { %p1291_p6 = pnand %p1289_p4, %p1286_p2 }
  0x20   : > { %1294 = shalt.err (!%p1291_p6)
}
  0x21   : > { %s1295_s21 = scalar_lea.vmem %s212_s5, 16  ;;  %s1302_s23 = scalar_lea.vmem %s212_s5, 32 }
  0x22   : > { %p1296_p7 = scmp.ne.s32.totalorder %s212_s5, %s1295_s21  ;;  %p1303_p5 = scmp.lt.s32.totalorder %s212_s5, %s212_s5 }
  0x23   : > { %p1304_p8 = scmp.lt.s32.totalorder %s1302_s23, %s1295_s21 }
  0x24   : > { %p1298_p9 = pnand %p1296_p7, %p1284_p0 }
  0x25   : > { %p1305_p10 = por %p1304_p8, %p1303_p5 }
  0x26   : > { %p1299_p11 = pneg %p1298_p9 }
  0x28   : > { %p1306_p3 = pnand %p1305_p10, %p1299_p11 }
  0x2a   : > { %1309 = shalt.err (!%p1306_p3)
}
  0x2b   : > { %1177 = dma.hbm_to_vmem [thread:$0]  (!%p1519_p12), %s1697_s2, 16, %s212_s5, [#allocation7]  }
  0x2c   : > { %s1310_s10 = scalar_lea.hbm %s1698_s3, 16 }
  0x2d   : > { %p1311_p13 = scmp.ne.s32.totalorder %s1698_s3, %s1310_s10  ;;  %p1317_p3 = scmp.lt.u32.totalorder %s1310_s10, %s1698_s3 }
  0x2f   : > { %p1313_p5 = pnand %p1311_p13, %p1284_p0 }
  0x31   : > { %p1314_p8 = pneg %p1313_p5 }
  0x33   : > { %p1319_p10 = pnand %p1317_p3, %p1314_p8 }
  0x35   : > { %1322 = shalt.err (!%p1319_p10)
}
  0x36   : > { %s1323_s5 = scalar_lea.vmem %s1523_s7, 16  ;;  %s1330_s15 = scalar_lea.vmem %s1523_s7, 32 }
  0x37   : > { %p1324_p1 = scmp.ne.s32.totalorder %s1523_s7, %s1323_s5  ;;  %p1331_p6 = scmp.lt.s32.totalorder %s1523_s7, %s1523_s7 }
  0x38   : > { %p1332_p7 = scmp.lt.s32.totalorder %s1330_s15, %s1323_s5 }
  0x39   : > { %p1326_p2 = pnand %p1324_p1, %p1284_p0 }
  0x3a   : > { %p1333_p9 = por %p1332_p7, %p1331_p6 }
  0x3b   : > { %p1327_p4 = pneg %p1326_p2 }
  0x3d   : > { %p1334_p11 = pnand %p1333_p9, %p1327_p4 }
  0x3f   : > { %1337 = shalt.err (!%p1334_p11)
}
  0x40   : > { %1180 = dma.hbm_to_vmem [thread:$0]  (!%p1519_p12), %s1698_s3, 16, %s1523_s7, [#allocation7]  }
  0x41   : > { %p1027_p13 = scmp.ge.s32.totalorder %s1420_s20, 2 }
  0x42   : > { %p1710_p0 = scmp.ne.s32.totalorder (!%p1027_p13), %s1705_s24, 0 }
  0x43   : > { %232 = sbr.rel (%p1027_p13) target bundleno = 109 (0x6d), region = 24 }
  0x4a   : > { %235 = sbr.rel (!%p1710_p0) target bundleno = 82 (0x52), region = 28  ;;  %s237_s25 = sand.u32 (%p1710_p0), 1, %s1408_s17  }
  0x4b   : > { %s1091_s30 = sshll.u32 (%p1710_p0), %s1416_s19, 4  ;;  %s1028_s6 = sshll.u32 (%p1710_p0), %s237_s25, 6 }
  0x4c   : > { %s247_s8 = scalar_lea.vmem (%p1710_p0), %s1695_s0, %s1091_s30  ;;  %s239_s11 = scalar_lea.vmem (%p1710_p0), [#allocation3], %s1028_s6 }
  0x4d   : > { %v260_v0 = vld [vmem:[%s247_s8] sm:$0xff] (%p1710_p0)  ;;  %v262_v1 = vld [vmem:[%s247_s8 + $0x8] sm:$0xff] (%p1710_p0) }
  0x4e   : > { %v264_v2 = vld [vmem:[%s247_s8 + $0x20] sm:$0xff] (%p1710_p0)  ;;  %261 = vst [vmem:[%s239_s11] sm:$0xff] (%p1710_p0), %v260_v0  ;;  %263 = vst [vmem:[%s239_s11 + $0x8] sm:$0xff] (%p1710_p0), %v262_v1  ;;  %v266_v3 = vld [vmem:[%s247_s8 + $0x28] sm:$0xff] (%p1710_p0) }
  0x4f   : > { %265 = vst [vmem:[%s239_s11 + $0x10] sm:$0xff] (%p1710_p0), %v264_v2  ;;  %v268_v4 = vld [vmem:[%s247_s8 + $0x40] sm:$0xff] (%p1710_p0)  ;;  %v270_v5 = vld [vmem:[%s247_s8 + $0x48] sm:$0xff] (%p1710_p0)  ;;  %267 = vst [vmem:[%s239_s11 + $0x18] sm:$0xff] (%p1710_p0), %v266_v3 }
  0x50   : > { %269 = vst [vmem:[%s239_s11 + $0x20] sm:$0xff] (%p1710_p0), %v268_v4  ;;  %271 = vst [vmem:[%s239_s11 + $0x28] sm:$0xff] (%p1710_p0), %v270_v5  ;;  %v272_v6 = vld [vmem:[%s247_s8 + $0x60] sm:$0xff] (%p1710_p0)  ;;  %v274_v7 = vld [vmem:[%s247_s8 + $0x68] sm:$0xff] (%p1710_p0) }
  0x51   : > { %273 = vst [vmem:[%s239_s11 + $0x30] sm:$0xff] %v272_v6  ;;  %275 = vst [vmem:[%s239_s11 + $0x38] sm:$0xff] %v274_v7 }
  0x52 PF: > { %s282_s7 = sand.u32 1, %s1408_s17   ;;  %s1092_s12 = sshll.u32 %s1416_s19, 12 }
  0x53   : > { %s1031_s13 = sshll.u32 %s282_s7, 8  ;;  %s1586_s15 = scalar_lea.hbm %s1696_s1, %s1092_s12 }
  0x54   : > { %s286_s21 = scalar_lea.vmem [#allocation4], %s1031_s13  ;;  %s1590_s25 = scalar_lea.sflag [#allocation5], %s282_s7 }
  0x55   : > { %s296_s23 = sshll.u32 %s286_s21, 4  ;;  %s1338_s30 = scalar_lea.hbm %s1586_s15, 4096  ;;  %s1588_s23 = int_to_ptr.vmem [resolvable:$true] %s296_s23 }
  0x56   : > { %p1339_p12 = scmp.ne.s32.totalorder %s1586_s15, %s1338_s30  ;;  %p1711_p5 = scmp.ne.s32.totalorder %s1705_s24, 0 }
  0x57   : > { %s1342_s10 = scalar_lea.hbm %s1696_s1, 8192  ;;  %p1343_p10 = scmp.lt.u32.totalorder %s1586_s15, %s1696_s1 }
  0x58   : > { %p1340_p8 = pnand %p1339_p12, %p1711_p5  ;;  %p1344_p1 = scmp.lt.u32.totalorder %s1342_s10, %s1338_s30 }
  0x59   : > { %p1346_p4 = scmp.lt.u32.totalorder %s1338_s30, %s1586_s15 }
  0x5a   : > { %p1341_p3 = pneg %p1340_p8  ;;  %p1345_p2 = por %p1344_p1, %p1343_p10 }
  0x5c   : > { %p1347_p6 = por %p1346_p4, %p1345_p2 }
  0x5e   : > { %p1348_p7 = pnand %p1347_p6, %p1341_p3 }
  0x60   : > { %1351 = shalt.err (!%p1348_p7)
}
  0x61   : > { %s1352_s7 = scalar_lea.vmem %s1588_s23, 4096  ;;  %s1424_s12 = smov [#allocation4]  }
  0x62   : > { %p1353_p9 = scmp.ne.s32.totalorder %s1588_s23, %s1352_s7  ;;  %s1356_s13 = sshll.u32 %s1424_s12, 4  ;;  %s1357_s13 = int_to_ptr.vmem [resolvable:$false] %s1356_s13 }
  0x63   : > { %s1358_s14 = scalar_lea.vmem %s1357_s13, 8192  ;;  %p1359_p0 = scmp.lt.s32.totalorder %s1588_s23, %s1357_s13 }
  0x64   : > { %p1354_p11 = pnand %p1353_p9, %p1711_p5  ;;  %p1360_p12 = scmp.lt.s32.totalorder %s1358_s14, %s1352_s7 }
  0x66   : > { %p1355_p13 = pneg %p1354_p11  ;;  %p1361_p8 = por %p1360_p12, %p1359_p0 }
  0x68   : > { %p1362_p10 = pnand %p1361_p8, %p1355_p13 }
  0x6a   : > { %1365 = shalt.err (!%p1362_p10)
}
  0x6b   : > { %s1425_s5 = smov 64   ;;  %s1426_s21 = smov 4  }
  0x6c   : > { %1168 = dma.hbm_to_vmem [thread:$0]  (%p1711_p5), %s1586_s15, 4096, %s1588_s23, %s1590_s25, %s1425_s5, %s1425_s5, %s1426_s21  }
  0x6d PF: > { %p1712_p3 = scmp.ne.s32.totalorder %s1708_s29, 0 }
  0x6e   : > { %s311_s30 = sand.u32 (!%p1712_p3), 1, %s1404_s16   ;;  %p1713_p1 = scmp.ne.s32.totalorder (!%p1712_p3), %s1707_s27, 0 }
  0x6f   : > { %308 = sbr.rel (%p1712_p3) target bundleno = 413 (0x19d), region = 55  ;;  %s1035_s6 = sshll.u32 (!%p1712_p3), %s311_s30, 6 }
  0x70   : > { %s1036_s9 = sshll.u32 (!%p1712_p3), %s311_s30, 8  ;;  %s1617_s10 = scalar_lea.vmem (!%p1712_p3), [#allocation3], %s1035_s6 }
  0x71   : > { %s318_s8 = scalar_lea.sflag (!%p1712_p3), [#allocation5], %s311_s30  ;;  %s1619_s11 = scalar_lea.vmem (!%p1712_p3), [#allocation4], %s1036_s9 }
  0x76   : > { %1391 = dma.done.wait (%p1713_p1), %s318_s8, 4096  }
  0x77   : > { %1393 = vsyncadd (%p1713_p1), %s318_s8, 4294963200  ;;  %p1714_p5 = scmp.ne.s32.totalorder %s1706_s26, 0 }
  0x79   : > { %1395 = dma.done.wait (%p1714_p5), [#allocation7], 32  }
  0x7a   : > { %1397 = vsyncadd (%p1714_p5), [#allocation7], 4294967264  ;;  %p1039_p2 = scmp.ne.s32.totalorder %s1412_s18, 0 }
  0x7b   : > { %v1427_v8 = vmov (!%p1039_p2), 0.0  }
  0x7c   : > { %385 = sbr.rel (%p1039_p2) target bundleno = 131 (0x83), region = 75  ;;  %386 = vst [vmem:[#allocation2] sm:$0xff] (!%p1039_p2), %v1427_v8  ;;  %387 = vst [vmem:[#allocation2 + $0x8] sm:$0xff] (!%p1039_p2), %v1427_v8 }
  0x7d   : > { %388 = vst [vmem:[#allocation2 + $0x10] sm:$0xff] (!%p1039_p2), %v1427_v8  ;;  %389 = vst [vmem:[#allocation2 + $0x18] sm:$0xff] (!%p1039_p2), %v1427_v8 }
  0x83 PF: > { %v1238_v9 = vld [vmem:[%s1619_s11 + $0x40] sm:$0xff]   ;;  %v1242_v13 = vld [vmem:[%s1619_s11 + $0x48] sm:$0xff]   ;;  %v1246_v17 = vld [vmem:[%s1619_s11 + $0x50] sm:$0xff]   ;;  %p1080_p4 = scmp.ne.s32.totalorder %s1412_s18, 1 }
  0x84   : > { %v1239_v10 = vld [vmem:[%s1619_s11 + $0xc0] sm:$0xff]   ;;  %1108 = vmatprep.subr.bf16.mxu0 %v1238_v9  ;;  %v1243_v14 = vld [vmem:[%s1619_s11 + $0xc8] sm:$0xff]   ;;  %v1247_v18 = vld [vmem:[%s1619_s11 + $0xd0] sm:$0xff]  }
  0x85   : > { %v1240_v11 = vld [vmem:[%s1619_s11] sm:$0xff]   ;;  %1136 = vmatprep.subr.bf16.mxu1 %v1239_v10  ;;  %v1244_v15 = vld [vmem:[%s1619_s11 + $0x8] sm:$0xff]   ;;  %v1248_v19 = vld [vmem:[%s1619_s11 + $0x10] sm:$0xff]  }
  0x86   : > { %v1241_v12 = vld [vmem:[%s1619_s11 + $0x80] sm:$0xff]   ;;  %1109 = vmatpush3.bf16.msra.mxu0 %v1240_v11  ;;  %v1245_v16 = vld [vmem:[%s1619_s11 + $0x88] sm:$0xff]   ;;  %v1249_v20 = vld [vmem:[%s1619_s11 + $0x90] sm:$0xff]  }
  0x87   : > { %1137 = vmatpush3.bf16.msra.mxu1 %v1241_v12  ;;  %1110 = vmatprep.subr.bf16.mxu0 %v1242_v13  ;;  %v1250_v21 = vld [vmem:[%s1619_s11 + $0x58] sm:$0xff]   ;;  %v1254_v25 = vld [vmem:[%s1619_s11 + $0x60] sm:$0xff]   ;;  %v1258_v29 = vld [vmem:[%s1619_s11 + $0x68] sm:$0xff]  }
  0x88   : > { %1138 = vmatprep.subr.bf16.mxu1 %v1243_v14  ;;  %v1251_v22 = vld [vmem:[%s1619_s11 + $0xd8] sm:$0xff]   ;;  %v1255_v26 = vld [vmem:[%s1619_s11 + $0xe0] sm:$0xff]   ;;  %v1259_v30 = vld [vmem:[%s1619_s11 + $0xe8] sm:$0xff]  }
  0x89   : > { %v1252_v23 = vld [vmem:[%s1619_s11 + $0x18] sm:$0xff]   ;;  %v1256_v27 = vld [vmem:[%s1619_s11 + $0x20] sm:$0xff]   ;;  %v1260_v31 = vld [vmem:[%s1619_s11 + $0x28] sm:$0xff]  }
  0x8a   : > { %1111 = vmatpush3.bf16.msra.mxu0 %v1244_v15  ;;  %v1253_v24 = vld [vmem:[%s1619_s11 + $0x98] sm:$0xff]   ;;  %v1257_v28 = vld [vmem:[%s1619_s11 + $0xa0] sm:$0xff]   ;;  %v1261_v32 = vld [vmem:[%s1619_s11 + $0xa8] sm:$0xff]  }
  0x8b   : > { %1139 = vmatpush3.bf16.msra.mxu1 %v1245_v16  ;;  %1112 = vmatprep.subr.bf16.mxu0 %v1246_v17  ;;  %v1262_v33 = vld [vmem:[%s1619_s11 + $0x70] sm:$0xff]   ;;  %v1266_v37 = vld [vmem:[%s1619_s11 + $0x78] sm:$0xff]   ;;  %v390_v58 = vld [vmem:[#allocation2] sm:$0xff] }
  0x8c   : > { %1140 = vmatprep.subr.bf16.mxu1 %v1247_v18  ;;  %v1263_v34 = vld [vmem:[%s1619_s11 + $0xf0] sm:$0xff]   ;;  %v1267_v38 = vld [vmem:[%s1619_s11 + $0xf8] sm:$0xff]   ;;  %v391_v63 = vld [vmem:[#allocation2 + $0x8] sm:$0xff] }
  0x8d   : > { %v1264_v35 = vld [vmem:[%s1619_s11 + $0x30] sm:$0xff]   ;;  %v1268_v39 = vld [vmem:[%s1619_s11 + $0x38] sm:$0xff]  }
  0x8e   : > { %1113 = vmatpush3.bf16.msra.mxu0 %v1248_v19  ;;  %v1265_v36 = vld [vmem:[%s1619_s11 + $0xb0] sm:$0xff]   ;;  %v1269_v40 = vld [vmem:[%s1619_s11 + $0xb8] sm:$0xff]  }
  0x8f   : > { %1141 = vmatpush3.bf16.msra.mxu1 %v1249_v20  ;;  %1114 = vmatprep.subr.bf16.mxu0 %v1250_v21  ;;  %v1270_v41 = vld [vmem:[%s1617_s10] ss:$16 sps:$4 sm:$0xff]   ;;  %v1272_v42 = vld [vmem:[%s1617_s10 + $0x4] ss:$16 sps:$4 sm:$0xff]   ;;  %v1273_v43 = vld [vmem:[%s1617_s10 + $0x8] ss:$16 sps:$4 sm:$0xff]  }
  0x90   : > { %1142 = vmatprep.subr.bf16.mxu1 %v1251_v22  ;;  %v1275_v44 = vld [vmem:[%s1617_s10 + $0xc] ss:$16 sps:$4 sm:$0xff]   ;;  %730 = vmatprep.mubr.bf16.mxu0 %v1272_v42  ;;  %v1276_v45 = vld [vmem:[%s1617_s10 + $0x24] ss:$16 sps:$4 sm:$0xff]   ;;  %v1280_v47 = vld [vmem:[%s1617_s10 + $0x20] ss:$16 sps:$4 sm:$0xff]  }
  0x91   : > { %779 = vmatprep.mubr.bf16.mxu1 %v1275_v44  ;;  %v1278_v46 = vld [vmem:[%s1617_s10 + $0x2c] ss:$16 sps:$4 sm:$0xff]   ;;  %v1281_v48 = vld [vmem:[%s1617_s10 + $0x28] ss:$16 sps:$4 sm:$0xff]   ;;  %v392_v12 = vld [vmem:[#allocation2 + $0x10] sm:$0xff] }
  0x92   : > { %1115 = vmatpush3.bf16.msra.mxu0 %v1252_v23  ;;  %v393_v17 = vld [vmem:[#allocation2 + $0x18] sm:$0xff]  ;;  %v1081_v23 = vld [vmem:[#allocation6] ss:$0 sm:$0xff] (!%p1080_p4) }
  0x93   : > { %1143 = vmatpush3.bf16.msra.mxu1 %v1253_v24  ;;  %1116 = vmatprep.subr.bf16.mxu0 %v1254_v25 }
  0x94   : > { %1144 = vmatprep.subr.bf16.mxu1 %v1255_v26  ;;  %v1082_v26 = vld [vmem:[#allocation8] ss:$0 sm:$0xff] (!%p1080_p4) }
  0x96   : > { %1117 = vmatpush3.bf16.msra.mxu0 %v1256_v27 }
  0x97   : > { %1145 = vmatpush3.bf16.msra.mxu1 %v1257_v28  ;;  %1118 = vmatprep.subr.bf16.mxu0 %v1258_v29 }
  0x98   : > { %1146 = vmatprep.subr.bf16.mxu1 %v1259_v30 }
  0x9a   : > { %1119 = vmatpush3.bf16.msra.mxu0 %v1260_v31 }
  0x9b   : > { %1147 = vmatpush3.bf16.msra.mxu1 %v1261_v32  ;;  %1120 = vmatprep.subr.bf16.mxu0 %v1262_v33 }
  0x9c   : > { %1148 = vmatprep.subr.bf16.mxu1 %v1263_v34 }
  0x9e   : > { %1121 = vmatpush3.bf16.msra.mxu0 %v1264_v35 }
  0x9f   : > { %1149 = vmatpush3.bf16.msra.mxu1 %v1265_v36  ;;  %1122 = vmatprep.subr.bf16.mxu0 %v1266_v37 }
  0xa0   : > { %1150 = vmatprep.subr.bf16.mxu1 %v1267_v38 }
  0xa2   : > { %1123 = vmatpush3.bf16.msra.mxu0 %v1268_v39 }
  0xa3   : > { %1151 = vmatpush3.bf16.msra.mxu1 %v1269_v40 }
  0xa5   : > { %731 = vmatmul.mubr.bf16.vlgmr.msra.gmra.mrb[0].mxu0 %v1270_v41 }
  0xa6   : > { %780 = vmatmul.mubr.bf16.vlgmr.msra.gmra.mrb[0].mxu1 %v1273_v43  ;;  %738 = vmatprep.mubr.bf16.mxu0 %v1276_v45 }
  0xa7   : > { %787 = vmatprep.mubr.bf16.mxu1 %v1278_v46 }
  0xad   : > { %739 = vmatmul.mubr.bf16.gmra.mrb[4].mxu0 %v1280_v47 }
  0xae   : > { %788 = vmatmul.mubr.bf16.gmra.mrb[4].mxu1 %v1281_v48 }
 0x178   : > { %v1124_v49 = vpop.f32.mrb[0].mxu0 }
 0x179   : > { %v1152_v50 = vpop.f32.mrb[0].mxu1  ;;  %v1125_v51 = vpop.f32.mrb[1].mxu0 }
 0x17a   : > { %v1126_v52 = vadd.f32 %v1125_v51, %v1124_v49  ;;  %v1153_v53 = vpop.f32.mrb[1].mxu1  ;;  %v1127_v54 = vpop.f32.mrb[2].mxu0 }
 0x17b   : > { %v1154_v55 = vadd.f32 %v1153_v53, %v1152_v50  ;;  %v1155_v56 = vpop.f32.mrb[2].mxu1  ;;  %v1128_v57 = vpop.f32.mrb[3].mxu0 }
 0x17c   : > { %v1129_v59 = vadd.f32 %v1128_v57, %v1127_v54  ;;  %v1156_v60 = vpop.f32.mrb[3].mxu1 }
 0x17d   : > { %v782_v61 = vadd.f32 %v1154_v55, %v1126_v52  ;;  %v1157_v62 = vadd.f32 %v1156_v60, %v1155_v56 }
 0x17f   : > { %v796_v0 = vadd.f32 %v782_v61, %v390_v58  ;;  %v785_v1 = vadd.f32 %v1157_v62, %v1129_v59 }
 0x180   : > { %v1130_v2 = vpop.f32.mrb[4].mxu0 }
 0x181   : > { %800 = vst [vmem:[#allocation2] sm:$0xff] %v796_v0  ;;  %v797_v3 = vadd.f32 %v785_v1, %v391_v63  ;;  %v1158_v4 = vpop.f32.mrb[4].mxu1  ;;  %v1131_v5 = vpop.f32.mrb[5].mxu0 }
 0x182   : > { %v1132_v6 = vadd.f32 %v1131_v5, %v1130_v2  ;;  %v1159_v7 = vpop.f32.mrb[5].mxu1  ;;  %v1133_v8 = vpop.f32.mrb[6].mxu0 }
 0x183   : > { %801 = vst [vmem:[#allocation2 + $0x8] sm:$0xff] %v797_v3  ;;  %v1160_v9 = vadd.f32 %v1159_v7, %v1158_v4  ;;  %v1161_v10 = vpop.f32.mrb[6].mxu1  ;;  %v1134_v11 = vpop.f32.mrb[7].mxu0 }
 0x184   : > { %v1135_v13 = vadd.f32 %v1134_v11, %v1133_v8  ;;  %v1162_v14 = vpop.f32.mrb[7].mxu1 }
 0x185   : > { %v790_v15 = vadd.f32 %v1160_v9, %v1132_v6  ;;  %v1163_v16 = vadd.f32 %v1162_v14, %v1161_v10  ;;  %807 = sbr.rel (%p1080_p4) target bundleno = 413 (0x19d), region = 79 }
 0x187   : > { %v798_v18 = vadd.f32 %v790_v15, %v392_v12  ;;  %v793_v19 = vadd.f32 %v1163_v16, %v1135_v13 }
 0x188   : > { %v808_v21 = vld [vmem:[#allocation2] sm:$0xff] (!%p1080_p4) }
 0x189   : > { %802 = vst [vmem:[#allocation2 + $0x10] sm:$0xff] %v798_v18  ;;  %v799_v20 = vadd.f32 %v793_v19, %v393_v17  ;;  %v819_v24 = vmul.f32 (!%p1080_p4), %v1081_v23, %v808_v21 }
 0x18a   : > { %v809_v22 = vld [vmem:[#allocation2 + $0x8] sm:$0xff] (!%p1080_p4) }
 0x18b   : > { %803 = vst [vmem:[#allocation2 + $0x18] sm:$0xff] %v799_v20  ;;  %v820_v25 = vmul.f32 (!%p1080_p4), %v1081_v23, %v809_v22  ;;  %v830_v31 = vadd.f32 (!%p1080_p4), %v1082_v26, %v819_v24 }
 0x18d   : > { %v831_v32 = vadd.f32 %v1082_v26, %v820_v25  ;;  %vm834_vm0 = vcmp.gt.f32.partialorder %v830_v31, 0.0  ;;  %v838_v35 = vmul.f32 0.2, %v830_v31 }
 0x18f   : > { %vm835_vm1 = vcmp.gt.f32.partialorder %v831_v32, 0.0  ;;  %v839_v36 = vmul.f32 0.2, %v831_v32  ;;  %v842_v39 = vsel %vm834_vm0, %v830_v31, %v838_v35 }
 0x190   : > { %v810_v27 = vld [vmem:[#allocation2 + $0x10] sm:$0xff] }
 0x191   : > { %v821_v29 = vmul.f32 %v1081_v23, %v810_v27  ;;  %v843_v40 = vsel %vm835_vm1, %v831_v32, %v839_v36 }
 0x192   : > { %v811_v28 = vld [vmem:[#allocation2 + $0x18] sm:$0xff]  ;;  %v1100_v41 = vpack.c.bf16 %v843_v40, %v842_v39 }
 0x193   : > { %v822_v30 = vmul.f32 %v1081_v23, %v811_v28  ;;  %v832_v33 = vadd.f32 %v1082_v26, %v821_v29 }
 0x194   : > { %1101 = vst [vmem:[%s1699_s4] sm:$0xff] %v1100_v41  }
 0x195   : > { %v833_v34 = vadd.f32 %v1082_v26, %v822_v30  ;;  %vm836_vm2 = vcmp.gt.f32.partialorder %v832_v33, 0.0  ;;  %v840_v37 = vmul.f32 0.2, %v832_v33 }
 0x197   : > { %vm837_vm3 = vcmp.gt.f32.partialorder %v833_v34, 0.0  ;;  %v841_v38 = vmul.f32 0.2, %v833_v34  ;;  %v844_v42 = vsel %vm836_vm2, %v832_v33, %v840_v37 }
 0x199   : > { %v845_v43 = vsel %vm837_vm3, %v833_v34, %v841_v38 }
 0x19a   : > { %v1105_v44 = vpack.c.bf16 %v845_v43, %v844_v42 }
 0x19c   : > { %1107 = vst [vmem:[%s1699_s4 + $0x8] sm:$0xff] %v1105_v44  }
 0x19d PF: > { %s18_s20 = sadd.s32 1, %s1420_s20   ;;  %s1715_s15 = smov %s1404_s16 }
 0x19e   : > { %p15_p6 = scmp.ge.s32.totalorder %s18_s20, 4   ;;  %s1716_s16 = smov %s1408_s17 }
 0x19f   : > { %s1717_s17 = smov %s1509_s28  ;;  %s1718_s18 = smov %s1416_s19 }
 0x1a0   : > { %s1719_s19 = smov %s1721_s22  ;;  %17 = sbr.rel (!%p15_p6) target bundleno = 5 (0x5), region = 125 }
 0x1a7   :  { %902 = vsyncpa [#allocation5], 1 }
 0x1a8   :  { %904 = vsyncpa [#allocation5 + $0x1], 1 }
 0x1a9   :  { %905 = vsyncpa [#allocation7], 1 }

// kernel: _lambda_.10
= control target key start
LH: loop header
LB: loop body
LE: loop exit
PB: predicated region body
PF: predicated region fallthrough
CT: control target
= control target key end

     0   :  { %s1374_s15 = smov 0   ;;  %s1376_s16 = smov 0   ;;  %s1492_s0 = inlined_call_operand.vmem [shape: bf16[1,8,2048], index: 0, kind: input, shape index: {}]   ;;  %s1493_s1 = inlined_call_operand.vmem [shape: bf16[1,2048,256], index: 1, kind: input, shape index: {}]   ;;  %s1494_s2 = inlined_call_operand.vmem [shape: f32[1,1,256], index: 2, kind: input, shape index: {}]   ;;  %s1495_s3 = inlined_call_operand.vmem [shape: f32[1,1,256], index: 3, kind: input, shape index: {}]   ;;  %s1496_s4 = inlined_call_operand.vmem [shape: bf16[1,8,256], index: 4, kind: output, shape index: {}]  }
   0x1   :  { %s1378_s17 = smov 0  }
   0x2 LB: > { %s29_s18 = sadd.s32 1, %s1342_s16  ;;  %p1116_p0 = scmp.ge.s32.totalorder %s1346_s17, 1  ;;  %s1346_s17 = sphi %s1378_s17, %s14_s17   ;;  %s1342_s16 = sphi %s1376_s16, %s1498_s16   ;;  %s1338_s15 = sphi %s1374_s15, %s1497_s15  }
   0x3   : > { %p30_p1 = scmp.ge.s32.totalorder %s29_s18, 4  ;;  %p262_p2 = scmp.lt.s32.totalorder %s1346_s17, 5 }
   0x5   : > { %s1500_s18 = smov (%p30_p1, %s29_s18), 0  ;;  %p263_p3 = pnand %p1116_p0, %p262_p2 }
   0x6   : > { %s1117_s19 = sshll.u32 (!%p263_p3), %s1338_s15, 2  ;;  %s1119_s20 = sshll.u32 (!%p263_p3), %s1338_s15, 6 }
   0x7   : > { %266 = sbr.rel (%p263_p3) target bundleno = 325 (0x145), region = 36  ;;  %p339_p4 = scmp.lt.s32.totalorder (!%p263_p3), %s1117_s19, 15 }
   0x8   : > { %p352_p5 = scmp.lt.s32.totalorder (!%p263_p3), %s1119_s20, 255  ;;  %p1122_p6 = scmp.ne.s32.totalorder (!%p263_p3), %s1338_s15, 0 }
   0xe   : > { %s1502_s19 = smov (!%p339_p4, %s1117_s19), 15  ;;  %s1504_s20 = smov (!%p352_p5, %s1119_s20), 255 }
   0xf   : > { %s1118_s21 = sshll.u32 %s1502_s19, 2  ;;  %s1197_s25 = sshll.u32 %s1504_s20, 3  ;;  %v1348_v0 = vmov (!%p1122_p6), 0.0  }
  0x10   : > { %s1399_s24 = scalar_lea.vmem %s1492_s0, %s1118_s21  ;;  %s1404_s28 = scalar_lea.vmem %s1493_s1, %s1197_s25  ;;  %400 = vst [vmem:[#allocation2] sm:$0xff] (!%p1122_p6), %v1348_v0  ;;  %401 = vst [vmem:[#allocation2 + $0x8] sm:$0xff] (!%p1122_p6), %v1348_v0 }
  0x11   : > { %399 = sbr.rel (%p1122_p6) target bundleno = 24 (0x18), region = 40 }
  0x18 PF: > { %v1224_v1 = vld [vmem:[%s1404_s28 + $0x4] ss:$8 sps:$4 sm:$0xff]   ;;  %v1228_v3 = vld [vmem:[%s1404_s28] ss:$8 sps:$4 sm:$0xff]   ;;  %v1230_v5 = vld [vmem:[%s1404_s28 + $0x14] ss:$8 sps:$4 sm:$0xff]  }
  0x19   : > { %v1226_v2 = vld [vmem:[%s1404_s28 + $0x104] ss:$8 sps:$4 sm:$0xff]   ;;  %804 = vmatprep.subr.bf16.mxu0 %v1224_v1  ;;  %v1229_v4 = vld [vmem:[%s1404_s28 + $0x100] ss:$8 sps:$4 sm:$0xff]   ;;  %v1232_v6 = vld [vmem:[%s1404_s28 + $0x114] ss:$8 sps:$4 sm:$0xff]  }
  0x1a   : > { %845 = vmatprep.subr.bf16.mxu1 %v1226_v2  ;;  %805 = vmatpush1.bf16.msra.mxu0 %v1228_v3  ;;  %v1234_v7 = vld [vmem:[%s1404_s28 + $0x10] ss:$8 sps:$4 sm:$0xff]   ;;  %v1236_v9 = vld [vmem:[%s1404_s28 + $0x24] ss:$8 sps:$4 sm:$0xff]   ;;  %v1240_v11 = vld [vmem:[%s1404_s28 + $0x20] ss:$8 sps:$4 sm:$0xff]  }
  0x1b   : > { %846 = vmatpush1.bf16.msra.mxu1 %v1229_v4  ;;  %806 = vmatprep.subr.bf16.mxu0 %v1230_v5  ;;  %v1235_v8 = vld [vmem:[%s1404_s28 + $0x110] ss:$8 sps:$4 sm:$0xff]   ;;  %v1238_v10 = vld [vmem:[%s1404_s28 + $0x124] ss:$8 sps:$4 sm:$0xff]   ;;  %v1241_v12 = vld [vmem:[%s1404_s28 + $0x120] ss:$8 sps:$4 sm:$0xff]  }
  0x1c   : > { %847 = vmatprep.subr.bf16.mxu1 %v1232_v6  ;;  %v1242_v13 = vld [vmem:[%s1404_s28 + $0x34] ss:$8 sps:$4 sm:$0xff]   ;;  %v1246_v15 = vld [vmem:[%s1404_s28 + $0x30] ss:$8 sps:$4 sm:$0xff]   ;;  %v1248_v17 = vld [vmem:[%s1404_s28 + $0x44] ss:$8 sps:$4 sm:$0xff]  }
  0x1d   : > { %v1244_v14 = vld [vmem:[%s1404_s28 + $0x134] ss:$8 sps:$4 sm:$0xff]   ;;  %v1247_v16 = vld [vmem:[%s1404_s28 + $0x130] ss:$8 sps:$4 sm:$0xff]   ;;  %v1250_v18 = vld [vmem:[%s1404_s28 + $0x144] ss:$8 sps:$4 sm:$0xff]  }
  0x1e   : > { %807 = vmatpush1.bf16.msra.mxu0 %v1234_v7  ;;  %v1252_v19 = vld [vmem:[%s1404_s28 + $0x40] ss:$8 sps:$4 sm:$0xff]   ;;  %v1254_v21 = vld [vmem:[%s1404_s28 + $0x54] ss:$8 sps:$4 sm:$0xff]   ;;  %v1258_v23 = vld [vmem:[%s1404_s28 + $0x50] ss:$8 sps:$4 sm:$0xff]  }
  0x1f   : > { %848 = vmatpush1.bf16.msra.mxu1 %v1235_v8  ;;  %808 = vmatprep.subr.bf16.mxu0 %v1236_v9  ;;  %v1253_v20 = vld [vmem:[%s1404_s28 + $0x140] ss:$8 sps:$4 sm:$0xff]   ;;  %v1256_v22 = vld [vmem:[%s1404_s28 + $0x154] ss:$8 sps:$4 sm:$0xff]   ;;  %v1259_v24 = vld [vmem:[%s1404_s28 + $0x150] ss:$8 sps:$4 sm:$0xff]  }
  0x20   : > { %849 = vmatprep.subr.bf16.mxu1 %v1238_v10  ;;  %v1260_v25 = vld [vmem:[%s1404_s28 + $0x64] ss:$8 sps:$4 sm:$0xff]   ;;  %v1264_v27 = vld [vmem:[%s1404_s28 + $0x60] ss:$8 sps:$4 sm:$0xff]   ;;  %v1266_v29 = vld [vmem:[%s1404_s28 + $0x74] ss:$8 sps:$4 sm:$0xff]  }
  0x21   : > { %v1262_v26 = vld [vmem:[%s1404_s28 + $0x164] ss:$8 sps:$4 sm:$0xff]   ;;  %v1265_v28 = vld [vmem:[%s1404_s28 + $0x160] ss:$8 sps:$4 sm:$0xff]   ;;  %v1268_v30 = vld [vmem:[%s1404_s28 + $0x174] ss:$8 sps:$4 sm:$0xff]  }
  0x22   : > { %809 = vmatpush1.bf16.msra.mxu0 %v1240_v11  ;;  %v1270_v31 = vld [vmem:[%s1404_s28 + $0x70] ss:$8 sps:$4 sm:$0xff]   ;;  %v1272_v33 = vld [vmem:[%s1404_s28 + $0x84] ss:$8 sps:$4 sm:$0xff]   ;;  %v1276_v35 = vld [vmem:[%s1404_s28 + $0x80] ss:$8 sps:$4 sm:$0xff]  }
  0x23   : > { %850 = vmatpush1.bf16.msra.mxu1 %v1241_v12  ;;  %810 = vmatprep.subr.bf16.mxu0 %v1242_v13  ;;  %v1271_v32 = vld [vmem:[%s1404_s28 + $0x170] ss:$8 sps:$4 sm:$0xff]   ;;  %v1274_v34 = vld [vmem:[%s1404_s28 + $0x184] ss:$8 sps:$4 sm:$0xff]   ;;  %v1277_v36 = vld [vmem:[%s1404_s28 + $0x180] ss:$8 sps:$4 sm:$0xff]  }
  0x24   : > { %851 = vmatprep.subr.bf16.mxu1 %v1244_v14  ;;  %v1278_v37 = vld [vmem:[%s1404_s28 + $0x94] ss:$8 sps:$4 sm:$0xff]   ;;  %v1282_v39 = vld [vmem:[%s1404_s28 + $0x90] ss:$8 sps:$4 sm:$0xff]   ;;  %v1284_v41 = vld [vmem:[%s1404_s28 + $0xa4] ss:$8 sps:$4 sm:$0xff]  }
  0x25   : > { %v1280_v38 = vld [vmem:[%s1404_s28 + $0x194] ss:$8 sps:$4 sm:$0xff]   ;;  %v1283_v40 = vld [vmem:[%s1404_s28 + $0x190] ss:$8 sps:$4 sm:$0xff]   ;;  %v1286_v42 = vld [vmem:[%s1404_s28 + $0x1a4] ss:$8 sps:$4 sm:$0xff]  }
  0x26   : > { %811 = vmatpush1.bf16.msra.mxu0 %v1246_v15  ;;  %v1288_v43 = vld [vmem:[%s1404_s28 + $0xa0] ss:$8 sps:$4 sm:$0xff]   ;;  %v1290_v45 = vld [vmem:[%s1404_s28 + $0xb4] ss:$8 sps:$4 sm:$0xff]   ;;  %v1294_v50 = vld [vmem:[%s1404_s28 + $0xb0] ss:$8 sps:$4 sm:$0xff]  }
  0x27   : > { %852 = vmatpush1.bf16.msra.mxu1 %v1247_v16  ;;  %812 = vmatprep.subr.bf16.mxu0 %v1248_v17  ;;  %v1289_v44 = vld [vmem:[%s1404_s28 + $0x1a0] ss:$8 sps:$4 sm:$0xff]   ;;  %v1292_v46 = vld [vmem:[%s1404_s28 + $0x1b4] ss:$8 sps:$4 sm:$0xff]   ;;  %v1295_v51 = vld [vmem:[%s1404_s28 + $0x1b0] ss:$8 sps:$4 sm:$0xff]  }
  0x28   : > { %853 = vmatprep.subr.bf16.mxu1 %v1250_v18  ;;  %v404_v47 = vld [vmem:[%s1399_s24] sm:$0xff]  ;;  %v405_v49 = vld [vmem:[%s1399_s24 + $0x8] sm:$0xff]  ;;  %v1302_v57 = vld [vmem:[%s1404_s28 + $0xd4] ss:$8 sps:$4 sm:$0xff]   ;;  %p1191_p7 = scmp.ne.s32.totalorder %s1338_s15, 3 }
  0x29   : > { %v1124_v48 = vcombine.high %v404_v47, %v404_v47  ;;  %v1126_v52 = vcombine.high %v405_v49, %v405_v49  ;;  %v1296_v53 = vld [vmem:[%s1404_s28 + $0xc4] ss:$8 sps:$4 sm:$0xff]   ;;  %v1300_v55 = vld [vmem:[%s1404_s28 + $0xc0] ss:$8 sps:$4 sm:$0xff]   ;;  %v1304_v58 = vld [vmem:[%s1404_s28 + $0x1d4] ss:$8 sps:$4 sm:$0xff]   ;;  %v1123_v5 = vcombine.low %v404_v47, %v404_v47  ;;  %v1125_v6 = vcombine.low %v405_v49, %v405_v49 }
  0x2a   : > { %813 = vmatpush1.bf16.msra.mxu0 %v1252_v19  ;;  %v1298_v54 = vld [vmem:[%s1404_s28 + $0x1c4] ss:$8 sps:$4 sm:$0xff]   ;;  %v1301_v56 = vld [vmem:[%s1404_s28 + $0x1c0] ss:$8 sps:$4 sm:$0xff]   ;;  %v1306_v59 = vld [vmem:[%s1404_s28 + $0xd0] ss:$8 sps:$4 sm:$0xff]  }
  0x2b   : > { %854 = vmatpush1.bf16.msra.mxu1 %v1253_v20  ;;  %814 = vmatprep.subr.bf16.mxu0 %v1254_v21  ;;  %v1307_v60 = vld [vmem:[%s1404_s28 + $0x1d0] ss:$8 sps:$4 sm:$0xff]   ;;  %v1308_v61 = vld [vmem:[%s1404_s28 + $0xe4] ss:$8 sps:$4 sm:$0xff]   ;;  %v1312_v63 = vld [vmem:[%s1404_s28 + $0xe0] ss:$8 sps:$4 sm:$0xff]   ;;  %v898_v21 = vlaneseq (!%p1191_p7) }
  0x2c   : > { %855 = vmatprep.subr.bf16.mxu1 %v1256_v22  ;;  %836 = vmatprep.mubr.bf16.mxu0 %v1124_v48  ;;  %v1310_v62 = vld [vmem:[%s1404_s28 + $0x1e4] ss:$8 sps:$4 sm:$0xff]   ;;  %v1313_v0 = vld [vmem:[%s1404_s28 + $0x1e0] ss:$8 sps:$4 sm:$0xff]   ;;  %v1314_v1 = vld [vmem:[%s1404_s28 + $0xf4] ss:$8 sps:$4 sm:$0xff]  }
  0x2d   : > { %877 = vmatprep.mubr.bf16.mxu1 %v1126_v52  ;;  %v1316_v2 = vld [vmem:[%s1404_s28 + $0x1f4] ss:$8 sps:$4 sm:$0xff]   ;;  %v1318_v3 = vld [vmem:[%s1404_s28 + $0xf0] ss:$8 sps:$4 sm:$0xff]   ;;  %v402_v8 = vld [vmem:[#allocation2] sm:$0xff]  ;;  %v899_v22 = vshrl.u32 (!%p1191_p7), %v898_v21, 7 }
  0x2e   : > { %815 = vmatpush1.bf16.msra.mxu0 %v1258_v23  ;;  %v1319_v4 = vld [vmem:[%s1404_s28 + $0x1f0] ss:$8 sps:$4 sm:$0xff]   ;;  %v403_v12 = vld [vmem:[#allocation2 + $0x8] sm:$0xff]  ;;  %v896_v23 = vld [vmem:[%s1494_s2] sm:$0x3] (!%p1191_p7) }
  0x2f   : > { %856 = vmatpush1.bf16.msra.mxu1 %v1259_v24  ;;  %816 = vmatprep.subr.bf16.mxu0 %v1260_v25  ;;  %v910_v24 = vld [vmem:[%s1495_s3] sm:$0x3] (!%p1191_p7)  ;;  %v900_v25 = vsub.s32 (!%p1191_p7), 0, %v899_v22 }
  0x30   : > { %857 = vmatprep.subr.bf16.mxu1 %v1262_v26  ;;  %v904_v26 = vsub.s32 (!%p1191_p7), 1, %v899_v22 }
  0x32   : > { %817 = vmatpush1.bf16.msra.mxu0 %v1264_v27 }
  0x33   : > { %858 = vmatpush1.bf16.msra.mxu1 %v1265_v28  ;;  %818 = vmatprep.subr.bf16.mxu0 %v1266_v29  ;;  %v901_v29 = vrot.slane (!%p1191_p7), %v896_v23, %v900_v25 }
  0x34   : > { %859 = vmatprep.subr.bf16.mxu1 %v1268_v30  ;;  %v905_v30 = vrot.slane (!%p1191_p7), %v896_v23, %v904_v26 }
  0x36   : > { %819 = vmatpush1.bf16.msra.mxu0 %v1270_v31  ;;  %v915_v31 = vrot.slane (!%p1191_p7), %v910_v24, %v900_v25 }
  0x37   : > { %860 = vmatpush1.bf16.msra.mxu1 %v1271_v32  ;;  %820 = vmatprep.subr.bf16.mxu0 %v1272_v33  ;;  %v919_v32 = vrot.slane (!%p1191_p7), %v910_v24, %v904_v26 }
  0x38   : > { %861 = vmatprep.subr.bf16.mxu1 %v1274_v34 }
  0x3a   : > { %821 = vmatpush1.bf16.msra.mxu0 %v1276_v35 }
  0x3b   : > { %862 = vmatpush1.bf16.msra.mxu1 %v1277_v36  ;;  %822 = vmatprep.subr.bf16.mxu0 %v1278_v37 }
  0x3c   : > { %863 = vmatprep.subr.bf16.mxu1 %v1280_v38 }
  0x3e   : > { %823 = vmatpush1.bf16.msra.mxu0 %v1282_v39 }
  0x3f   : > { %864 = vmatpush1.bf16.msra.mxu1 %v1283_v40  ;;  %824 = vmatprep.subr.bf16.mxu0 %v1284_v41 }
  0x40   : > { %865 = vmatprep.subr.bf16.mxu1 %v1286_v42 }
  0x42   : > { %825 = vmatpush1.bf16.msra.mxu0 %v1288_v43 }
  0x43   : > { %866 = vmatpush1.bf16.msra.mxu1 %v1289_v44  ;;  %826 = vmatprep.subr.bf16.mxu0 %v1290_v45 }
  0x44   : > { %867 = vmatprep.subr.bf16.mxu1 %v1292_v46 }
  0x46   : > { %827 = vmatpush1.bf16.msra.mxu0 %v1294_v50 }
  0x47   : > { %868 = vmatpush1.bf16.msra.mxu1 %v1295_v51  ;;  %828 = vmatprep.subr.bf16.mxu0 %v1296_v53 }
  0x48   : > { %869 = vmatprep.subr.bf16.mxu1 %v1298_v54 }
  0x4a   : > { %829 = vmatpush1.bf16.msra.mxu0 %v1300_v55 }
  0x4b   : > { %870 = vmatpush1.bf16.msra.mxu1 %v1301_v56  ;;  %830 = vmatprep.subr.bf16.mxu0 %v1302_v57 }
  0x4c   : > { %871 = vmatprep.subr.bf16.mxu1 %v1304_v58 }
  0x4e   : > { %831 = vmatpush1.bf16.msra.mxu0 %v1306_v59 }
  0x4f   : > { %872 = vmatpush1.bf16.msra.mxu1 %v1307_v60  ;;  %832 = vmatprep.subr.bf16.mxu0 %v1308_v61 }
  0x50   : > { %873 = vmatprep.subr.bf16.mxu1 %v1310_v62 }
  0x52   : > { %833 = vmatpush1.bf16.msra.mxu0 %v1312_v63 }
  0x53   : > { %874 = vmatpush1.bf16.msra.mxu1 %v1313_v0  ;;  %834 = vmatprep.subr.bf16.mxu0 %v1314_v1 }
  0x54   : > { %875 = vmatprep.subr.bf16.mxu1 %v1316_v2 }
  0x56   : > { %835 = vmatpush1.bf16.msra.mxu0 %v1318_v3 }
  0x57   : > { %876 = vmatpush1.bf16.msra.mxu1 %v1319_v4 }
  0x59   : > { %837 = vmatmul.mubr.bf16.vlgmr.msra.gmra.mrb[0].mxu0 %v1123_v5 }
  0x5a   : > { %878 = vmatmul.mubr.bf16.vlgmr.msra.gmra.mrb[0].mxu1 %v1125_v6 }
 0x12c   : > { %v838_v7 = vpop.f32.mrb[0].mxu0 }
 0x12d   : > { %v879_v9 = vpop.f32.mrb[0].mxu1  ;;  %v840_v11 = vpop.f32.mrb[1].mxu0  ;;  %893 = sbr.rel (%p1191_p7) target bundleno = 325 (0x145), region = 44 }
 0x12e   : > { %v880_v10 = vadd.f32 %v879_v9, %v838_v7  ;;  %v881_v13 = vpop.f32.mrb[1].mxu1  ;;  %v842_v15 = vpop.f32.mrb[2].mxu0 }
 0x12f   : > { %v882_v14 = vadd.f32 %v881_v13, %v840_v11  ;;  %v883_v16 = vpop.f32.mrb[2].mxu1  ;;  %v843_v18 = vpop.f32.mrb[3].mxu0 }
 0x130   : > { %v886_v17 = vadd.f32 %v880_v10, %v402_v8  ;;  %v884_v19 = vpop.f32.mrb[3].mxu1 }
 0x131   : > { %v887_v20 = vadd.f32 %v882_v14, %v403_v12 }
 0x132   : > { %888 = vst [vmem:[#allocation2] sm:$0xff] %v886_v17 }
 0x133   : > { %889 = vst [vmem:[#allocation2 + $0x8] sm:$0xff] %v887_v20 }
 0x139   : > { %v894_v27 = vld [vmem:[#allocation2] sm:$0xff] }
 0x13a   : > { %v895_v28 = vld [vmem:[#allocation2 + $0x8] sm:$0xff]  ;;  %v908_v33 = vmul.f32 %v901_v29, %v894_v27 }
 0x13b   : > { %v909_v34 = vmul.f32 %v905_v30, %v895_v28 }
 0x13c   : > { %v922_v35 = vadd.f32 %v915_v31, %v908_v33 }
 0x13d   : > { %v923_v36 = vadd.f32 %v919_v32, %v909_v34 }
 0x13e   : > { %vm924_vm0 = vcmp.gt.f32.partialorder %v922_v35, 0.0  ;;  %v926_v37 = vmul.f32 0.2, %v922_v35 }
 0x13f   : > { %vm925_vm1 = vcmp.gt.f32.partialorder %v923_v36, 0.0  ;;  %v927_v38 = vmul.f32 0.2, %v923_v36 }
 0x140   : > { %v928_v39 = vsel %vm924_vm0, %v922_v35, %v926_v37 }
 0x141   : > { %v929_v40 = vsel %vm925_vm1, %v923_v36, %v927_v38 }
 0x142   : > { %v1198_v41 = vpack.c.bf16 %v929_v40, %v928_v39 }
 0x144   : > { %938 = vst [vmem:[%s1496_s4] sm:$0xff] %v1198_v41 }
 0x145 PF: > { %s14_s17 = sadd.s32 1, %s1346_s17   ;;  %s1497_s15 = smov %s1342_s16 }
 0x146   : > { %p11_p8 = scmp.ge.s32.totalorder %s14_s17, 6   ;;  %s1498_s16 = smov %s1500_s18 }
 0x148   :  { %13 = sbr.rel (!%p11_p8) target bundleno = 2 (0x2), region = 83 }

// kernel: _lambda_.11
= control target key start
LH: loop header
LB: loop body
LE: loop exit
PB: predicated region body
PF: predicated region fallthrough
CT: control target
= control target key end

     0   :  { %s1704_s15 = smov 0   ;;  %s1706_s16 = smov 0   ;;  %s2024_s0 = inlined_call_operand.vmem [shape: bf16[1,8,4096], index: 0, kind: input, shape index: {}]   ;;  %s2025_s1 = inlined_call_operand.vmem [shape: bf16[1,4096,512], index: 1, kind: input, shape index: {}]   ;;  %s2026_s2 = inlined_call_operand.vmem [shape: f32[1,1,512], index: 2, kind: input, shape index: {}]   ;;  %s2027_s3 = inlined_call_operand.vmem [shape: f32[1,1,512], index: 3, kind: input, shape index: {}]   ;;  %s2028_s4 = inlined_call_operand.vmem [shape: bf16[1,8,512], index: 4, kind: output, shape index: {}]  }
   0x1   :  { %s1708_s17 = smov 0   ;;  %s1710_s18 = smov 0  }
   0x2   :  { %s1712_s19 = smov 0   ;;  %s1714_s20 = smov 0  }
   0x3   :  { %s1716_s21 = smov 0  }
   0x4 LB: > { %s29_s22 = sadd.s32 1, %s1668_s19  ;;  %s32_s23 = sadd.s32 1, %s1672_s20  ;;  %s1676_s21 = sphi %s1716_s21, %s14_s21   ;;  %s1672_s20 = sphi %s1714_s20, %s2034_s20   ;;  %s1668_s19 = sphi %s1712_s19, %s2033_s19   ;;  %s1664_s18 = sphi %s1710_s18, %s2032_s18   ;;  %s1660_s17 = sphi %s1708_s17, %s2031_s17   ;;  %s1656_s16 = sphi %s1706_s16, %s2030_s16   ;;  %s1652_s15 = sphi %s1704_s15, %s2029_s15  }
   0x5   : > { %p30_p0 = scmp.ge.s32.totalorder %s29_s22, 8  ;;  %p88_p1 = scmp.ne.s32.totalorder %s1656_s16, %s1652_s15 }
   0x6   : > { %p89_p2 = scmp.eq.s32.totalorder %s1676_s21, 0  ;;  %s81_s27 = sadd.s32 1, %s1656_s16 }
   0x7   : > { %s2036_s22 = smov (%p30_p0, %s29_s22), 0  ;;  %s2038_s23 = smov (!%p30_p0, %s32_s23), %s1672_s20 }
   0x8   : > { %p90_p3 = por %p89_p2, %p88_p1  ;;  %p34_p4 = scmp.ge.s32.totalorder %s2038_s23, 2 }
   0x9   : > { %s75_s24 = ssub.s32 %s1668_s19, %s2036_s22  ;;  %p1376_p6 = scmp.ge.s32.totalorder %s1676_s21, 16 }
   0xa   : > { %s2040_s23 = smov (%p34_p4, %s2038_s23), 0 }
   0xb   : > { %s77_s25 = ssub.s32 %s1672_s20, %s2040_s23  ;;  %200 = sbr.rel (%p1376_p6) target bundleno = 57 (0x39), region = 16 }
   0xc   : > { %s78_s26 = sor.u32 %s77_s25, %s75_s24 }
   0xd   : > { %p79_p5 = scmp.eq.s32.totalorder %s78_s26, 0 }
   0xf   : > { %s1755_s28 = scalar_select %p79_p5, %s1656_s16, %s81_s27  }
  0x12   : > { %220 = sbr.rel (!%p90_p3) target bundleno = 57 (0x39), region = 24  ;;  %s222_s29 = sand.u32 (%p90_p3), 1, %s1656_s16  }
  0x13   : > { %s1379_s30 = sshll.u32 (%p90_p3), %s1672_s20, 1  ;;  %s1377_s5 = sshll.u32 (%p90_p3), %s222_s29, 9 }
  0x14   : > { %s1463_s6 = sshll.u32 (%p90_p3), %s1668_s19, 8  ;;  %s1769_s12 = scalar_lea.vmem (%p90_p3), [#allocation3], %s1377_s5 }
  0x15   : > { %s228_s7 = sadd.s32 (%p90_p3), %s1463_s6, %s1379_s30 }
  0x16   : > { %s1381_s8 = sshll.u32 (%p90_p3), %s228_s7, 2 }
  0x17   : > { %s1764_s11 = scalar_lea.vmem (%p90_p3), %s2025_s1, %s1381_s8 }
  0x18   : > { %v386_v0 = vld [vmem:[%s1764_s11] sm:$0xff] (%p90_p3)  ;;  %v388_v1 = vld [vmem:[%s1764_s11 + $0x10] sm:$0xff] (%p90_p3) }
  0x19   : > { %v390_v2 = vld [vmem:[%s1764_s11 + $0x20] sm:$0xff]  ;;  %387 = vst [vmem:[%s1769_s12] sm:$0xff] %v386_v0  ;;  %389 = vst [vmem:[%s1769_s12 + $0x8] sm:$0xff] %v388_v1  ;;  %v392_v3 = vld [vmem:[%s1764_s11 + $0x30] sm:$0xff] }
  0x1a   : > { %391 = vst [vmem:[%s1769_s12 + $0x10] sm:$0xff] %v390_v2  ;;  %v394_v4 = vld [vmem:[%s1764_s11 + $0x40] sm:$0xff]  ;;  %v396_v5 = vld [vmem:[%s1764_s11 + $0x50] sm:$0xff]  ;;  %393 = vst [vmem:[%s1769_s12 + $0x18] sm:$0xff] %v392_v3 }
  0x1b   : > { %395 = vst [vmem:[%s1769_s12 + $0x20] sm:$0xff] %v394_v4  ;;  %397 = vst [vmem:[%s1769_s12 + $0x28] sm:$0xff] %v396_v5  ;;  %v398_v6 = vld [vmem:[%s1764_s11 + $0x60] sm:$0xff]  ;;  %v400_v7 = vld [vmem:[%s1764_s11 + $0x70] sm:$0xff] }
  0x1c   : > { %v402_v8 = vld [vmem:[%s1764_s11 + $0x80] sm:$0xff]  ;;  %399 = vst [vmem:[%s1769_s12 + $0x30] sm:$0xff] %v398_v6  ;;  %401 = vst [vmem:[%s1769_s12 + $0x38] sm:$0xff] %v400_v7  ;;  %v404_v9 = vld [vmem:[%s1764_s11 + $0x90] sm:$0xff] }
  0x1d   : > { %403 = vst [vmem:[%s1769_s12 + $0x40] sm:$0xff] %v402_v8  ;;  %v406_v10 = vld [vmem:[%s1764_s11 + $0xa0] sm:$0xff]  ;;  %v408_v11 = vld [vmem:[%s1764_s11 + $0xb0] sm:$0xff]  ;;  %405 = vst [vmem:[%s1769_s12 + $0x48] sm:$0xff] %v404_v9 }
  0x1e   : > { %407 = vst [vmem:[%s1769_s12 + $0x50] sm:$0xff] %v406_v10  ;;  %409 = vst [vmem:[%s1769_s12 + $0x58] sm:$0xff] %v408_v11  ;;  %v410_v12 = vld [vmem:[%s1764_s11 + $0xc0] sm:$0xff]  ;;  %v412_v13 = vld [vmem:[%s1764_s11 + $0xd0] sm:$0xff] }
  0x1f   : > { %v414_v14 = vld [vmem:[%s1764_s11 + $0xe0] sm:$0xff]  ;;  %411 = vst [vmem:[%s1769_s12 + $0x60] sm:$0xff] %v410_v12  ;;  %413 = vst [vmem:[%s1769_s12 + $0x68] sm:$0xff] %v412_v13  ;;  %v416_v15 = vld [vmem:[%s1764_s11 + $0xf0] sm:$0xff] }
  0x20   : > { %415 = vst [vmem:[%s1769_s12 + $0x70] sm:$0xff] %v414_v14  ;;  %v418_v16 = vld [vmem:[%s1764_s11 + $0x100] sm:$0xff]  ;;  %v420_v17 = vld [vmem:[%s1764_s11 + $0x110] sm:$0xff]  ;;  %417 = vst [vmem:[%s1769_s12 + $0x78] sm:$0xff] %v416_v15 }
  0x21   : > { %419 = vst [vmem:[%s1769_s12 + $0x80] sm:$0xff] %v418_v16  ;;  %421 = vst [vmem:[%s1769_s12 + $0x88] sm:$0xff] %v420_v17  ;;  %v422_v18 = vld [vmem:[%s1764_s11 + $0x120] sm:$0xff]  ;;  %v424_v19 = vld [vmem:[%s1764_s11 + $0x130] sm:$0xff] }
  0x22   : > { %v426_v20 = vld [vmem:[%s1764_s11 + $0x140] sm:$0xff]  ;;  %423 = vst [vmem:[%s1769_s12 + $0x90] sm:$0xff] %v422_v18  ;;  %425 = vst [vmem:[%s1769_s12 + $0x98] sm:$0xff] %v424_v19  ;;  %v428_v21 = vld [vmem:[%s1764_s11 + $0x150] sm:$0xff] }
  0x23   : > { %427 = vst [vmem:[%s1769_s12 + $0xa0] sm:$0xff] %v426_v20  ;;  %v430_v22 = vld [vmem:[%s1764_s11 + $0x160] sm:$0xff]  ;;  %v432_v23 = vld [vmem:[%s1764_s11 + $0x170] sm:$0xff]  ;;  %429 = vst [vmem:[%s1769_s12 + $0xa8] sm:$0xff] %v428_v21 }
  0x24   : > { %431 = vst [vmem:[%s1769_s12 + $0xb0] sm:$0xff] %v430_v22  ;;  %433 = vst [vmem:[%s1769_s12 + $0xb8] sm:$0xff] %v432_v23  ;;  %v434_v24 = vld [vmem:[%s1764_s11 + $0x180] sm:$0xff]  ;;  %v436_v25 = vld [vmem:[%s1764_s11 + $0x190] sm:$0xff] }
  0x25   : > { %v438_v26 = vld [vmem:[%s1764_s11 + $0x1a0] sm:$0xff]  ;;  %435 = vst [vmem:[%s1769_s12 + $0xc0] sm:$0xff] %v434_v24  ;;  %437 = vst [vmem:[%s1769_s12 + $0xc8] sm:$0xff] %v436_v25  ;;  %v440_v27 = vld [vmem:[%s1764_s11 + $0x1b0] sm:$0xff] }
  0x26   : > { %439 = vst [vmem:[%s1769_s12 + $0xd0] sm:$0xff] %v438_v26  ;;  %v442_v28 = vld [vmem:[%s1764_s11 + $0x1c0] sm:$0xff]  ;;  %v444_v29 = vld [vmem:[%s1764_s11 + $0x1d0] sm:$0xff]  ;;  %441 = vst [vmem:[%s1769_s12 + $0xd8] sm:$0xff] %v440_v27 }
  0x27   : > { %443 = vst [vmem:[%s1769_s12 + $0xe0] sm:$0xff] %v442_v28  ;;  %445 = vst [vmem:[%s1769_s12 + $0xe8] sm:$0xff] %v444_v29  ;;  %v446_v30 = vld [vmem:[%s1764_s11 + $0x1e0] sm:$0xff]  ;;  %v448_v31 = vld [vmem:[%s1764_s11 + $0x1f0] sm:$0xff] }
  0x28   : > { %v450_v32 = vld [vmem:[%s1764_s11 + $0x200] sm:$0xff]  ;;  %447 = vst [vmem:[%s1769_s12 + $0xf0] sm:$0xff] %v446_v30  ;;  %449 = vst [vmem:[%s1769_s12 + $0xf8] sm:$0xff] %v448_v31  ;;  %v452_v33 = vld [vmem:[%s1764_s11 + $0x210] sm:$0xff] }
  0x29   : > { %451 = vst [vmem:[%s1769_s12 + $0x100] sm:$0xff] %v450_v32  ;;  %v454_v34 = vld [vmem:[%s1764_s11 + $0x220] sm:$0xff]  ;;  %v456_v35 = vld [vmem:[%s1764_s11 + $0x230] sm:$0xff]  ;;  %453 = vst [vmem:[%s1769_s12 + $0x108] sm:$0xff] %v452_v33 }
  0x2a   : > { %455 = vst [vmem:[%s1769_s12 + $0x110] sm:$0xff] %v454_v34  ;;  %457 = vst [vmem:[%s1769_s12 + $0x118] sm:$0xff] %v456_v35  ;;  %v458_v36 = vld [vmem:[%s1764_s11 + $0x240] sm:$0xff]  ;;  %v460_v37 = vld [vmem:[%s1764_s11 + $0x250] sm:$0xff] }
  0x2b   : > { %v462_v38 = vld [vmem:[%s1764_s11 + $0x260] sm:$0xff]  ;;  %459 = vst [vmem:[%s1769_s12 + $0x120] sm:$0xff] %v458_v36  ;;  %461 = vst [vmem:[%s1769_s12 + $0x128] sm:$0xff] %v460_v37  ;;  %v464_v39 = vld [vmem:[%s1764_s11 + $0x270] sm:$0xff] }
  0x2c   : > { %463 = vst [vmem:[%s1769_s12 + $0x130] sm:$0xff] %v462_v38  ;;  %v466_v40 = vld [vmem:[%s1764_s11 + $0x280] sm:$0xff]  ;;  %v468_v41 = vld [vmem:[%s1764_s11 + $0x290] sm:$0xff]  ;;  %465 = vst [vmem:[%s1769_s12 + $0x138] sm:$0xff] %v464_v39 }
  0x2d   : > { %467 = vst [vmem:[%s1769_s12 + $0x140] sm:$0xff] %v466_v40  ;;  %469 = vst [vmem:[%s1769_s12 + $0x148] sm:$0xff] %v468_v41  ;;  %v470_v42 = vld [vmem:[%s1764_s11 + $0x2a0] sm:$0xff]  ;;  %v472_v43 = vld [vmem:[%s1764_s11 + $0x2b0] sm:$0xff] }
  0x2e   : > { %v474_v44 = vld [vmem:[%s1764_s11 + $0x2c0] sm:$0xff]  ;;  %471 = vst [vmem:[%s1769_s12 + $0x150] sm:$0xff] %v470_v42  ;;  %473 = vst [vmem:[%s1769_s12 + $0x158] sm:$0xff] %v472_v43  ;;  %v476_v45 = vld [vmem:[%s1764_s11 + $0x2d0] sm:$0xff] }
  0x2f   : > { %475 = vst [vmem:[%s1769_s12 + $0x160] sm:$0xff] %v474_v44  ;;  %v478_v46 = vld [vmem:[%s1764_s11 + $0x2e0] sm:$0xff]  ;;  %v480_v47 = vld [vmem:[%s1764_s11 + $0x2f0] sm:$0xff]  ;;  %477 = vst [vmem:[%s1769_s12 + $0x168] sm:$0xff] %v476_v45 }
  0x30   : > { %479 = vst [vmem:[%s1769_s12 + $0x170] sm:$0xff] %v478_v46  ;;  %481 = vst [vmem:[%s1769_s12 + $0x178] sm:$0xff] %v480_v47  ;;  %v482_v48 = vld [vmem:[%s1764_s11 + $0x300] sm:$0xff]  ;;  %v484_v49 = vld [vmem:[%s1764_s11 + $0x310] sm:$0xff] }
  0x31   : > { %v486_v50 = vld [vmem:[%s1764_s11 + $0x320] sm:$0xff]  ;;  %483 = vst [vmem:[%s1769_s12 + $0x180] sm:$0xff] %v482_v48  ;;  %485 = vst [vmem:[%s1769_s12 + $0x188] sm:$0xff] %v484_v49  ;;  %v488_v51 = vld [vmem:[%s1764_s11 + $0x330] sm:$0xff] }
  0x32   : > { %487 = vst [vmem:[%s1769_s12 + $0x190] sm:$0xff] %v486_v50  ;;  %v490_v52 = vld [vmem:[%s1764_s11 + $0x340] sm:$0xff]  ;;  %v492_v53 = vld [vmem:[%s1764_s11 + $0x350] sm:$0xff]  ;;  %489 = vst [vmem:[%s1769_s12 + $0x198] sm:$0xff] %v488_v51 }
  0x33   : > { %491 = vst [vmem:[%s1769_s12 + $0x1a0] sm:$0xff] %v490_v52  ;;  %493 = vst [vmem:[%s1769_s12 + $0x1a8] sm:$0xff] %v492_v53  ;;  %v494_v54 = vld [vmem:[%s1764_s11 + $0x360] sm:$0xff]  ;;  %v496_v55 = vld [vmem:[%s1764_s11 + $0x370] sm:$0xff] }
  0x34   : > { %v498_v56 = vld [vmem:[%s1764_s11 + $0x380] sm:$0xff]  ;;  %495 = vst [vmem:[%s1769_s12 + $0x1b0] sm:$0xff] %v494_v54  ;;  %497 = vst [vmem:[%s1769_s12 + $0x1b8] sm:$0xff] %v496_v55  ;;  %v500_v57 = vld [vmem:[%s1764_s11 + $0x390] sm:$0xff] }
  0x35   : > { %499 = vst [vmem:[%s1769_s12 + $0x1c0] sm:$0xff] %v498_v56  ;;  %v502_v58 = vld [vmem:[%s1764_s11 + $0x3a0] sm:$0xff]  ;;  %v504_v59 = vld [vmem:[%s1764_s11 + $0x3b0] sm:$0xff]  ;;  %501 = vst [vmem:[%s1769_s12 + $0x1c8] sm:$0xff] %v500_v57 }
  0x36   : > { %503 = vst [vmem:[%s1769_s12 + $0x1d0] sm:$0xff] %v502_v58  ;;  %505 = vst [vmem:[%s1769_s12 + $0x1d8] sm:$0xff] %v504_v59  ;;  %v506_v60 = vld [vmem:[%s1764_s11 + $0x3c0] sm:$0xff]  ;;  %v508_v61 = vld [vmem:[%s1764_s11 + $0x3d0] sm:$0xff] }
  0x37   : > { %v510_v62 = vld [vmem:[%s1764_s11 + $0x3e0] sm:$0xff]  ;;  %507 = vst [vmem:[%s1769_s12 + $0x1e0] sm:$0xff] %v506_v60  ;;  %509 = vst [vmem:[%s1769_s12 + $0x1e8] sm:$0xff] %v508_v61  ;;  %v512_v63 = vld [vmem:[%s1764_s11 + $0x3f0] sm:$0xff] }
  0x38   : > { %511 = vst [vmem:[%s1769_s12 + $0x1f0] sm:$0xff] %v510_v62  ;;  %513 = vst [vmem:[%s1769_s12 + $0x1f8] sm:$0xff] %v512_v63 }
  0x39 PF: > { %p1382_p7 = scmp.ge.s32.totalorder %s1676_s21, 1  ;;  %p542_p8 = scmp.lt.s32.totalorder %s1676_s21, 17 }
  0x3b   : > { %p543_p9 = pnand %p1382_p7, %p542_p8 }
  0x3c   : > { %s549_s13 = sand.u32 (!%p543_p9), 1, %s1652_s15   ;;  %s1384_s14 = sshll.u32 (!%p543_p9), %s1660_s17, 2 }
  0x3d   : > { %546 = sbr.rel (%p543_p9) target bundleno = 379 (0x17b), region = 70  ;;  %s1383_s24 = sshll.u32 (!%p543_p9), %s549_s13, 9 }
  0x3e   : > { %p616_p10 = scmp.lt.s32.totalorder (!%p543_p9), %s1384_s14, 31  ;;  %s1386_s25 = sshll.u32 (!%p543_p9), %s1664_s18, 1 }
  0x3f   : > { %p630_p11 = scmp.lt.s32.totalorder (!%p543_p9), %s1386_s25, 3  ;;  %s1922_s13 = scalar_lea.vmem (!%p543_p9), [#allocation3], %s1383_s24 }
  0x40   : > { %p1390_p12 = scmp.ne.s32.totalorder (!%p543_p9), %s1660_s17, 0 }
  0x44   : > { %s2042_s14 = smov (!%p616_p10, %s1384_s14), 31  ;;  %s2044_s25 = smov (!%p630_p11, %s1386_s25), 3 }
  0x45   : > { %s1385_s26 = sshll.u32 %s2042_s14, 2  ;;  %s634_s15 = scalar_lea.vmem %s2026_s2, %s2044_s25  ;;  %v1678_v0 = vmov (!%p1390_p12), 0.0  }
  0x46   : > { %s1904_s30 = scalar_lea.vmem %s2024_s0, %s1385_s26  ;;  %s643_s18 = scalar_lea.vmem %s2027_s3, %s2044_s25  ;;  %663 = vst [vmem:[#allocation2] sm:$0xff] (!%p1390_p12), %v1678_v0  ;;  %664 = vst [vmem:[#allocation2 + $0x8] sm:$0xff] (!%p1390_p12), %v1678_v0 }
  0x47   : > { %s1389_s9 = sshll.u32 %s2044_s25, 2  ;;  %662 = sbr.rel (%p1390_p12) target bundleno = 78 (0x4e), region = 78 }
  0x48   : > { %s1920_s12 = scalar_lea.vmem %s2028_s4, %s1389_s9 }
  0x4e PF: > { %v1522_v1 = vld [vmem:[%s1922_s13 + $0x4] ss:$8 sps:$4 sm:$0xff]   ;;  %v1526_v3 = vld [vmem:[%s1922_s13] ss:$8 sps:$4 sm:$0xff]   ;;  %v1528_v5 = vld [vmem:[%s1922_s13 + $0x14] ss:$8 sps:$4 sm:$0xff]  }
  0x4f   : > { %v1524_v2 = vld [vmem:[%s1922_s13 + $0x104] ss:$8 sps:$4 sm:$0xff]   ;;  %1067 = vmatprep.subr.bf16.mxu0 %v1522_v1  ;;  %v1527_v4 = vld [vmem:[%s1922_s13 + $0x100] ss:$8 sps:$4 sm:$0xff]   ;;  %v1530_v6 = vld [vmem:[%s1922_s13 + $0x114] ss:$8 sps:$4 sm:$0xff]  }
  0x50   : > { %1108 = vmatprep.subr.bf16.mxu1 %v1524_v2  ;;  %1068 = vmatpush1.bf16.msra.mxu0 %v1526_v3  ;;  %v1532_v7 = vld [vmem:[%s1922_s13 + $0x10] ss:$8 sps:$4 sm:$0xff]   ;;  %v1534_v9 = vld [vmem:[%s1922_s13 + $0x24] ss:$8 sps:$4 sm:$0xff]   ;;  %v1538_v11 = vld [vmem:[%s1922_s13 + $0x20] ss:$8 sps:$4 sm:$0xff]  }
  0x51   : > { %1109 = vmatpush1.bf16.msra.mxu1 %v1527_v4  ;;  %1069 = vmatprep.subr.bf16.mxu0 %v1528_v5  ;;  %v1533_v8 = vld [vmem:[%s1922_s13 + $0x110] ss:$8 sps:$4 sm:$0xff]   ;;  %v1536_v10 = vld [vmem:[%s1922_s13 + $0x124] ss:$8 sps:$4 sm:$0xff]   ;;  %v1539_v12 = vld [vmem:[%s1922_s13 + $0x120] ss:$8 sps:$4 sm:$0xff]  }
  0x52   : > { %1110 = vmatprep.subr.bf16.mxu1 %v1530_v6  ;;  %v1540_v13 = vld [vmem:[%s1922_s13 + $0x34] ss:$8 sps:$4 sm:$0xff]   ;;  %v1544_v15 = vld [vmem:[%s1922_s13 + $0x30] ss:$8 sps:$4 sm:$0xff]   ;;  %v1546_v17 = vld [vmem:[%s1922_s13 + $0x44] ss:$8 sps:$4 sm:$0xff]  }
  0x53   : > { %v1542_v14 = vld [vmem:[%s1922_s13 + $0x134] ss:$8 sps:$4 sm:$0xff]   ;;  %v1545_v16 = vld [vmem:[%s1922_s13 + $0x130] ss:$8 sps:$4 sm:$0xff]   ;;  %v1548_v18 = vld [vmem:[%s1922_s13 + $0x144] ss:$8 sps:$4 sm:$0xff]  }
  0x54   : > { %1070 = vmatpush1.bf16.msra.mxu0 %v1532_v7  ;;  %v1550_v19 = vld [vmem:[%s1922_s13 + $0x40] ss:$8 sps:$4 sm:$0xff]   ;;  %v1552_v21 = vld [vmem:[%s1922_s13 + $0x54] ss:$8 sps:$4 sm:$0xff]   ;;  %v1556_v23 = vld [vmem:[%s1922_s13 + $0x50] ss:$8 sps:$4 sm:$0xff]  }
  0x55   : > { %1111 = vmatpush1.bf16.msra.mxu1 %v1533_v8  ;;  %1071 = vmatprep.subr.bf16.mxu0 %v1534_v9  ;;  %v1551_v20 = vld [vmem:[%s1922_s13 + $0x140] ss:$8 sps:$4 sm:$0xff]   ;;  %v1554_v22 = vld [vmem:[%s1922_s13 + $0x154] ss:$8 sps:$4 sm:$0xff]   ;;  %v1557_v24 = vld [vmem:[%s1922_s13 + $0x150] ss:$8 sps:$4 sm:$0xff]  }
  0x56   : > { %1112 = vmatprep.subr.bf16.mxu1 %v1536_v10  ;;  %v1558_v25 = vld [vmem:[%s1922_s13 + $0x64] ss:$8 sps:$4 sm:$0xff]   ;;  %v1562_v27 = vld [vmem:[%s1922_s13 + $0x60] ss:$8 sps:$4 sm:$0xff]   ;;  %v1564_v29 = vld [vmem:[%s1922_s13 + $0x74] ss:$8 sps:$4 sm:$0xff]  }
  0x57   : > { %v1560_v26 = vld [vmem:[%s1922_s13 + $0x164] ss:$8 sps:$4 sm:$0xff]   ;;  %v1563_v28 = vld [vmem:[%s1922_s13 + $0x160] ss:$8 sps:$4 sm:$0xff]   ;;  %v1566_v30 = vld [vmem:[%s1922_s13 + $0x174] ss:$8 sps:$4 sm:$0xff]  }
  0x58   : > { %1072 = vmatpush1.bf16.msra.mxu0 %v1538_v11  ;;  %v1568_v31 = vld [vmem:[%s1922_s13 + $0x70] ss:$8 sps:$4 sm:$0xff]   ;;  %v1570_v33 = vld [vmem:[%s1922_s13 + $0x84] ss:$8 sps:$4 sm:$0xff]   ;;  %v1574_v35 = vld [vmem:[%s1922_s13 + $0x80] ss:$8 sps:$4 sm:$0xff]  }
  0x59   : > { %1113 = vmatpush1.bf16.msra.mxu1 %v1539_v12  ;;  %1073 = vmatprep.subr.bf16.mxu0 %v1540_v13  ;;  %v1569_v32 = vld [vmem:[%s1922_s13 + $0x170] ss:$8 sps:$4 sm:$0xff]   ;;  %v1572_v34 = vld [vmem:[%s1922_s13 + $0x184] ss:$8 sps:$4 sm:$0xff]   ;;  %v1575_v36 = vld [vmem:[%s1922_s13 + $0x180] ss:$8 sps:$4 sm:$0xff]  }
  0x5a   : > { %1114 = vmatprep.subr.bf16.mxu1 %v1542_v14  ;;  %v1576_v37 = vld [vmem:[%s1922_s13 + $0x94] ss:$8 sps:$4 sm:$0xff]   ;;  %v1580_v39 = vld [vmem:[%s1922_s13 + $0x90] ss:$8 sps:$4 sm:$0xff]   ;;  %v1582_v41 = vld [vmem:[%s1922_s13 + $0xa4] ss:$8 sps:$4 sm:$0xff]  }
  0x5b   : > { %v1578_v38 = vld [vmem:[%s1922_s13 + $0x194] ss:$8 sps:$4 sm:$0xff]   ;;  %v1581_v40 = vld [vmem:[%s1922_s13 + $0x190] ss:$8 sps:$4 sm:$0xff]   ;;  %v1584_v42 = vld [vmem:[%s1922_s13 + $0x1a4] ss:$8 sps:$4 sm:$0xff]  }
  0x5c   : > { %1074 = vmatpush1.bf16.msra.mxu0 %v1544_v15  ;;  %v1586_v43 = vld [vmem:[%s1922_s13 + $0xa0] ss:$8 sps:$4 sm:$0xff]   ;;  %v1588_v45 = vld [vmem:[%s1922_s13 + $0xb4] ss:$8 sps:$4 sm:$0xff]   ;;  %v1592_v50 = vld [vmem:[%s1922_s13 + $0xb0] ss:$8 sps:$4 sm:$0xff]  }
  0x5d   : > { %1115 = vmatpush1.bf16.msra.mxu1 %v1545_v16  ;;  %1075 = vmatprep.subr.bf16.mxu0 %v1546_v17  ;;  %v1587_v44 = vld [vmem:[%s1922_s13 + $0x1a0] ss:$8 sps:$4 sm:$0xff]   ;;  %v1590_v46 = vld [vmem:[%s1922_s13 + $0x1b4] ss:$8 sps:$4 sm:$0xff]   ;;  %v1593_v51 = vld [vmem:[%s1922_s13 + $0x1b0] ss:$8 sps:$4 sm:$0xff]  }
  0x5e   : > { %1116 = vmatprep.subr.bf16.mxu1 %v1548_v18  ;;  %v667_v47 = vld [vmem:[%s1904_s30] sm:$0xff]  ;;  %v668_v49 = vld [vmem:[%s1904_s30 + $0x8] sm:$0xff]  ;;  %v1594_v53 = vld [vmem:[%s1922_s13 + $0xc4] ss:$8 sps:$4 sm:$0xff]   ;;  %p1459_p13 = scmp.ne.s32.totalorder %s1660_s17, 7 }
  0x5f   : > { %v1392_v48 = vcombine.high %v667_v47, %v667_v47  ;;  %v1394_v52 = vcombine.high %v668_v49, %v668_v49  ;;  %v1596_v54 = vld [vmem:[%s1922_s13 + $0x1c4] ss:$8 sps:$4 sm:$0xff]   ;;  %v1598_v55 = vld [vmem:[%s1922_s13 + $0xc0] ss:$8 sps:$4 sm:$0xff]   ;;  %v1600_v57 = vld [vmem:[%s1922_s13 + $0xd4] ss:$8 sps:$4 sm:$0xff]   ;;  %v1391_v5 = vcombine.low %v667_v47, %v667_v47  ;;  %v1393_v6 = vcombine.low %v668_v49, %v668_v49 }
  0x60   : > { %1076 = vmatpush1.bf16.msra.mxu0 %v1550_v19  ;;  %v1599_v56 = vld [vmem:[%s1922_s13 + $0x1c0] ss:$8 sps:$4 sm:$0xff]   ;;  %v1602_v58 = vld [vmem:[%s1922_s13 + $0x1d4] ss:$8 sps:$4 sm:$0xff]   ;;  %v1604_v59 = vld [vmem:[%s1922_s13 + $0xd0] ss:$8 sps:$4 sm:$0xff]  }
  0x61   : > { %1117 = vmatpush1.bf16.msra.mxu1 %v1551_v20  ;;  %1077 = vmatprep.subr.bf16.mxu0 %v1552_v21  ;;  %v1605_v60 = vld [vmem:[%s1922_s13 + $0x1d0] ss:$8 sps:$4 sm:$0xff]   ;;  %v1606_v61 = vld [vmem:[%s1922_s13 + $0xe4] ss:$8 sps:$4 sm:$0xff]   ;;  %v1610_v63 = vld [vmem:[%s1922_s13 + $0xe0] ss:$8 sps:$4 sm:$0xff]   ;;  %v1161_v21 = vlaneseq (!%p1459_p13) }
  0x62   : > { %1118 = vmatprep.subr.bf16.mxu1 %v1554_v22  ;;  %1099 = vmatprep.mubr.bf16.mxu0 %v1392_v48  ;;  %v1608_v62 = vld [vmem:[%s1922_s13 + $0x1e4] ss:$8 sps:$4 sm:$0xff]   ;;  %v1611_v0 = vld [vmem:[%s1922_s13 + $0x1e0] ss:$8 sps:$4 sm:$0xff]   ;;  %v1612_v1 = vld [vmem:[%s1922_s13 + $0xf4] ss:$8 sps:$4 sm:$0xff]  }
  0x63   : > { %1140 = vmatprep.mubr.bf16.mxu1 %v1394_v52  ;;  %v1614_v2 = vld [vmem:[%s1922_s13 + $0x1f4] ss:$8 sps:$4 sm:$0xff]   ;;  %v1616_v3 = vld [vmem:[%s1922_s13 + $0xf0] ss:$8 sps:$4 sm:$0xff]   ;;  %v1162_v22 = vshrl.u32 (!%p1459_p13), %v1161_v21, 7 }
  0x64   : > { %1078 = vmatpush1.bf16.msra.mxu0 %v1556_v23  ;;  %v1617_v4 = vld [vmem:[%s1922_s13 + $0x1f0] ss:$8 sps:$4 sm:$0xff]  }
  0x65   : > { %1119 = vmatpush1.bf16.msra.mxu1 %v1557_v24  ;;  %1079 = vmatprep.subr.bf16.mxu0 %v1558_v25  ;;  %v665_v8 = vld [vmem:[#allocation2] sm:$0xff]  ;;  %v666_v12 = vld [vmem:[#allocation2 + $0x8] sm:$0xff]  ;;  %v1163_v25 = vsub.s32 (!%p1459_p13), 0, %v1162_v22 }
  0x66   : > { %1120 = vmatprep.subr.bf16.mxu1 %v1560_v26  ;;  %v1159_v23 = vld [vmem:[%s634_s15] sm:$0x3] (!%p1459_p13)  ;;  %v1167_v26 = vsub.s32 (!%p1459_p13), 1, %v1162_v22 }
  0x67   : > { %v1173_v24 = vld [vmem:[%s643_s18] sm:$0x3] (!%p1459_p13) }
  0x68   : > { %1080 = vmatpush1.bf16.msra.mxu0 %v1562_v27 }
  0x69   : > { %1121 = vmatpush1.bf16.msra.mxu1 %v1563_v28  ;;  %1081 = vmatprep.subr.bf16.mxu0 %v1564_v29  ;;  %v1164_v29 = vrot.slane (!%p1459_p13), %v1159_v23, %v1163_v25 }
  0x6a   : > { %1122 = vmatprep.subr.bf16.mxu1 %v1566_v30  ;;  %v1168_v30 = vrot.slane (!%p1459_p13), %v1159_v23, %v1167_v26 }
  0x6c   : > { %1082 = vmatpush1.bf16.msra.mxu0 %v1568_v31  ;;  %v1178_v31 = vrot.slane (!%p1459_p13), %v1173_v24, %v1163_v25 }
  0x6d   : > { %1123 = vmatpush1.bf16.msra.mxu1 %v1569_v32  ;;  %1083 = vmatprep.subr.bf16.mxu0 %v1570_v33  ;;  %v1182_v32 = vrot.slane (!%p1459_p13), %v1173_v24, %v1167_v26 }
  0x6e   : > { %1124 = vmatprep.subr.bf16.mxu1 %v1572_v34 }
  0x70   : > { %1084 = vmatpush1.bf16.msra.mxu0 %v1574_v35 }
  0x71   : > { %1125 = vmatpush1.bf16.msra.mxu1 %v1575_v36  ;;  %1085 = vmatprep.subr.bf16.mxu0 %v1576_v37 }
  0x72   : > { %1126 = vmatprep.subr.bf16.mxu1 %v1578_v38 }
  0x74   : > { %1086 = vmatpush1.bf16.msra.mxu0 %v1580_v39 }
  0x75   : > { %1127 = vmatpush1.bf16.msra.mxu1 %v1581_v40  ;;  %1087 = vmatprep.subr.bf16.mxu0 %v1582_v41 }
  0x76   : > { %1128 = vmatprep.subr.bf16.mxu1 %v1584_v42 }
  0x78   : > { %1088 = vmatpush1.bf16.msra.mxu0 %v1586_v43 }
  0x79   : > { %1129 = vmatpush1.bf16.msra.mxu1 %v1587_v44  ;;  %1089 = vmatprep.subr.bf16.mxu0 %v1588_v45 }
  0x7a   : > { %1130 = vmatprep.subr.bf16.mxu1 %v1590_v46 }
  0x7c   : > { %1090 = vmatpush1.bf16.msra.mxu0 %v1592_v50 }
  0x7d   : > { %1131 = vmatpush1.bf16.msra.mxu1 %v1593_v51  ;;  %1091 = vmatprep.subr.bf16.mxu0 %v1594_v53 }
  0x7e   : > { %1132 = vmatprep.subr.bf16.mxu1 %v1596_v54 }
  0x80   : > { %1092 = vmatpush1.bf16.msra.mxu0 %v1598_v55 }
  0x81   : > { %1133 = vmatpush1.bf16.msra.mxu1 %v1599_v56  ;;  %1093 = vmatprep.subr.bf16.mxu0 %v1600_v57 }
  0x82   : > { %1134 = vmatprep.subr.bf16.mxu1 %v1602_v58 }
  0x84   : > { %1094 = vmatpush1.bf16.msra.mxu0 %v1604_v59 }
  0x85   : > { %1135 = vmatpush1.bf16.msra.mxu1 %v1605_v60  ;;  %1095 = vmatprep.subr.bf16.mxu0 %v1606_v61 }
  0x86   : > { %1136 = vmatprep.subr.bf16.mxu1 %v1608_v62 }
  0x88   : > { %1096 = vmatpush1.bf16.msra.mxu0 %v1610_v63 }
  0x89   : > { %1137 = vmatpush1.bf16.msra.mxu1 %v1611_v0  ;;  %1097 = vmatprep.subr.bf16.mxu0 %v1612_v1 }
  0x8a   : > { %1138 = vmatprep.subr.bf16.mxu1 %v1614_v2 }
  0x8c   : > { %1098 = vmatpush1.bf16.msra.mxu0 %v1616_v3 }
  0x8d   : > { %1139 = vmatpush1.bf16.msra.mxu1 %v1617_v4 }
  0x8f   : > { %1100 = vmatmul.mubr.bf16.vlgmr.msra.gmra.mrb[0].mxu0 %v1391_v5 }
  0x90   : > { %1141 = vmatmul.mubr.bf16.vlgmr.msra.gmra.mrb[0].mxu1 %v1393_v6 }
 0x162   : > { %v1101_v7 = vpop.f32.mrb[0].mxu0 }
 0x163   : > { %v1142_v9 = vpop.f32.mrb[0].mxu1  ;;  %v1103_v11 = vpop.f32.mrb[1].mxu0  ;;  %1156 = sbr.rel (%p1459_p13) target bundleno = 379 (0x17b), region = 82 }
 0x164   : > { %v1143_v10 = vadd.f32 %v1142_v9, %v1101_v7  ;;  %v1144_v13 = vpop.f32.mrb[1].mxu1  ;;  %v1105_v15 = vpop.f32.mrb[2].mxu0 }
 0x165   : > { %v1145_v14 = vadd.f32 %v1144_v13, %v1103_v11  ;;  %v1146_v16 = vpop.f32.mrb[2].mxu1  ;;  %v1106_v18 = vpop.f32.mrb[3].mxu0 }
 0x166   : > { %v1149_v17 = vadd.f32 %v1143_v10, %v665_v8  ;;  %v1147_v19 = vpop.f32.mrb[3].mxu1 }
 0x167   : > { %v1150_v20 = vadd.f32 %v1145_v14, %v666_v12 }
 0x168   : > { %1151 = vst [vmem:[#allocation2] sm:$0xff] %v1149_v17 }
 0x169   : > { %1152 = vst [vmem:[#allocation2 + $0x8] sm:$0xff] %v1150_v20 }
 0x16f   : > { %v1157_v27 = vld [vmem:[#allocation2] sm:$0xff] }
 0x170   : > { %v1158_v28 = vld [vmem:[#allocation2 + $0x8] sm:$0xff]  ;;  %v1171_v33 = vmul.f32 %v1164_v29, %v1157_v27 }
 0x171   : > { %v1172_v34 = vmul.f32 %v1168_v30, %v1158_v28 }
 0x172   : > { %v1185_v35 = vadd.f32 %v1178_v31, %v1171_v33 }
 0x173   : > { %v1186_v36 = vadd.f32 %v1182_v32, %v1172_v34 }
 0x174   : > { %vm1187_vm0 = vcmp.gt.f32.partialorder %v1185_v35, 0.0  ;;  %v1189_v37 = vmul.f32 0.2, %v1185_v35 }
 0x175   : > { %vm1188_vm1 = vcmp.gt.f32.partialorder %v1186_v36, 0.0  ;;  %v1190_v38 = vmul.f32 0.2, %v1186_v36 }
 0x176   : > { %v1191_v39 = vsel %vm1187_vm0, %v1185_v35, %v1189_v37 }
 0x177   : > { %v1192_v40 = vsel %vm1188_vm1, %v1186_v36, %v1190_v38 }
 0x178   : > { %v1464_v41 = vpack.c.bf16 %v1192_v40, %v1191_v39 }
 0x17a   : > { %1201 = vst [vmem:[%s1920_s12] sm:$0xff] %v1464_v41 }
 0x17b PF: > { %s14_s21 = sadd.s32 1, %s1676_s21   ;;  %s2029_s15 = smov %s1656_s16 }
 0x17c   : > { %p11_p0 = scmp.ge.s32.totalorder %s14_s21, 18   ;;  %s2030_s16 = smov %s1755_s28 }
 0x17d   : > { %s2031_s17 = smov %s1668_s19  ;;  %s2032_s18 = smov %s1672_s20 }
 0x17e   : > { %s2033_s19 = smov %s2036_s22  ;;  %s2034_s20 = smov %s2040_s23 }
 0x17f   :  { %13 = sbr.rel (!%p11_p0) target bundleno = 4 (0x4), region = 126 }

// kernel: _lambda_.12
= control target key start
LH: loop header
LB: loop body
LE: loop exit
PB: predicated region body
PF: predicated region fallthrough
CT: control target
= control target key end

     0   :  { %s1405_s15 = smov 0   ;;  %s1407_s16 = smov 0   ;;  %s1550_s0 = inlined_call_operand.vmem [shape: bf16[4,8,2048], index: 0, kind: input, shape index: {}]   ;;  %s1551_s1 = inlined_call_operand.vmem [shape: bf16[4,2048,256], index: 1, kind: input, shape index: {}]   ;;  %s1552_s2 = inlined_call_operand.vmem [shape: f32[4,1,256], index: 2, kind: input, shape index: {}]   ;;  %s1553_s3 = inlined_call_operand.vmem [shape: f32[4,1,256], index: 3, kind: input, shape index: {}]   ;;  %s1554_s4 = inlined_call_operand.vmem [shape: bf16[4,8,256], index: 4, kind: output, shape index: {}]  }
   0x1   :  { %s1409_s17 = smov 0   ;;  %s1411_s18 = smov 0  }
   0x2   :  { %s1413_s19 = smov 0  }
   0x3 LB: > { %s29_s20 = sadd.s32 1, %s1369_s17  ;;  %s40_s21 = sadd.s32 1, %s1373_s18  ;;  %s1377_s19 = sphi %s1413_s19, %s14_s19   ;;  %s1373_s18 = sphi %s1411_s18, %s1558_s18   ;;  %s1369_s17 = sphi %s1409_s17, %s1557_s17   ;;  %s1365_s16 = sphi %s1407_s16, %s1556_s16   ;;  %s1361_s15 = sphi %s1405_s15, %s1555_s15  }
   0x4   : > { %p30_p0 = scmp.ge.s32.totalorder %s29_s20, 4  ;;  %p1111_p1 = scmp.ge.s32.totalorder %s1377_s19, 1 }
   0x5   : > { %p262_p2 = scmp.lt.s32.totalorder %s1377_s19, 17 }
   0x6   : > { %s1560_s20 = smov (%p30_p0, %s29_s20), 0  ;;  %s1562_s21 = smov (!%p30_p0, %s40_s21), %s1373_s18 }
   0x7   : > { %p263_p3 = pnand %p1111_p1, %p262_p2  ;;  %p42_p4 = scmp.ge.s32.totalorder %s1562_s21, 4 }
   0x8   : > { %s1112_s22 = sshll.u32 (!%p263_p3), %s1361_s15, 2  ;;  %p335_p5 = scmp.lt.s32.totalorder (!%p263_p3), %s1365_s16, 3 }
   0x9   : > { %s1564_s21 = smov (%p42_p4, %s1562_s21), 0  ;;  %266 = sbr.rel (%p263_p3) target bundleno = 330 (0x14a), region = 36 }
   0xa   : > { %p339_p6 = scmp.lt.s32.totalorder (!%p263_p3), %s1112_s22, 15  ;;  %s1115_s23 = sshll.u32 (!%p263_p3), %s1361_s15, 6 }
   0xb   : > { %p352_p7 = scmp.lt.s32.totalorder (!%p263_p3), %s1115_s23, 255  ;;  %p1123_p8 = scmp.ne.s32.totalorder (!%p263_p3), %s1361_s15, 0 }
  0x10   : > { %s1566_s16 = smov (!%p335_p5, %s1365_s16), 3  ;;  %s1568_s22 = smov (!%p339_p6, %s1112_s22), 15 }
  0x11   : > { %s1113_s24 = sshll.u32 %s1566_s16, 4  ;;  %s1117_s26 = sshll.u32 %s1566_s16, 9  ;;  %v1379_v0 = vmov (!%p1123_p8), 0.0  }
  0x12   : > { %s344_s25 = sadd.s32 %s1113_s24, %s1568_s22  ;;  %s1119_s28 = sshll.u32 %s1566_s16, 1  ;;  %400 = vst [vmem:[#allocation2] sm:$0xff] (!%p1123_p8), %v1379_v0  ;;  %401 = vst [vmem:[#allocation2 + $0x8] sm:$0xff] (!%p1123_p8), %v1379_v0 }
  0x13   : > { %s1114_s27 = sshll.u32 %s344_s25, 2  ;;  %s1447_s8 = scalar_lea.vmem %s1552_s2, %s1119_s28 }
  0x14   : > { %s1442_s5 = scalar_lea.vmem %s1550_s0, %s1114_s27  ;;  %s1570_s23 = smov (!%p352_p7, %s1115_s23), 255 }
  0x15   : > { %s1452_s11 = scalar_lea.vmem %s1553_s3, %s1119_s28  ;;  %s1196_s12 = sshll.u32 %s1566_s16, 3 }
  0x16   : > { %s1116_s13 = sshll.u32 %s1570_s23, 1  ;;  %s1457_s24 = scalar_lea.vmem %s1554_s4, %s1196_s12 }
  0x17   : > { %s359_s25 = sadd.s32 %s1117_s26, %s1116_s13  ;;  %399 = sbr.rel (%p1123_p8) target bundleno = 30 (0x1e), region = 40 }
  0x18   : > { %s1118_s27 = sshll.u32 %s359_s25, 2 }
  0x19   : > { %s1462_s6 = scalar_lea.vmem %s1551_s1, %s1118_s27 }
  0x1e PF: > { %v1239_v1 = vld [vmem:[%s1462_s6 + $0x4] ss:$8 sps:$4 sm:$0xff]   ;;  %v1243_v3 = vld [vmem:[%s1462_s6] ss:$8 sps:$4 sm:$0xff]   ;;  %v1245_v5 = vld [vmem:[%s1462_s6 + $0x14] ss:$8 sps:$4 sm:$0xff]  }
  0x1f   : > { %v1241_v2 = vld [vmem:[%s1462_s6 + $0x104] ss:$8 sps:$4 sm:$0xff]   ;;  %804 = vmatprep.subr.bf16.mxu0 %v1239_v1  ;;  %v1244_v4 = vld [vmem:[%s1462_s6 + $0x100] ss:$8 sps:$4 sm:$0xff]   ;;  %v1247_v6 = vld [vmem:[%s1462_s6 + $0x114] ss:$8 sps:$4 sm:$0xff]  }
  0x20   : > { %845 = vmatprep.subr.bf16.mxu1 %v1241_v2  ;;  %805 = vmatpush1.bf16.msra.mxu0 %v1243_v3  ;;  %v1249_v7 = vld [vmem:[%s1462_s6 + $0x10] ss:$8 sps:$4 sm:$0xff]   ;;  %v1251_v9 = vld [vmem:[%s1462_s6 + $0x24] ss:$8 sps:$4 sm:$0xff]   ;;  %v1255_v11 = vld [vmem:[%s1462_s6 + $0x20] ss:$8 sps:$4 sm:$0xff]  }
  0x21   : > { %846 = vmatpush1.bf16.msra.mxu1 %v1244_v4  ;;  %806 = vmatprep.subr.bf16.mxu0 %v1245_v5  ;;  %v1250_v8 = vld [vmem:[%s1462_s6 + $0x110] ss:$8 sps:$4 sm:$0xff]   ;;  %v1253_v10 = vld [vmem:[%s1462_s6 + $0x124] ss:$8 sps:$4 sm:$0xff]   ;;  %v1256_v12 = vld [vmem:[%s1462_s6 + $0x120] ss:$8 sps:$4 sm:$0xff]  }
  0x22   : > { %847 = vmatprep.subr.bf16.mxu1 %v1247_v6  ;;  %v1257_v13 = vld [vmem:[%s1462_s6 + $0x34] ss:$8 sps:$4 sm:$0xff]   ;;  %v1261_v15 = vld [vmem:[%s1462_s6 + $0x30] ss:$8 sps:$4 sm:$0xff]   ;;  %v1263_v17 = vld [vmem:[%s1462_s6 + $0x44] ss:$8 sps:$4 sm:$0xff]  }
  0x23   : > { %v1259_v14 = vld [vmem:[%s1462_s6 + $0x134] ss:$8 sps:$4 sm:$0xff]   ;;  %v1262_v16 = vld [vmem:[%s1462_s6 + $0x130] ss:$8 sps:$4 sm:$0xff]   ;;  %v1265_v18 = vld [vmem:[%s1462_s6 + $0x144] ss:$8 sps:$4 sm:$0xff]  }
  0x24   : > { %807 = vmatpush1.bf16.msra.mxu0 %v1249_v7  ;;  %v1267_v19 = vld [vmem:[%s1462_s6 + $0x40] ss:$8 sps:$4 sm:$0xff]   ;;  %v1269_v21 = vld [vmem:[%s1462_s6 + $0x54] ss:$8 sps:$4 sm:$0xff]   ;;  %v1273_v23 = vld [vmem:[%s1462_s6 + $0x50] ss:$8 sps:$4 sm:$0xff]  }
  0x25   : > { %848 = vmatpush1.bf16.msra.mxu1 %v1250_v8  ;;  %808 = vmatprep.subr.bf16.mxu0 %v1251_v9  ;;  %v1268_v20 = vld [vmem:[%s1462_s6 + $0x140] ss:$8 sps:$4 sm:$0xff]   ;;  %v1271_v22 = vld [vmem:[%s1462_s6 + $0x154] ss:$8 sps:$4 sm:$0xff]   ;;  %v1274_v24 = vld [vmem:[%s1462_s6 + $0x150] ss:$8 sps:$4 sm:$0xff]  }
  0x26   : > { %849 = vmatprep.subr.bf16.mxu1 %v1253_v10  ;;  %v1275_v25 = vld [vmem:[%s1462_s6 + $0x64] ss:$8 sps:$4 sm:$0xff]   ;;  %v1279_v27 = vld [vmem:[%s1462_s6 + $0x60] ss:$8 sps:$4 sm:$0xff]   ;;  %v1281_v29 = vld [vmem:[%s1462_s6 + $0x74] ss:$8 sps:$4 sm:$0xff]  }
  0x27   : > { %v1277_v26 = vld [vmem:[%s1462_s6 + $0x164] ss:$8 sps:$4 sm:$0xff]   ;;  %v1280_v28 = vld [vmem:[%s1462_s6 + $0x160] ss:$8 sps:$4 sm:$0xff]   ;;  %v1283_v30 = vld [vmem:[%s1462_s6 + $0x174] ss:$8 sps:$4 sm:$0xff]  }
  0x28   : > { %809 = vmatpush1.bf16.msra.mxu0 %v1255_v11  ;;  %v1285_v31 = vld [vmem:[%s1462_s6 + $0x70] ss:$8 sps:$4 sm:$0xff]   ;;  %v1287_v33 = vld [vmem:[%s1462_s6 + $0x84] ss:$8 sps:$4 sm:$0xff]   ;;  %v1291_v35 = vld [vmem:[%s1462_s6 + $0x80] ss:$8 sps:$4 sm:$0xff]  }
  0x29   : > { %850 = vmatpush1.bf16.msra.mxu1 %v1256_v12  ;;  %810 = vmatprep.subr.bf16.mxu0 %v1257_v13  ;;  %v1286_v32 = vld [vmem:[%s1462_s6 + $0x170] ss:$8 sps:$4 sm:$0xff]   ;;  %v1289_v34 = vld [vmem:[%s1462_s6 + $0x184] ss:$8 sps:$4 sm:$0xff]   ;;  %v1292_v36 = vld [vmem:[%s1462_s6 + $0x180] ss:$8 sps:$4 sm:$0xff]  }
  0x2a   : > { %851 = vmatprep.subr.bf16.mxu1 %v1259_v14  ;;  %v1293_v37 = vld [vmem:[%s1462_s6 + $0x94] ss:$8 sps:$4 sm:$0xff]   ;;  %v1297_v39 = vld [vmem:[%s1462_s6 + $0x90] ss:$8 sps:$4 sm:$0xff]   ;;  %v1299_v41 = vld [vmem:[%s1462_s6 + $0xa4] ss:$8 sps:$4 sm:$0xff]  }
  0x2b   : > { %v1295_v38 = vld [vmem:[%s1462_s6 + $0x194] ss:$8 sps:$4 sm:$0xff]   ;;  %v1298_v40 = vld [vmem:[%s1462_s6 + $0x190] ss:$8 sps:$4 sm:$0xff]   ;;  %v1301_v42 = vld [vmem:[%s1462_s6 + $0x1a4] ss:$8 sps:$4 sm:$0xff]  }
  0x2c   : > { %811 = vmatpush1.bf16.msra.mxu0 %v1261_v15  ;;  %v1303_v43 = vld [vmem:[%s1462_s6 + $0xa0] ss:$8 sps:$4 sm:$0xff]   ;;  %v1305_v45 = vld [vmem:[%s1462_s6 + $0xb4] ss:$8 sps:$4 sm:$0xff]   ;;  %v1309_v50 = vld [vmem:[%s1462_s6 + $0xb0] ss:$8 sps:$4 sm:$0xff]  }
  0x2d   : > { %852 = vmatpush1.bf16.msra.mxu1 %v1262_v16  ;;  %812 = vmatprep.subr.bf16.mxu0 %v1263_v17  ;;  %v1304_v44 = vld [vmem:[%s1462_s6 + $0x1a0] ss:$8 sps:$4 sm:$0xff]   ;;  %v1307_v46 = vld [vmem:[%s1462_s6 + $0x1b4] ss:$8 sps:$4 sm:$0xff]   ;;  %v1310_v51 = vld [vmem:[%s1462_s6 + $0x1b0] ss:$8 sps:$4 sm:$0xff]  }
  0x2e   : > { %853 = vmatprep.subr.bf16.mxu1 %v1265_v18  ;;  %v404_v47 = vld [vmem:[%s1442_s5] sm:$0xff]  ;;  %v405_v49 = vld [vmem:[%s1442_s5 + $0x8] sm:$0xff]  ;;  %v1317_v57 = vld [vmem:[%s1462_s6 + $0xd4] ss:$8 sps:$4 sm:$0xff]   ;;  %p1192_p9 = scmp.ne.s32.totalorder %s1361_s15, 3 }
  0x2f   : > { %v1125_v48 = vcombine.high %v404_v47, %v404_v47  ;;  %v1127_v52 = vcombine.high %v405_v49, %v405_v49  ;;  %v1311_v53 = vld [vmem:[%s1462_s6 + $0xc4] ss:$8 sps:$4 sm:$0xff]   ;;  %v1315_v55 = vld [vmem:[%s1462_s6 + $0xc0] ss:$8 sps:$4 sm:$0xff]   ;;  %v1319_v58 = vld [vmem:[%s1462_s6 + $0x1d4] ss:$8 sps:$4 sm:$0xff]   ;;  %v1124_v5 = vcombine.low %v404_v47, %v404_v47  ;;  %v1126_v6 = vcombine.low %v405_v49, %v405_v49 }
  0x30   : > { %813 = vmatpush1.bf16.msra.mxu0 %v1267_v19  ;;  %v1313_v54 = vld [vmem:[%s1462_s6 + $0x1c4] ss:$8 sps:$4 sm:$0xff]   ;;  %v1316_v56 = vld [vmem:[%s1462_s6 + $0x1c0] ss:$8 sps:$4 sm:$0xff]   ;;  %v1321_v59 = vld [vmem:[%s1462_s6 + $0xd0] ss:$8 sps:$4 sm:$0xff]  }
  0x31   : > { %854 = vmatpush1.bf16.msra.mxu1 %v1268_v20  ;;  %814 = vmatprep.subr.bf16.mxu0 %v1269_v21  ;;  %v1322_v60 = vld [vmem:[%s1462_s6 + $0x1d0] ss:$8 sps:$4 sm:$0xff]   ;;  %v1323_v61 = vld [vmem:[%s1462_s6 + $0xe4] ss:$8 sps:$4 sm:$0xff]   ;;  %v1327_v63 = vld [vmem:[%s1462_s6 + $0xe0] ss:$8 sps:$4 sm:$0xff]   ;;  %v898_v21 = vlaneseq (!%p1192_p9) }
  0x32   : > { %855 = vmatprep.subr.bf16.mxu1 %v1271_v22  ;;  %836 = vmatprep.mubr.bf16.mxu0 %v1125_v48  ;;  %v1325_v62 = vld [vmem:[%s1462_s6 + $0x1e4] ss:$8 sps:$4 sm:$0xff]   ;;  %v1328_v0 = vld [vmem:[%s1462_s6 + $0x1e0] ss:$8 sps:$4 sm:$0xff]   ;;  %v1329_v1 = vld [vmem:[%s1462_s6 + $0xf4] ss:$8 sps:$4 sm:$0xff]  }
  0x33   : > { %877 = vmatprep.mubr.bf16.mxu1 %v1127_v52  ;;  %v1331_v2 = vld [vmem:[%s1462_s6 + $0x1f4] ss:$8 sps:$4 sm:$0xff]   ;;  %v1333_v3 = vld [vmem:[%s1462_s6 + $0xf0] ss:$8 sps:$4 sm:$0xff]   ;;  %v402_v8 = vld [vmem:[#allocation2] sm:$0xff]  ;;  %v899_v22 = vshrl.u32 (!%p1192_p9), %v898_v21, 7 }
  0x34   : > { %815 = vmatpush1.bf16.msra.mxu0 %v1273_v23  ;;  %v1334_v4 = vld [vmem:[%s1462_s6 + $0x1f0] ss:$8 sps:$4 sm:$0xff]   ;;  %v403_v12 = vld [vmem:[#allocation2 + $0x8] sm:$0xff]  ;;  %v896_v23 = vld [vmem:[%s1447_s8] sm:$0x3] (!%p1192_p9) }
  0x35   : > { %856 = vmatpush1.bf16.msra.mxu1 %v1274_v24  ;;  %816 = vmatprep.subr.bf16.mxu0 %v1275_v25  ;;  %v910_v24 = vld [vmem:[%s1452_s11] sm:$0x3] (!%p1192_p9)  ;;  %v900_v25 = vsub.s32 (!%p1192_p9), 0, %v899_v22 }
  0x36   : > { %857 = vmatprep.subr.bf16.mxu1 %v1277_v26  ;;  %v904_v26 = vsub.s32 (!%p1192_p9), 1, %v899_v22 }
  0x38   : > { %817 = vmatpush1.bf16.msra.mxu0 %v1279_v27 }
  0x39   : > { %858 = vmatpush1.bf16.msra.mxu1 %v1280_v28  ;;  %818 = vmatprep.subr.bf16.mxu0 %v1281_v29  ;;  %v901_v29 = vrot.slane (!%p1192_p9), %v896_v23, %v900_v25 }
  0x3a   : > { %859 = vmatprep.subr.bf16.mxu1 %v1283_v30  ;;  %v905_v30 = vrot.slane (!%p1192_p9), %v896_v23, %v904_v26 }
  0x3c   : > { %819 = vmatpush1.bf16.msra.mxu0 %v1285_v31  ;;  %v915_v31 = vrot.slane (!%p1192_p9), %v910_v24, %v900_v25 }
  0x3d   : > { %860 = vmatpush1.bf16.msra.mxu1 %v1286_v32  ;;  %820 = vmatprep.subr.bf16.mxu0 %v1287_v33  ;;  %v919_v32 = vrot.slane (!%p1192_p9), %v910_v24, %v904_v26 }
  0x3e   : > { %861 = vmatprep.subr.bf16.mxu1 %v1289_v34 }
  0x40   : > { %821 = vmatpush1.bf16.msra.mxu0 %v1291_v35 }
  0x41   : > { %862 = vmatpush1.bf16.msra.mxu1 %v1292_v36  ;;  %822 = vmatprep.subr.bf16.mxu0 %v1293_v37 }
  0x42   : > { %863 = vmatprep.subr.bf16.mxu1 %v1295_v38 }
  0x44   : > { %823 = vmatpush1.bf16.msra.mxu0 %v1297_v39 }
  0x45   : > { %864 = vmatpush1.bf16.msra.mxu1 %v1298_v40  ;;  %824 = vmatprep.subr.bf16.mxu0 %v1299_v41 }
  0x46   : > { %865 = vmatprep.subr.bf16.mxu1 %v1301_v42 }
  0x48   : > { %825 = vmatpush1.bf16.msra.mxu0 %v1303_v43 }
  0x49   : > { %866 = vmatpush1.bf16.msra.mxu1 %v1304_v44  ;;  %826 = vmatprep.subr.bf16.mxu0 %v1305_v45 }
  0x4a   : > { %867 = vmatprep.subr.bf16.mxu1 %v1307_v46 }
  0x4c   : > { %827 = vmatpush1.bf16.msra.mxu0 %v1309_v50 }
  0x4d   : > { %868 = vmatpush1.bf16.msra.mxu1 %v1310_v51  ;;  %828 = vmatprep.subr.bf16.mxu0 %v1311_v53 }
  0x4e   : > { %869 = vmatprep.subr.bf16.mxu1 %v1313_v54 }
  0x50   : > { %829 = vmatpush1.bf16.msra.mxu0 %v1315_v55 }
  0x51   : > { %870 = vmatpush1.bf16.msra.mxu1 %v1316_v56  ;;  %830 = vmatprep.subr.bf16.mxu0 %v1317_v57 }
  0x52   : > { %871 = vmatprep.subr.bf16.mxu1 %v1319_v58 }
  0x54   : > { %831 = vmatpush1.bf16.msra.mxu0 %v1321_v59 }
  0x55   : > { %872 = vmatpush1.bf16.msra.mxu1 %v1322_v60  ;;  %832 = vmatprep.subr.bf16.mxu0 %v1323_v61 }
  0x56   : > { %873 = vmatprep.subr.bf16.mxu1 %v1325_v62 }
  0x58   : > { %833 = vmatpush1.bf16.msra.mxu0 %v1327_v63 }
  0x59   : > { %874 = vmatpush1.bf16.msra.mxu1 %v1328_v0  ;;  %834 = vmatprep.subr.bf16.mxu0 %v1329_v1 }
  0x5a   : > { %875 = vmatprep.subr.bf16.mxu1 %v1331_v2 }
  0x5c   : > { %835 = vmatpush1.bf16.msra.mxu0 %v1333_v3 }
  0x5d   : > { %876 = vmatpush1.bf16.msra.mxu1 %v1334_v4 }
  0x5f   : > { %837 = vmatmul.mubr.bf16.vlgmr.msra.gmra.mrb[0].mxu0 %v1124_v5 }
  0x60   : > { %878 = vmatmul.mubr.bf16.vlgmr.msra.gmra.mrb[0].mxu1 %v1126_v6 }
 0x132   : > { %v838_v7 = vpop.f32.mrb[0].mxu0 }
 0x133   : > { %v879_v9 = vpop.f32.mrb[0].mxu1  ;;  %v840_v11 = vpop.f32.mrb[1].mxu0  ;;  %893 = sbr.rel (%p1192_p9) target bundleno = 330 (0x14a), region = 44 }
 0x134   : > { %v880_v10 = vadd.f32 %v879_v9, %v838_v7  ;;  %v881_v13 = vpop.f32.mrb[1].mxu1  ;;  %v842_v15 = vpop.f32.mrb[2].mxu0 }
 0x135   : > { %v882_v14 = vadd.f32 %v881_v13, %v840_v11  ;;  %v883_v16 = vpop.f32.mrb[2].mxu1  ;;  %v843_v18 = vpop.f32.mrb[3].mxu0 }
 0x136   : > { %v886_v17 = vadd.f32 %v880_v10, %v402_v8  ;;  %v884_v19 = vpop.f32.mrb[3].mxu1 }
 0x137   : > { %v887_v20 = vadd.f32 %v882_v14, %v403_v12 }
 0x138   : > { %888 = vst [vmem:[#allocation2] sm:$0xff] %v886_v17 }
 0x139   : > { %889 = vst [vmem:[#allocation2 + $0x8] sm:$0xff] %v887_v20 }
 0x13f   : > { %v894_v27 = vld [vmem:[#allocation2] sm:$0xff] }
 0x140   : > { %v895_v28 = vld [vmem:[#allocation2 + $0x8] sm:$0xff]  ;;  %v908_v33 = vmul.f32 %v901_v29, %v894_v27 }
 0x141   : > { %v909_v34 = vmul.f32 %v905_v30, %v895_v28 }
 0x142   : > { %v922_v35 = vadd.f32 %v915_v31, %v908_v33 }
 0x143   : > { %v923_v36 = vadd.f32 %v919_v32, %v909_v34 }
 0x144   : > { %v924_v37 = vmax.f32 %v922_v35, 0.0 }
 0x145   : > { %v925_v38 = vmax.f32 %v923_v36, 0.0 }
 0x147   : > { %v1197_v39 = vpack.c.bf16 %v925_v38, %v924_v37 }
 0x149   : > { %934 = vst [vmem:[%s1457_s24] sm:$0xff] %v1197_v39 }
 0x14a PF: > { %s14_s19 = sadd.s32 1, %s1377_s19   ;;  %s1555_s15 = smov %s1369_s17 }
 0x14b   : > { %p11_p10 = scmp.ge.s32.totalorder %s14_s19, 18   ;;  %s1556_s16 = smov %s1373_s18 }
 0x14c   : > { %s1557_s17 = smov %s1560_s20  ;;  %s1558_s18 = smov %s1564_s21 }
 0x14d   :  { %13 = sbr.rel (!%p11_p10) target bundleno = 3 (0x3), region = 83 }

// kernel: _lambda_.13
= control target key start
LH: loop header
LB: loop body
LE: loop exit
PB: predicated region body
PF: predicated region fallthrough
CT: control target
= control target key end

     0   :  { %s1138_s15 = smov 0   ;;  %s1140_s16 = smov 0   ;;  %s1262_s0 = inlined_call_operand.vmem [shape: bf16[4,8,1024], index: 0, kind: input, shape index: {}]   ;;  %s1263_s1 = inlined_call_operand.vmem [shape: bf16[4,1024,128], index: 1, kind: input, shape index: {}]   ;;  %s1264_s2 = inlined_call_operand.vmem [shape: f32[4,1,128], index: 2, kind: input, shape index: {}]   ;;  %s1265_s3 = inlined_call_operand.vmem [shape: f32[4,1,128], index: 3, kind: input, shape index: {}]   ;;  %s1266_s4 = inlined_call_operand.vmem [shape: bf16[4,8,128], index: 4, kind: output, shape index: {}]  }
   0x1   :  { %s1142_s17 = smov 0   ;;  %s1144_s18 = smov 0  }
   0x2   :  { %s1146_s19 = smov 0  }
   0x3 LB: > { %s29_s20 = sadd.s32 1, %s1102_s17  ;;  %s40_s21 = sadd.s32 1, %s1106_s18  ;;  %s1110_s19 = sphi %s1146_s19, %s14_s19   ;;  %s1106_s18 = sphi %s1144_s18, %s1270_s18   ;;  %s1102_s17 = sphi %s1142_s17, %s1269_s17   ;;  %s1098_s16 = sphi %s1140_s16, %s1268_s16   ;;  %s1094_s15 = sphi %s1138_s15, %s1267_s15  }
   0x4   : > { %p30_p0 = scmp.ge.s32.totalorder %s29_s20, 2  ;;  %p901_p1 = scmp.ge.s32.totalorder %s1110_s19, 1 }
   0x5   : > { %p253_p2 = scmp.lt.s32.totalorder %s1110_s19, 9 }
   0x6   : > { %s1272_s20 = smov (%p30_p0, %s29_s20), 0  ;;  %s1274_s21 = smov (!%p30_p0, %s40_s21), %s1106_s18 }
   0x7   : > { %p254_p3 = pnand %p901_p1, %p253_p2  ;;  %p42_p4 = scmp.ge.s32.totalorder %s1274_s21, 4 }
   0x8   : > { %s902_s22 = sshll.u32 (!%p254_p3), %s1094_s15, 2  ;;  %p317_p5 = scmp.lt.s32.totalorder (!%p254_p3), %s1098_s16, 3 }
   0x9   : > { %s1276_s21 = smov (%p42_p4, %s1274_s21), 0  ;;  %257 = sbr.rel (%p254_p3) target bundleno = 301 (0x12d), region = 36 }
   0xa   : > { %p321_p6 = scmp.lt.s32.totalorder (!%p254_p3), %s902_s22, 7  ;;  %s905_s23 = sshll.u32 (!%p254_p3), %s1094_s15, 6 }
   0xb   : > { %p333_p7 = scmp.lt.s32.totalorder (!%p254_p3), %s905_s23, 127  ;;  %p909_p8 = scmp.ne.s32.totalorder (!%p254_p3), %s1094_s15, 0 }
  0x10   : > { %s1278_s16 = smov (!%p317_p5, %s1098_s16), 3  ;;  %s1280_s22 = smov (!%p321_p6, %s902_s22), 7 }
  0x11   : > { %s903_s24 = sshll.u32 %s1278_s16, 3  ;;  %s906_s26 = sshll.u32 %s1278_s16, 7  ;;  %v1112_v0 = vmov (!%p909_p8), 0.0  }
  0x12   : > { %s326_s25 = sadd.s32 %s903_s24, %s1280_s22  ;;  %s348_s30 = scalar_lea.vmem %s1264_s2, %s1278_s16  ;;  %370 = vst [vmem:[#allocation2] sm:$0xff] (!%p909_p8), %v1112_v0 }
  0x13   : > { %s904_s27 = sshll.u32 %s326_s25, 2  ;;  %s354_s10 = scalar_lea.vmem %s1265_s3, %s1278_s16 }
  0x14   : > { %s1183_s7 = scalar_lea.vmem %s1262_s0, %s904_s27  ;;  %s1282_s23 = smov (!%p333_p7, %s905_s23), 127 }
  0x15   : > { %s908_s11 = sshll.u32 %s1278_s16, 2  ;;  %s339_s12 = sadd.s32 %s906_s26, %s1282_s23 }
  0x16   : > { %s1193_s22 = scalar_lea.vmem %s1266_s4, %s908_s11  ;;  %s907_s24 = sshll.u32 %s339_s12, 2 }
  0x17   : > { %s1198_s29 = scalar_lea.vmem %s1263_s1, %s907_s24  ;;  %369 = sbr.rel (%p909_p8) target bundleno = 30 (0x1e), region = 40 }
  0x1e PF: > { %v1036_v1 = vld [vmem:[%s1198_s29 + $0x40] sm:$0xff]   ;;  %v1040_v5 = vld [vmem:[%s1198_s29 + $0x48] sm:$0xff]   ;;  %v1044_v9 = vld [vmem:[%s1198_s29 + $0x50] sm:$0xff]   ;;  %p946_p9 = scmp.ne.s32.totalorder %s1094_s15, 1 }
  0x1f   : > { %v1037_v2 = vld [vmem:[%s1198_s29 + $0xc0] sm:$0xff]   ;;  %951 = vmatprep.subr.bf16.mxu0 %v1036_v1  ;;  %v1041_v6 = vld [vmem:[%s1198_s29 + $0xc8] sm:$0xff]   ;;  %v1045_v10 = vld [vmem:[%s1198_s29 + $0xd0] sm:$0xff]  }
  0x20   : > { %v1038_v3 = vld [vmem:[%s1198_s29] sm:$0xff]   ;;  %973 = vmatprep.subr.bf16.mxu1 %v1037_v2  ;;  %v1042_v7 = vld [vmem:[%s1198_s29 + $0x8] sm:$0xff]   ;;  %v1046_v11 = vld [vmem:[%s1198_s29 + $0x10] sm:$0xff]  }
  0x21   : > { %v1039_v4 = vld [vmem:[%s1198_s29 + $0x80] sm:$0xff]   ;;  %952 = vmatpush3.bf16.msra.mxu0 %v1038_v3  ;;  %v1043_v8 = vld [vmem:[%s1198_s29 + $0x88] sm:$0xff]   ;;  %v1047_v12 = vld [vmem:[%s1198_s29 + $0x90] sm:$0xff]  }
  0x22   : > { %974 = vmatpush3.bf16.msra.mxu1 %v1039_v4  ;;  %953 = vmatprep.subr.bf16.mxu0 %v1040_v5  ;;  %v1048_v13 = vld [vmem:[%s1198_s29 + $0x58] sm:$0xff]   ;;  %v1052_v17 = vld [vmem:[%s1198_s29 + $0x60] sm:$0xff]   ;;  %v1056_v21 = vld [vmem:[%s1198_s29 + $0x68] sm:$0xff]  }
  0x23   : > { %975 = vmatprep.subr.bf16.mxu1 %v1041_v6  ;;  %v1049_v14 = vld [vmem:[%s1198_s29 + $0xd8] sm:$0xff]   ;;  %v1053_v18 = vld [vmem:[%s1198_s29 + $0xe0] sm:$0xff]   ;;  %v1057_v22 = vld [vmem:[%s1198_s29 + $0xe8] sm:$0xff]  }
  0x24   : > { %v1050_v15 = vld [vmem:[%s1198_s29 + $0x18] sm:$0xff]   ;;  %v1054_v19 = vld [vmem:[%s1198_s29 + $0x20] sm:$0xff]   ;;  %v1058_v23 = vld [vmem:[%s1198_s29 + $0x28] sm:$0xff]  }
  0x25   : > { %954 = vmatpush3.bf16.msra.mxu0 %v1042_v7  ;;  %v1051_v16 = vld [vmem:[%s1198_s29 + $0x98] sm:$0xff]   ;;  %v1055_v20 = vld [vmem:[%s1198_s29 + $0xa0] sm:$0xff]   ;;  %v1059_v24 = vld [vmem:[%s1198_s29 + $0xa8] sm:$0xff]  }
  0x26   : > { %976 = vmatpush3.bf16.msra.mxu1 %v1043_v8  ;;  %955 = vmatprep.subr.bf16.mxu0 %v1044_v9  ;;  %v1060_v25 = vld [vmem:[%s1198_s29 + $0x70] sm:$0xff]   ;;  %v1064_v29 = vld [vmem:[%s1198_s29 + $0x78] sm:$0xff]   ;;  %v372_v33 = vld [vmem:[%s1183_s7] sm:$0xff] }
  0x27   : > { %977 = vmatprep.subr.bf16.mxu1 %v1045_v10  ;;  %v1061_v26 = vld [vmem:[%s1198_s29 + $0xf0] sm:$0xff]   ;;  %v1065_v30 = vld [vmem:[%s1198_s29 + $0xf8] sm:$0xff]   ;;  %v373_v34 = vld [vmem:[%s1183_s7 + $0x8] sm:$0xff]  ;;  %v910_v35 = vcombine.low %v372_v33, %v372_v33  ;;  %v911_v36 = vcombine.high %v372_v33, %v372_v33 }
  0x28   : > { %v1062_v27 = vld [vmem:[%s1198_s29 + $0x30] sm:$0xff]   ;;  %v1066_v31 = vld [vmem:[%s1198_s29 + $0x38] sm:$0xff]   ;;  %v912_v37 = vcombine.low %v373_v34, %v373_v34  ;;  %v913_v38 = vcombine.high %v373_v34, %v373_v34  ;;  %v371_v47 = vld [vmem:[#allocation2] sm:$0xff] }
  0x29   : > { %956 = vmatpush3.bf16.msra.mxu0 %v1046_v11  ;;  %v1063_v28 = vld [vmem:[%s1198_s29 + $0xb0] sm:$0xff]   ;;  %v1067_v32 = vld [vmem:[%s1198_s29 + $0xb8] sm:$0xff]   ;;  %676 = vmatprep.mubr.bf16.mxu0 %v911_v36  ;;  %v947_v53 = vld [vmem:[%s348_s30] ss:$0 sm:$0xff] (!%p946_p9) }
  0x2a   : > { %978 = vmatpush3.bf16.msra.mxu1 %v1047_v12  ;;  %957 = vmatprep.subr.bf16.mxu0 %v1048_v13  ;;  %v948_v54 = vld [vmem:[%s354_s10] ss:$0 sm:$0xff] (!%p946_p9) }
  0x2b   : > { %979 = vmatprep.subr.bf16.mxu1 %v1049_v14  ;;  %716 = vmatprep.mubr.bf16.mxu1 %v913_v38 }
  0x2d   : > { %958 = vmatpush3.bf16.msra.mxu0 %v1050_v15 }
  0x2e   : > { %980 = vmatpush3.bf16.msra.mxu1 %v1051_v16  ;;  %959 = vmatprep.subr.bf16.mxu0 %v1052_v17 }
  0x2f   : > { %981 = vmatprep.subr.bf16.mxu1 %v1053_v18 }
  0x31   : > { %960 = vmatpush3.bf16.msra.mxu0 %v1054_v19 }
  0x32   : > { %982 = vmatpush3.bf16.msra.mxu1 %v1055_v20  ;;  %961 = vmatprep.subr.bf16.mxu0 %v1056_v21 }
  0x33   : > { %983 = vmatprep.subr.bf16.mxu1 %v1057_v22 }
  0x35   : > { %962 = vmatpush3.bf16.msra.mxu0 %v1058_v23 }
  0x36   : > { %984 = vmatpush3.bf16.msra.mxu1 %v1059_v24  ;;  %963 = vmatprep.subr.bf16.mxu0 %v1060_v25 }
  0x37   : > { %985 = vmatprep.subr.bf16.mxu1 %v1061_v26 }
  0x39   : > { %964 = vmatpush3.bf16.msra.mxu0 %v1062_v27 }
  0x3a   : > { %986 = vmatpush3.bf16.msra.mxu1 %v1063_v28  ;;  %965 = vmatprep.subr.bf16.mxu0 %v1064_v29 }
  0x3b   : > { %987 = vmatprep.subr.bf16.mxu1 %v1065_v30 }
  0x3d   : > { %966 = vmatpush3.bf16.msra.mxu0 %v1066_v31 }
  0x3e   : > { %988 = vmatpush3.bf16.msra.mxu1 %v1067_v32 }
  0x40   : > { %677 = vmatmul.mubr.bf16.vlgmr.msra.gmra.mrb[0].mxu0 %v910_v35 }
  0x41   : > { %717 = vmatmul.mubr.bf16.vlgmr.msra.gmra.mrb[0].mxu1 %v912_v37 }
 0x113   : > { %v967_v39 = vpop.f32.mrb[0].mxu0 }
 0x114   : > { %v989_v40 = vpop.f32.mrb[0].mxu1  ;;  %v968_v41 = vpop.f32.mrb[1].mxu0 }
 0x115   : > { %v990_v42 = vpop.f32.mrb[1].mxu1  ;;  %v969_v43 = vadd.f32 %v968_v41, %v967_v39  ;;  %v970_v45 = vpop.f32.mrb[2].mxu0 }
 0x116   : > { %v991_v44 = vadd.f32 %v990_v42, %v989_v40  ;;  %v992_v46 = vpop.f32.mrb[2].mxu1  ;;  %v971_v48 = vpop.f32.mrb[3].mxu0  ;;  %729 = sbr.rel (%p946_p9) target bundleno = 301 (0x12d), region = 44 }
 0x117   : > { %v993_v49 = vpop.f32.mrb[3].mxu1 }
 0x118   : > { %v719_v50 = vadd.f32 %v991_v44, %v969_v43 }
 0x11a   : > { %v724_v51 = vadd.f32 %v719_v50, %v371_v47 }
 0x11c   : > { %725 = vst [vmem:[#allocation2] sm:$0xff] %v724_v51 }
 0x123   : > { %v730_v52 = vld [vmem:[#allocation2] sm:$0xff] }
 0x124   : > { %v738_v55 = vmul.f32 %v947_v53, %v730_v52 }
 0x126   : > { %v746_v56 = vadd.f32 %v948_v54, %v738_v55 }
 0x128   : > { %v747_v57 = vmax.f32 %v746_v56, 0.0 }
 0x12a   : > { %v748_v58 = vpack.c.bf16 %v747_v57, %v747_v57 }
 0x12c   : > { %749 = vst [vmem:[%s1193_s22] sm:$0xf] %v748_v58 }
 0x12d PF: > { %s14_s19 = sadd.s32 1, %s1110_s19   ;;  %s1267_s15 = smov %s1102_s17 }
 0x12e   : > { %p11_p10 = scmp.ge.s32.totalorder %s14_s19, 10   ;;  %s1268_s16 = smov %s1106_s18 }
 0x12f   : > { %s1269_s17 = smov %s1272_s20  ;;  %s1270_s18 = smov %s1276_s21 }
 0x130   :  { %13 = sbr.rel (!%p11_p10) target bundleno = 3 (0x3), region = 83 }

// kernel: _lambda_.14
= control target key start
LH: loop header
LB: loop body
LE: loop exit
PB: predicated region body
PF: predicated region fallthrough
CT: control target
= control target key end

     0   :  { %s1255_s15 = smov 0   ;;  %s1257_s16 = smov 0   ;;  %s1338_s0 = inlined_call_operand.vmem [shape: bf16[4,32,512], index: 0, kind: input, shape index: {}]   ;;  %s1339_s1 = inlined_call_operand.vmem [shape: bf16[4,512,128], index: 1, kind: input, shape index: {}]   ;;  %s1340_s2 = inlined_call_operand.vmem [shape: f32[4,1,128], index: 2, kind: input, shape index: {}]   ;;  %s1341_s3 = inlined_call_operand.vmem [shape: f32[4,1,128], index: 3, kind: input, shape index: {}]   ;;  %s1342_s4 = inlined_call_operand.vmem [shape: bf16[4,32,128], index: 4, kind: output, shape index: {}]  }
   0x1   :  { %s1259_s17 = smov 0  }
   0x2 LB: > { %s40_s18 = sadd.s32 1, %s1224_s16  ;;  %p1009_p0 = scmp.ge.s32.totalorder %s1228_s17, 1  ;;  %s1228_s17 = sphi %s1259_s17, %s14_s17   ;;  %s1224_s16 = sphi %s1257_s16, %s1344_s16   ;;  %s1220_s15 = sphi %s1255_s15, %s1343_s15  }
   0x3   : > { %p42_p1 = scmp.ge.s32.totalorder %s40_s18, 4  ;;  %p255_p2 = scmp.lt.s32.totalorder %s1228_s17, 5 }
   0x5   : > { %s1346_s18 = smov (%p42_p1, %s40_s18), 0  ;;  %p256_p3 = pnand %p1009_p0, %p255_p2 }
   0x6   : > { %p323_p4 = scmp.lt.s32.totalorder (!%p256_p3), %s1220_s15, 3 }
   0x7   : > { %259 = sbr.rel (%p256_p3) target bundleno = 288 (0x120), region = 36 }
   0xe   : > { %s1348_s15 = smov (!%p323_p4, %s1220_s15), 3 }
   0xf   : > { %s1065_s19 = sshll.u32 %s1348_s15, 8  ;;  %s1064_s23 = sshll.u32 %s1348_s15, 6 }
  0x10   : > { %s1279_s22 = scalar_lea.vmem %s1339_s1, %s1065_s19  ;;  %s334_s26 = scalar_lea.vmem %s1338_s0, %s1064_s23 }
  0x11   : > { %v1162_v0 = vld [vmem:[%s1279_s22 + $0x40] sm:$0xff]   ;;  %v1166_v4 = vld [vmem:[%s1279_s22 + $0x48] sm:$0xff]   ;;  %v1170_v8 = vld [vmem:[%s1279_s22 + $0x50] sm:$0xff]   ;;  %s355_s29 = scalar_lea.vmem %s1340_s2, %s1348_s15  ;;  %s361_s6 = scalar_lea.vmem %s1341_s3, %s1348_s15 }
  0x12   : > { %v1163_v1 = vld [vmem:[%s1279_s22 + $0xc0] sm:$0xff]   ;;  %1082 = vmatprep.subr.bf16.mxu0 %v1162_v0  ;;  %v1167_v5 = vld [vmem:[%s1279_s22 + $0xc8] sm:$0xff]   ;;  %v1171_v9 = vld [vmem:[%s1279_s22 + $0xd0] sm:$0xff]   ;;  %s1066_s7 = sshll.u32 %s1348_s15, 4 }
  0x13   : > { %v1164_v2 = vld [vmem:[%s1279_s22] sm:$0xff]   ;;  %1110 = vmatprep.subr.bf16.mxu1 %v1163_v1  ;;  %v1168_v6 = vld [vmem:[%s1279_s22 + $0x8] sm:$0xff]   ;;  %v1172_v10 = vld [vmem:[%s1279_s22 + $0x10] sm:$0xff]   ;;  %s373_s10 = scalar_lea.vmem %s1342_s4, %s1066_s7 }
  0x14   : > { %v1165_v3 = vld [vmem:[%s1279_s22 + $0x80] sm:$0xff]   ;;  %1083 = vmatpush3.bf16.msra.mxu0 %v1164_v2  ;;  %v1169_v7 = vld [vmem:[%s1279_s22 + $0x88] sm:$0xff]   ;;  %v1173_v11 = vld [vmem:[%s1279_s22 + $0x90] sm:$0xff]  }
  0x15   : > { %1111 = vmatpush3.bf16.msra.mxu1 %v1165_v3  ;;  %1084 = vmatprep.subr.bf16.mxu0 %v1166_v4  ;;  %v1174_v12 = vld [vmem:[%s1279_s22 + $0x58] sm:$0xff]   ;;  %v1178_v16 = vld [vmem:[%s1279_s22 + $0x60] sm:$0xff]   ;;  %v1182_v20 = vld [vmem:[%s1279_s22 + $0x68] sm:$0xff]  }
  0x16   : > { %1112 = vmatprep.subr.bf16.mxu1 %v1167_v5  ;;  %v1175_v13 = vld [vmem:[%s1279_s22 + $0xd8] sm:$0xff]   ;;  %v1179_v17 = vld [vmem:[%s1279_s22 + $0xe0] sm:$0xff]   ;;  %v1183_v21 = vld [vmem:[%s1279_s22 + $0xe8] sm:$0xff]  }
  0x17   : > { %v1176_v14 = vld [vmem:[%s1279_s22 + $0x18] sm:$0xff]   ;;  %v1180_v18 = vld [vmem:[%s1279_s22 + $0x20] sm:$0xff]   ;;  %v1184_v22 = vld [vmem:[%s1279_s22 + $0x28] sm:$0xff]  }
  0x18   : > { %1085 = vmatpush3.bf16.msra.mxu0 %v1168_v6  ;;  %v1177_v15 = vld [vmem:[%s1279_s22 + $0x98] sm:$0xff]   ;;  %v1181_v19 = vld [vmem:[%s1279_s22 + $0xa0] sm:$0xff]   ;;  %v1185_v23 = vld [vmem:[%s1279_s22 + $0xa8] sm:$0xff]  }
  0x19   : > { %1113 = vmatpush3.bf16.msra.mxu1 %v1169_v7  ;;  %1086 = vmatprep.subr.bf16.mxu0 %v1170_v8  ;;  %v1186_v24 = vld [vmem:[%s1279_s22 + $0x70] sm:$0xff]   ;;  %v1190_v28 = vld [vmem:[%s1279_s22 + $0x78] sm:$0xff]   ;;  %v1056_v49 = vld [vmem:[%s355_s29] ss:$0 sm:$0xff] }
  0x1a   : > { %1114 = vmatprep.subr.bf16.mxu1 %v1171_v9  ;;  %v1187_v25 = vld [vmem:[%s1279_s22 + $0xf0] sm:$0xff]   ;;  %v1191_v29 = vld [vmem:[%s1279_s22 + $0xf8] sm:$0xff]   ;;  %v1057_v54 = vld [vmem:[%s361_s6] ss:$0 sm:$0xff] }
  0x1b   : > { %v1188_v26 = vld [vmem:[%s1279_s22 + $0x30] sm:$0xff]   ;;  %v1192_v30 = vld [vmem:[%s1279_s22 + $0x38] sm:$0xff]  }
  0x1c   : > { %1087 = vmatpush3.bf16.msra.mxu0 %v1172_v10  ;;  %v1189_v27 = vld [vmem:[%s1279_s22 + $0xb0] sm:$0xff]   ;;  %v1193_v31 = vld [vmem:[%s1279_s22 + $0xb8] sm:$0xff]  }
  0x1d   : > { %1115 = vmatpush3.bf16.msra.mxu1 %v1173_v11  ;;  %1088 = vmatprep.subr.bf16.mxu0 %v1174_v12  ;;  %v1194_v32 = vld [vmem:[%s334_s26] ss:$16 sps:$4 sm:$0xff]   ;;  %v1196_v33 = vld [vmem:[%s334_s26 + $0x4] ss:$16 sps:$4 sm:$0xff]   ;;  %v1197_v34 = vld [vmem:[%s334_s26 + $0x8] ss:$16 sps:$4 sm:$0xff]  }
  0x1e   : > { %1116 = vmatprep.subr.bf16.mxu1 %v1175_v13  ;;  %v1199_v35 = vld [vmem:[%s334_s26 + $0xc] ss:$16 sps:$4 sm:$0xff]   ;;  %724 = vmatprep.mubr.bf16.mxu0 %v1196_v33  ;;  %v1200_v36 = vld [vmem:[%s334_s26 + $0x24] ss:$16 sps:$4 sm:$0xff]   ;;  %v1204_v38 = vld [vmem:[%s334_s26 + $0x20] ss:$16 sps:$4 sm:$0xff]  }
  0x1f   : > { %773 = vmatprep.mubr.bf16.mxu1 %v1199_v35  ;;  %v1202_v37 = vld [vmem:[%s334_s26 + $0x2c] ss:$16 sps:$4 sm:$0xff]   ;;  %v1205_v39 = vld [vmem:[%s334_s26 + $0x28] ss:$16 sps:$4 sm:$0xff]  }
  0x20   : > { %1089 = vmatpush3.bf16.msra.mxu0 %v1176_v14 }
  0x21   : > { %1117 = vmatpush3.bf16.msra.mxu1 %v1177_v15  ;;  %1090 = vmatprep.subr.bf16.mxu0 %v1178_v16 }
  0x22   : > { %1118 = vmatprep.subr.bf16.mxu1 %v1179_v17 }
  0x24   : > { %1091 = vmatpush3.bf16.msra.mxu0 %v1180_v18 }
  0x25   : > { %1119 = vmatpush3.bf16.msra.mxu1 %v1181_v19  ;;  %1092 = vmatprep.subr.bf16.mxu0 %v1182_v20 }
  0x26   : > { %1120 = vmatprep.subr.bf16.mxu1 %v1183_v21 }
  0x28   : > { %1093 = vmatpush3.bf16.msra.mxu0 %v1184_v22 }
  0x29   : > { %1121 = vmatpush3.bf16.msra.mxu1 %v1185_v23  ;;  %1094 = vmatprep.subr.bf16.mxu0 %v1186_v24 }
  0x2a   : > { %1122 = vmatprep.subr.bf16.mxu1 %v1187_v25 }
  0x2c   : > { %1095 = vmatpush3.bf16.msra.mxu0 %v1188_v26 }
  0x2d   : > { %1123 = vmatpush3.bf16.msra.mxu1 %v1189_v27  ;;  %1096 = vmatprep.subr.bf16.mxu0 %v1190_v28 }
  0x2e   : > { %1124 = vmatprep.subr.bf16.mxu1 %v1191_v29 }
  0x30   : > { %1097 = vmatpush3.bf16.msra.mxu0 %v1192_v30 }
  0x31   : > { %1125 = vmatpush3.bf16.msra.mxu1 %v1193_v31 }
  0x33   : > { %725 = vmatmul.mubr.bf16.vlgmr.msra.gmra.mrb[0].mxu0 %v1194_v32 }
  0x34   : > { %774 = vmatmul.mubr.bf16.vlgmr.msra.gmra.mrb[0].mxu1 %v1197_v34  ;;  %732 = vmatprep.mubr.bf16.mxu0 %v1200_v36 }
  0x35   : > { %781 = vmatprep.mubr.bf16.mxu1 %v1202_v37 }
  0x3b   : > { %733 = vmatmul.mubr.bf16.gmra.mrb[4].mxu0 %v1204_v38 }
  0x3c   : > { %782 = vmatmul.mubr.bf16.gmra.mrb[4].mxu1 %v1205_v39 }
 0x106   : > { %v1098_v40 = vpop.f32.mrb[0].mxu0 }
 0x107   : > { %v1126_v41 = vpop.f32.mrb[0].mxu1  ;;  %v1099_v42 = vpop.f32.mrb[1].mxu0 }
 0x108   : > { %v1100_v43 = vadd.f32 %v1099_v42, %v1098_v40  ;;  %v1127_v44 = vpop.f32.mrb[1].mxu1  ;;  %v1101_v45 = vpop.f32.mrb[2].mxu0 }
 0x109   : > { %v1128_v46 = vadd.f32 %v1127_v44, %v1126_v41  ;;  %v1129_v47 = vpop.f32.mrb[2].mxu1  ;;  %v1102_v48 = vpop.f32.mrb[3].mxu0 }
 0x10a   : > { %v1103_v50 = vadd.f32 %v1102_v48, %v1101_v45  ;;  %v1130_v51 = vpop.f32.mrb[3].mxu1 }
 0x10b   : > { %v776_v52 = vadd.f32 %v1128_v46, %v1100_v43  ;;  %v1131_v53 = vadd.f32 %v1130_v51, %v1129_v47 }
 0x10d   : > { %v812_v55 = vmul.f32 %v1056_v49, %v776_v52  ;;  %v779_v56 = vadd.f32 %v1131_v53, %v1103_v50 }
 0x10e   : > { %v1104_v57 = vpop.f32.mrb[4].mxu0 }
 0x10f   : > { %v823_v58 = vadd.f32 %v1057_v54, %v812_v55  ;;  %v813_v59 = vmul.f32 %v1056_v49, %v779_v56  ;;  %v1132_v60 = vpop.f32.mrb[4].mxu1  ;;  %v1105_v61 = vpop.f32.mrb[5].mxu0 }
 0x110   : > { %v1106_v62 = vadd.f32 %v1105_v61, %v1104_v57  ;;  %v1133_v63 = vpop.f32.mrb[5].mxu1  ;;  %v1107_v0 = vpop.f32.mrb[6].mxu0 }
 0x111   : > { %v824_v1 = vadd.f32 %v1057_v54, %v813_v59  ;;  %v1134_v2 = vadd.f32 %v1133_v63, %v1132_v60  ;;  %v1135_v3 = vpop.f32.mrb[6].mxu1  ;;  %v1108_v4 = vpop.f32.mrb[7].mxu0  ;;  %v827_v7 = vmax.f32 %v823_v58, 0.0 }
 0x112   : > { %v1109_v5 = vadd.f32 %v1108_v4, %v1107_v0  ;;  %v1136_v6 = vpop.f32.mrb[7].mxu1 }
 0x113   : > { %v828_v8 = vmax.f32 %v824_v1, 0.0  ;;  %v784_v9 = vadd.f32 %v1134_v2, %v1106_v62  ;;  %v1137_v10 = vadd.f32 %v1136_v6, %v1135_v3 }
 0x115   : > { %v1074_v11 = vpack.c.bf16 %v828_v8, %v827_v7  ;;  %v814_v12 = vmul.f32 %v1056_v49, %v784_v9  ;;  %v787_v13 = vadd.f32 %v1137_v10, %v1109_v5 }
 0x117   : > { %1075 = vst [vmem:[%s373_s10] sm:$0xff] %v1074_v11   ;;  %v825_v14 = vadd.f32 %v1057_v54, %v814_v12  ;;  %v815_v15 = vmul.f32 %v1056_v49, %v787_v13 }
 0x119   : > { %v826_v16 = vadd.f32 %v1057_v54, %v815_v15  ;;  %v829_v17 = vmax.f32 %v825_v14, 0.0 }
 0x11b   : > { %v830_v18 = vmax.f32 %v826_v16, 0.0 }
 0x11d   : > { %v1079_v19 = vpack.c.bf16 %v830_v18, %v829_v17 }
 0x11f   : > { %1081 = vst [vmem:[%s373_s10 + $0x8] sm:$0xff] %v1079_v19  }
 0x120 PF: > { %s14_s17 = sadd.s32 1, %s1228_s17   ;;  %s1343_s15 = smov %s1224_s16 }
 0x121   : > { %p11_p5 = scmp.ge.s32.totalorder %s14_s17, 6   ;;  %s1344_s16 = smov %s1346_s18 }
 0x123   :  { %13 = sbr.rel (!%p11_p5) target bundleno = 2 (0x2), region = 83 }

// kernel: _lambda_.15
= control target key start
LH: loop header
LB: loop body
LE: loop exit
PB: predicated region body
PF: predicated region fallthrough
CT: control target
= control target key end

     0   :  { %s1291_s15 = smov 0   ;;  %s1293_s16 = smov 0   ;;  %s1433_s0 = inlined_call_operand.vmem [shape: bf16[4,128,256], index: 0, kind: input, shape index: {}]   ;;  %s1434_s1 = inlined_call_operand.vmem [shape: bf16[4,256,128], index: 1, kind: input, shape index: {}]   ;;  %s1435_s2 = inlined_call_operand.vmem [shape: f32[4,1,128], index: 2, kind: input, shape index: {}]   ;;  %s1436_s3 = inlined_call_operand.vmem [shape: f32[4,1,128], index: 3, kind: input, shape index: {}]   ;;  %s1437_s4 = inlined_call_operand.vmem [shape: f32[4,128,128], index: 4, kind: output, shape index: {}]  }
   0x1   :  { %s1295_s17 = smov 0  }
   0x2 LB: > { %s40_s18 = sadd.s32 1, %s1260_s16  ;;  %p1020_p0 = scmp.ge.s32.totalorder %s1264_s17, 1  ;;  %s1264_s17 = sphi %s1295_s17, %s14_s17   ;;  %s1260_s16 = sphi %s1293_s16, %s1439_s16   ;;  %s1256_s15 = sphi %s1291_s15, %s1438_s15  }
   0x3   : > { %p42_p1 = scmp.ge.s32.totalorder %s40_s18, 4  ;;  %p255_p2 = scmp.lt.s32.totalorder %s1264_s17, 5 }
   0x5   : > { %s1441_s18 = smov (%p42_p1, %s40_s18), 0  ;;  %p256_p3 = pnand %p1020_p0, %p255_p2 }
   0x6   : > { %p323_p4 = scmp.lt.s32.totalorder (!%p256_p3), %s1256_s15, 3 }
   0x7   : > { %259 = sbr.rel (%p256_p3) target bundleno = 309 (0x135), region = 36 }
   0xe   : > { %s1443_s15 = smov (!%p323_p4, %s1256_s15), 3 }
   0xf   : > { %s1312_s19 = sshll.u32 %s1443_s15, 7  ;;  %s355_s28 = scalar_lea.vmem %s1435_s2, %s1443_s15 }
  0x10   : > { %s1318_s22 = scalar_lea.vmem %s1434_s1, %s1312_s19  ;;  %s1333_s25 = scalar_lea.vmem %s1433_s0, %s1312_s19  ;;  %v1366_v35 = vld [vmem:[%s355_s28] ss:$0 sm:$0xff] }
  0x11   : > { %v1170_v0 = vld [vmem:[%s1318_s22 + $0x40] sm:$0xff]   ;;  %v1172_v2 = vld [vmem:[%s1318_s22 + $0x48] sm:$0xff]   ;;  %v1174_v4 = vld [vmem:[%s1318_s22 + $0x50] sm:$0xff]   ;;  %s361_s5 = scalar_lea.vmem %s1436_s3, %s1443_s15  ;;  %s1388_s8 = scalar_lea.vmem %s1437_s4, %s1312_s19 }
  0x12   : > { %v1171_v1 = vld [vmem:[%s1318_s22] sm:$0xff]   ;;  %1066 = vmatprep.subr.bf16.mxu0 %v1170_v0  ;;  %1130 = vmatprep.subr.bf16.mxu1 %v1170_v0  ;;  %v1173_v3 = vld [vmem:[%s1318_s22 + $0x8] sm:$0xff]   ;;  %v1175_v5 = vld [vmem:[%s1318_s22 + $0x10] sm:$0xff]  }
  0x13   : > { %1067 = vmatpush3.bf16.msra.mxu0 %v1171_v1  ;;  %1138 = vmatpush3.bf16.msra.mxu1 %v1171_v1  ;;  %v1176_v6 = vld [vmem:[%s1318_s22 + $0x58] sm:$0xff]   ;;  %v1178_v8 = vld [vmem:[%s1318_s22 + $0x60] sm:$0xff]   ;;  %v1180_v10 = vld [vmem:[%s1318_s22 + $0x68] sm:$0xff]  }
  0x14   : > { %1068 = vmatprep.subr.bf16.mxu0 %v1172_v2  ;;  %1131 = vmatprep.subr.bf16.mxu1 %v1172_v2  ;;  %v1177_v7 = vld [vmem:[%s1318_s22 + $0x18] sm:$0xff]   ;;  %v1179_v9 = vld [vmem:[%s1318_s22 + $0x20] sm:$0xff]   ;;  %v1181_v13 = vld [vmem:[%s1318_s22 + $0x28] sm:$0xff]  }
  0x15   : > { %v1188_v11 = vld [vmem:[%s1333_s25 + $0x4] ss:$8 sps:$4 sm:$0xff]   ;;  %v1182_v14 = vld [vmem:[%s1318_s22 + $0x70] sm:$0xff]   ;;  %v1184_v16 = vld [vmem:[%s1318_s22 + $0x78] sm:$0xff]  }
  0x16   : > { %v1191_v12 = vld [vmem:[%s1333_s25 + $0x44] ss:$8 sps:$4 sm:$0xff]   ;;  %668 = vmatprep.mubr.bf16.mxu0 %v1188_v11  ;;  %v1183_v15 = vld [vmem:[%s1318_s22 + $0x30] sm:$0xff]   ;;  %v1185_v17 = vld [vmem:[%s1318_s22 + $0x38] sm:$0xff]  }
  0x17   : > { %1069 = vmatpush3.bf16.msra.mxu0 %v1173_v3  ;;  %1139 = vmatpush3.bf16.msra.mxu1 %v1173_v3  ;;  %v1186_v18 = vld [vmem:[%s1333_s25] ss:$8 sps:$4 sm:$0xff]   ;;  %v1192_v20 = vld [vmem:[%s1333_s25 + $0x14] ss:$8 sps:$4 sm:$0xff]   ;;  %v1196_v22 = vld [vmem:[%s1333_s25 + $0x10] ss:$8 sps:$4 sm:$0xff]  }
  0x18   : > { %1070 = vmatprep.subr.bf16.mxu0 %v1174_v4  ;;  %1132 = vmatprep.subr.bf16.mxu1 %v1174_v4  ;;  %v1189_v19 = vld [vmem:[%s1333_s25 + $0x40] ss:$8 sps:$4 sm:$0xff]   ;;  %v1194_v21 = vld [vmem:[%s1333_s25 + $0x54] ss:$8 sps:$4 sm:$0xff]   ;;  %v1197_v23 = vld [vmem:[%s1333_s25 + $0x50] ss:$8 sps:$4 sm:$0xff]  }
  0x19   : > { %700 = vmatprep.mubr.bf16.mxu1 %v1191_v12  ;;  %v1198_v24 = vld [vmem:[%s1333_s25 + $0x24] ss:$8 sps:$4 sm:$0xff]   ;;  %v1202_v26 = vld [vmem:[%s1333_s25 + $0x20] ss:$8 sps:$4 sm:$0xff]   ;;  %v1204_v28 = vld [vmem:[%s1333_s25 + $0x34] ss:$8 sps:$4 sm:$0xff]  }
  0x1a   : > { %v1200_v25 = vld [vmem:[%s1333_s25 + $0x64] ss:$8 sps:$4 sm:$0xff]   ;;  %v1203_v27 = vld [vmem:[%s1333_s25 + $0x60] ss:$8 sps:$4 sm:$0xff]   ;;  %v1206_v29 = vld [vmem:[%s1333_s25 + $0x74] ss:$8 sps:$4 sm:$0xff]  }
  0x1b   : > { %1071 = vmatpush3.bf16.msra.mxu0 %v1175_v5  ;;  %1140 = vmatpush3.bf16.msra.mxu1 %v1175_v5  ;;  %v1208_v30 = vld [vmem:[%s1333_s25 + $0x30] ss:$8 sps:$4 sm:$0xff]   ;;  %v1368_v41 = vld [vmem:[%s361_s5] ss:$0 sm:$0xff] }
  0x1c   : > { %1072 = vmatprep.subr.bf16.mxu0 %v1176_v6  ;;  %1133 = vmatprep.subr.bf16.mxu1 %v1176_v6  ;;  %v1209_v31 = vld [vmem:[%s1333_s25 + $0x70] ss:$8 sps:$4 sm:$0xff]  }
  0x1f   : > { %1073 = vmatpush3.bf16.msra.mxu0 %v1177_v7  ;;  %1141 = vmatpush3.bf16.msra.mxu1 %v1177_v7 }
  0x20   : > { %1074 = vmatprep.subr.bf16.mxu0 %v1178_v8  ;;  %1134 = vmatprep.subr.bf16.mxu1 %v1178_v8 }
  0x23   : > { %1075 = vmatpush3.bf16.msra.mxu0 %v1179_v9  ;;  %1142 = vmatpush3.bf16.msra.mxu1 %v1179_v9 }
  0x24   : > { %1076 = vmatprep.subr.bf16.mxu0 %v1180_v10  ;;  %1135 = vmatprep.subr.bf16.mxu1 %v1180_v10 }
  0x27   : > { %1077 = vmatpush3.bf16.msra.mxu0 %v1181_v13  ;;  %1143 = vmatpush3.bf16.msra.mxu1 %v1181_v13 }
  0x28   : > { %1078 = vmatprep.subr.bf16.mxu0 %v1182_v14  ;;  %1136 = vmatprep.subr.bf16.mxu1 %v1182_v14 }
  0x2b   : > { %1079 = vmatpush3.bf16.msra.mxu0 %v1183_v15  ;;  %1144 = vmatpush3.bf16.msra.mxu1 %v1183_v15 }
  0x2c   : > { %1080 = vmatprep.subr.bf16.mxu0 %v1184_v16  ;;  %1137 = vmatprep.subr.bf16.mxu1 %v1184_v16 }
  0x2f   : > { %1081 = vmatpush3.bf16.msra.mxu0 %v1185_v17  ;;  %1145 = vmatpush3.bf16.msra.mxu1 %v1185_v17 }
  0x32   : > { %669 = vmatmul.mubr.bf16.vlgmr.msra.gmra.mrb[0].mxu0 %v1186_v18  ;;  %701 = vmatmul.mubr.bf16.vlgmr.msra.gmra.mrb[0].mxu1 %v1189_v19 }
  0x33   : > { %676 = vmatprep.mubr.bf16.mxu0 %v1192_v20  ;;  %708 = vmatprep.mubr.bf16.mxu1 %v1194_v21 }
  0x3a   : > { %677 = vmatmul.mubr.bf16.gmra.mrb[4].mxu0 %v1196_v22  ;;  %709 = vmatmul.mubr.bf16.gmra.mrb[4].mxu1 %v1197_v23 }
  0x3b   : > { %684 = vmatprep.mubr.bf16.mxu0 %v1198_v24  ;;  %716 = vmatprep.mubr.bf16.mxu1 %v1200_v25 }
  0x42   : > { %685 = vmatmul.mubr.bf16.gmra.mrb[8].mxu0 %v1202_v26  ;;  %717 = vmatmul.mubr.bf16.gmra.mrb[8].mxu1 %v1203_v27 }
  0x43   : > { %692 = vmatprep.mubr.bf16.mxu0 %v1204_v28  ;;  %724 = vmatprep.mubr.bf16.mxu1 %v1206_v29 }
  0x4a   : > { %693 = vmatmul.mubr.bf16.gmra.mrb[12].mxu0 %v1208_v30  ;;  %725 = vmatmul.mubr.bf16.gmra.mrb[12].mxu1 %v1209_v31 }
 0x105   : > { %v1082_v32 = vpop.f32.mrb[0].mxu0  ;;  %v1106_v33 = vpop.f32.mrb[0].mxu1 }
 0x106   : > { %v1083_v34 = vpop.f32.mrb[1].mxu0  ;;  %v1107_v36 = vpop.f32.mrb[1].mxu1 }
 0x107   : > { %v1084_v37 = vadd.f32 %v1083_v34, %v1082_v32  ;;  %v1108_v38 = vadd.f32 %v1107_v36, %v1106_v33  ;;  %v1085_v39 = vpop.f32.mrb[2].mxu0  ;;  %v1109_v40 = vpop.f32.mrb[2].mxu1 }
 0x108   : > { %v1086_v42 = vpop.f32.mrb[3].mxu0  ;;  %v1110_v43 = vpop.f32.mrb[3].mxu1 }
 0x109   : > { %v791_v44 = vmul.f32 %v1084_v37, %v1366_v35  ;;  %v799_v45 = vmul.f32 %v1108_v38, %v1366_v35  ;;  %v1087_v46 = vadd.f32 %v1086_v42, %v1085_v39  ;;  %v1111_v47 = vadd.f32 %v1110_v43, %v1109_v40 }
 0x10b   : > { %v814_v48 = vadd.f32 %v1368_v41, %v791_v44  ;;  %v822_v49 = vadd.f32 %v1368_v41, %v799_v45  ;;  %v792_v50 = vmul.f32 %v1087_v46, %v1366_v35  ;;  %v800_v51 = vmul.f32 %v1111_v47, %v1366_v35 }
 0x10d   : > { %1210 = vtanh.f32 %v814_v48  ;;  %v815_v52 = vadd.f32 %v1368_v41, %v792_v50  ;;  %v823_v53 = vadd.f32 %v1368_v41, %v800_v51  ;;  %v1088_v54 = vpop.f32.mrb[4].mxu0  ;;  %v1112_v55 = vpop.f32.mrb[4].mxu1 }
 0x10e   : > { %1212 = vtanh.f32 %v822_v49  ;;  %v1089_v56 = vpop.f32.mrb[5].mxu0  ;;  %v1113_v57 = vpop.f32.mrb[5].mxu1 }
 0x10f   : > { %1214 = vtanh.f32 %v815_v52  ;;  %v1090_v58 = vadd.f32 %v1089_v56, %v1088_v54  ;;  %v1114_v59 = vadd.f32 %v1113_v57, %v1112_v55  ;;  %v1091_v60 = vpop.f32.mrb[6].mxu0  ;;  %v1115_v61 = vpop.f32.mrb[6].mxu1 }
 0x110   : > { %1216 = vtanh.f32 %v823_v53  ;;  %v1092_v62 = vpop.f32.mrb[7].mxu0  ;;  %v1116_v63 = vpop.f32.mrb[7].mxu1 }
 0x111   : > { %v793_v0 = vmul.f32 %v1090_v58, %v1366_v35  ;;  %v801_v1 = vmul.f32 %v1114_v59, %v1366_v35  ;;  %v1093_v2 = vadd.f32 %v1092_v62, %v1091_v60  ;;  %v1117_v3 = vadd.f32 %v1116_v63, %v1115_v61 }
 0x113   : > { %v816_v4 = vadd.f32 %v1368_v41, %v793_v0  ;;  %v824_v5 = vadd.f32 %v1368_v41, %v801_v1  ;;  %v794_v6 = vmul.f32 %v1093_v2, %v1366_v35  ;;  %v802_v7 = vmul.f32 %v1117_v3, %v1366_v35 }
 0x115   : > { %1218 = vtanh.f32 %v816_v4  ;;  %v817_v8 = vadd.f32 %v1368_v41, %v794_v6  ;;  %v825_v9 = vadd.f32 %v1368_v41, %v802_v7  ;;  %v1094_v10 = vpop.f32.mrb[8].mxu0  ;;  %v1118_v11 = vpop.f32.mrb[8].mxu1 }
 0x116   : > { %1220 = vtanh.f32 %v824_v5  ;;  %v1095_v12 = vpop.f32.mrb[9].mxu0  ;;  %v1119_v13 = vpop.f32.mrb[9].mxu1 }
 0x117   : > { %v1211_v14 = vpop.eup %1210  ;;  %1222 = vtanh.f32 %v817_v8  ;;  %v1096_v15 = vadd.f32 %v1095_v12, %v1094_v10  ;;  %v1120_v16 = vadd.f32 %v1119_v13, %v1118_v11  ;;  %v1097_v17 = vpop.f32.mrb[10].mxu0 }
 0x118   : > { %v1121_v18 = vpop.f32.mrb[10].mxu1  ;;  %v1213_v19 = vpop.eup %1212  ;;  %846 = vst [vmem:[%s1388_s8] sm:$0xff] %v1211_v14  ;;  %1224 = vtanh.f32 %v825_v9 }
 0x119   : > { %v1098_v20 = vpop.f32.mrb[11].mxu0  ;;  %v1122_v21 = vpop.f32.mrb[11].mxu1  ;;  %854 = vst [vmem:[%s1388_s8 + $0x40] sm:$0xff] %v1213_v19  ;;  %v795_v23 = vmul.f32 %v1096_v15, %v1366_v35  ;;  %v803_v24 = vmul.f32 %v1120_v16, %v1366_v35 }
 0x11a   : > { %v1215_v22 = vpop.eup %1214  ;;  %v1099_v25 = vadd.f32 %v1098_v20, %v1097_v17  ;;  %v1123_v26 = vadd.f32 %v1122_v21, %v1121_v18 }
 0x11b   : > { %v1217_v27 = vpop.eup %1216  ;;  %847 = vst [vmem:[%s1388_s8 + $0x8] sm:$0xff] %v1215_v22  ;;  %v818_v28 = vadd.f32 %v1368_v41, %v795_v23  ;;  %v826_v29 = vadd.f32 %v1368_v41, %v803_v24 }
 0x11c   : > { %855 = vst [vmem:[%s1388_s8 + $0x48] sm:$0xff] %v1217_v27  ;;  %v796_v30 = vmul.f32 %v1099_v25, %v1366_v35  ;;  %v804_v31 = vmul.f32 %v1123_v26, %v1366_v35 }
 0x11d   : > { %1226 = vtanh.f32 %v818_v28  ;;  %v1100_v34 = vpop.f32.mrb[12].mxu0  ;;  %v1124_v36 = vpop.f32.mrb[12].mxu1 }
 0x11e   : > { %v819_v32 = vadd.f32 %v1368_v41, %v796_v30  ;;  %v827_v33 = vadd.f32 %v1368_v41, %v804_v31  ;;  %1228 = vtanh.f32 %v826_v29  ;;  %v1101_v37 = vpop.f32.mrb[13].mxu0  ;;  %v1125_v38 = vpop.f32.mrb[13].mxu1 }
 0x11f   : > { %v1219_v39 = vpop.eup %1218  ;;  %v1102_v40 = vadd.f32 %v1101_v37, %v1100_v34  ;;  %v1126_v42 = vadd.f32 %v1125_v38, %v1124_v36  ;;  %v1103_v43 = vpop.f32.mrb[14].mxu0 }
 0x120   : > { %1230 = vtanh.f32 %v819_v32  ;;  %v1127_v44 = vpop.f32.mrb[14].mxu1  ;;  %v1221_v45 = vpop.eup %1220  ;;  %848 = vst [vmem:[%s1388_s8 + $0x10] sm:$0xff] %v1219_v39 }
 0x121   : > { %1232 = vtanh.f32 %v827_v33  ;;  %v1104_v46 = vpop.f32.mrb[15].mxu0  ;;  %v1128_v47 = vpop.f32.mrb[15].mxu1  ;;  %856 = vst [vmem:[%s1388_s8 + $0x50] sm:$0xff] %v1221_v45  ;;  %v797_v49 = vmul.f32 %v1102_v40, %v1366_v35  ;;  %v805_v50 = vmul.f32 %v1126_v42, %v1366_v35 }
 0x122   : > { %v1223_v48 = vpop.eup %1222  ;;  %v1105_v51 = vadd.f32 %v1104_v46, %v1103_v43  ;;  %v1129_v52 = vadd.f32 %v1128_v47, %v1127_v44 }
 0x123   : > { %v1225_v53 = vpop.eup %1224  ;;  %849 = vst [vmem:[%s1388_s8 + $0x18] sm:$0xff] %v1223_v48  ;;  %v820_v54 = vadd.f32 %v1368_v41, %v797_v49  ;;  %v828_v55 = vadd.f32 %v1368_v41, %v805_v50 }
 0x124   : > { %857 = vst [vmem:[%s1388_s8 + $0x58] sm:$0xff] %v1225_v53  ;;  %v798_v56 = vmul.f32 %v1105_v51, %v1366_v35  ;;  %v806_v57 = vmul.f32 %v1129_v52, %v1366_v35 }
 0x125   : > { %1234 = vtanh.f32 %v820_v54 }
 0x126   : > { %v821_v58 = vadd.f32 %v1368_v41, %v798_v56  ;;  %v829_v59 = vadd.f32 %v1368_v41, %v806_v57  ;;  %1236 = vtanh.f32 %v828_v55 }
 0x127   : > { %v1227_v60 = vpop.eup %1226 }
 0x128   : > { %1238 = vtanh.f32 %v821_v58  ;;  %v1229_v61 = vpop.eup %1228  ;;  %850 = vst [vmem:[%s1388_s8 + $0x20] sm:$0xff] %v1227_v60 }
 0x129   : > { %1240 = vtanh.f32 %v829_v59  ;;  %858 = vst [vmem:[%s1388_s8 + $0x60] sm:$0xff] %v1229_v61 }
 0x12a   : > { %v1231_v62 = vpop.eup %1230 }
 0x12b   : > { %v1233_v63 = vpop.eup %1232  ;;  %851 = vst [vmem:[%s1388_s8 + $0x28] sm:$0xff] %v1231_v62 }
 0x12c   : > { %859 = vst [vmem:[%s1388_s8 + $0x68] sm:$0xff] %v1233_v63 }
 0x12f   : > { %v1235_v35 = vpop.eup %1234 }
 0x130   : > { %v1237_v0 = vpop.eup %1236  ;;  %852 = vst [vmem:[%s1388_s8 + $0x30] sm:$0xff] %v1235_v35 }
 0x131   : > { %860 = vst [vmem:[%s1388_s8 + $0x70] sm:$0xff] %v1237_v0 }
 0x132   : > { %v1239_v1 = vpop.eup %1238 }
 0x133   : > { %v1241_v41 = vpop.eup %1240  ;;  %853 = vst [vmem:[%s1388_s8 + $0x38] sm:$0xff] %v1239_v1 }
 0x134   : > { %861 = vst [vmem:[%s1388_s8 + $0x78] sm:$0xff] %v1241_v41 }
 0x135 PF: > { %s14_s17 = sadd.s32 1, %s1264_s17   ;;  %s1438_s15 = smov %s1260_s16 }
 0x136   : > { %p11_p5 = scmp.ge.s32.totalorder %s14_s17, 6   ;;  %s1439_s16 = smov %s1441_s18 }
 0x138   :  { %13 = sbr.rel (!%p11_p5) target bundleno = 2 (0x2), region = 83 }

</bundles_post_ra>
